<compile_context>
chip_gen: v5e
topology: v5e:2x2
jax: 0.10.0
libtpu: 0.0.40
codegen_flags: <defaults>
</compile_context>

<pallas_src>
import jax
import jax.numpy as jnp
from jax.experimental import pallas as pl
from jax.experimental.pallas import tpu as pltpu


# ----------------------------- Pallas kernel --------------------------------


def _repvgg_block_kernel(x_ref, w_ref, b_ref, o_ref, xpad_ref, col_ref):
    """Fused 3x3 conv + bias + ReLU for one (batch, row-strip) grid point.

    x_ref:    (1, H, W, Cp)      bf16 full (unpadded) NHWC image, Cp = 128*k
    w_ref:    (9*Cp, Coutp)      bf16 fused weights, im2col-ordered
    b_ref:    (1, Coutp)         f32 fused bias
    o_ref:    (1, TH, W, Coutp)  f32 output row strip (lane-dense: Coutp=128*k)
    xpad_ref: (TH+2, W+2, Cp)    bf16 scratch: zero-padded input strip (halo)
    col_ref:  (TH, W, 9*Cp)      bf16 scratch: im2col matrix
    """
    s = pl.program_id(1)
    n_strips = pl.num_programs(1)
    TH = o_ref.shape[1]
    W = o_ref.shape[2]
    Cp = x_ref.shape[3]
    Coutp = o_ref.shape[3]

    row0 = pl.multiple_of(s * TH, TH)  # first output row of this strip

    # --- Build the spatially padded (padding=1) input strip in VMEM ---------
    xpad_ref[...] = jnp.zeros_like(xpad_ref)
    # Interior rows (global rows row0 .. row0+TH-1).
    xpad_ref[1:TH + 1, 1:W + 1, :] = x_ref[0, pl.ds(row0, TH), :, :]

    # Top halo row (global row row0-1) exists unless this is the first strip.
    @pl.when(s > 0)
    def _():
        xpad_ref[0:1, 1:W + 1, :] = x_ref[0, pl.ds(row0 - 1, 1), :, :]

    # Bottom halo row (global row row0+TH) exists unless this is the last strip.
    @pl.when(s < n_strips - 1)
    def _():
        xpad_ref[TH + 1:TH + 2, 1:W + 1, :] = x_ref[0, pl.ds(row0 + TH, 1), :, :]

    # --- im2col: 9 shifted windows laid out contiguously along lanes --------
    for ky in range(3):
        for kx in range(3):
            t = ky * 3 + kx
            col_ref[:, :, t * Cp:(t + 1) * Cp] = xpad_ref[ky:ky + TH, kx:kx + W, :]

    # --- One MXU matmul: (TH*W, 9*Cp) x (9*Cp, Coutp), f32 accumulation -----
    col2d = col_ref[...].reshape(TH * W, 9 * Cp)
    acc = jnp.dot(col2d, w_ref[...], preferred_element_type=jnp.float32)
    acc = jnp.maximum(acc + b_ref[...], 0.0)            # bias + ReLU in f32
    o_ref[...] = acc.reshape(1, TH, W, Coutp).astype(o_ref.dtype)


def _round_up(v, m):
    return ((v + m - 1) // m) * m


def repvgg_block_pallas(x_nhwc, w_fused, b_fused, *, strip_rows=8):
    """x_nhwc: (N, H, W, C) f32; w_fused: (3,3,C,Cout); b_fused: (Cout,)."""
    N, H, W, C = x_nhwc.shape
    Cout = w_fused.shape[-1]

    LANE = 128
    Cp = _round_up(C, LANE)
    Coutp = _round_up(Cout, LANE)

    TH = strip_rows
    assert TH % 8 == 0 and H % TH == 0, "strip_rows must be a multiple of 8 dividing H"
    assert W % 8 == 0, "W must be a multiple of 8 for sublane alignment"

    # Channel-pad to lane width and cast MXU operands to bf16 (f32 accum in-kernel).
    x_p = jnp.pad(x_nhwc, ((0, 0), (0, 0), (0, 0), (0, Cp - C))).astype(jnp.bfloat16)
    w_p = jnp.pad(w_fused, ((0, 0), (0, 0), (0, Cp - C), (0, Coutp - Cout))
                  ).astype(jnp.bfloat16)
    w2d = w_p.reshape(9 * Cp, Coutp)                     # im2col-ordered weights
    b_p = jnp.pad(b_fused, (0, Coutp - Cout)).astype(jnp.float32).reshape(1, Coutp)

    grid = (N, H // TH)

    out = pl.pallas_call(
        _repvgg_block_kernel,
        out_shape=jax.ShapeDtypeStruct((N, H, W, Coutp), jnp.float32),
        grid=grid,
        in_specs=[
            # Full image per batch element (halo rows sliced in-kernel).
            pl.BlockSpec((1, H, W, Cp), lambda n, s: (n, 0, 0, 0)),
            # Fused weights / bias: constant blocks (fetched once per core).
            pl.BlockSpec((9 * Cp, Coutp), lambda n, s: (0, 0)),
            pl.BlockSpec((1, Coutp), lambda n, s: (0, 0)),
        ],
        out_specs=pl.BlockSpec((1, TH, W, Coutp), lambda n, s: (n, s, 0, 0)),
        scratch_shapes=[
            pltpu.VMEM((TH + 2, W + 2, Cp), jnp.bfloat16),   # padded input strip
            pltpu.VMEM((TH, W, 9 * Cp), jnp.bfloat16),       # im2col matrix
        ],
        compiler_params=pltpu.CompilerParams(
            dimension_semantics=("parallel", "parallel"),
            vmem_limit_bytes=32 * 1024 * 1024),
    )(x_p, w2d, b_p)

    # Drop padded output channels.
    return out[..., :Cout]


# ------------------- RepVGG branch fusion (plain-JAX glue) ------------------


def _fuse_conv_bn(w_hwio, gamma, beta, mean, var, eps=1e-5):
    """Fold BatchNorm into a conv: returns (w', b')."""
    std = jnp.sqrt(var + eps)
    scale = gamma / std                                  # (Cout,)
    w_f = w_hwio * scale                                 # broadcast over Cout (last axis)
    b_f = beta - mean * scale
    return w_f, b_f


def make_fused_repvgg_params(key, c_in, c_out):
    """Build 3x3 / 1x1 / identity branches + BN deterministically, fuse them."""
    k3, k1, _ = jax.random.split(key, 3)

    w3 = jax.random.normal(k3, (3, 3, c_in, c_out), jnp.float32) * 0.1
    w1 = jax.random.normal(k1, (1, 1, c_in, c_out), jnp.float32) * 0.1

    # Deterministic (non-trivial) BN stats for each branch.
    def bn_params(i):
        base = jnp.arange(c_out, dtype=jnp.float32)
        gamma = 1.0 + 0.05 * base + 0.01 * i
        beta = 0.1 * base - 0.02 * i
        mean = 0.01 * base + 0.005 * i
        var = 1.0 + 0.02 * base + 0.01 * i
        return gamma, beta, mean, var

    w3_f, b3_f = _fuse_conv_bn(w3, *bn_params(0))
    w1_f, b1_f = _fuse_conv_bn(w1, *bn_params(1))

    # Identity branch exists only when c_in == c_out (stride 1).
    if c_in == c_out:
        w_id = jnp.zeros((3, 3, c_in, c_out), jnp.float32)
        w_id = w_id.at[1, 1].set(jnp.eye(c_in, dtype=jnp.float32))
        wid_f, bid_f = _fuse_conv_bn(w_id, *bn_params(2))
    else:
        wid_f = jnp.zeros((3, 3, c_in, c_out), jnp.float32)
        bid_f = jnp.zeros((c_out,), jnp.float32)

    # Pad the 1x1 branch into the center of a 3x3 kernel and sum all branches.
    w1_padded = jnp.zeros((3, 3, c_in, c_out), jnp.float32).at[1, 1].set(w1_f[0, 0])
    w_fused = w3_f + w1_padded + wid_f
    b_fused = b3_f + b1_f + bid_f
    return w_fused, b_fused


# ----------------------------------- main -----------------------------------


if __name__ == "__main__":
    key = jax.random.PRNGKey(0)
    kx, kw = jax.random.split(key)

    N, C, H, W = 2, 4, 16, 16          # small NCHW input (PyTorch convention)
    Cout = C

    x_nchw = jax.random.normal(kx, (N, C, H, W), jnp.float32)
    x_nhwc = jnp.transpose(x_nchw, (0, 2, 3, 1))   # layout: NCHW -> NHWC

    w_fused, b_fused = make_fused_repvgg_params(kw, C, Cout)

    out = repvgg_block_pallas(x_nhwc, w_fused, b_fused)
    out = jax.block_until_ready(out)

    # Pure-JAX reference with the same bf16 rounding of the MXU operands.
    x_bf = x_nhwc.astype(jnp.bfloat16).astype(jnp.float32)
    w_bf = w_fused.astype(jnp.bfloat16).astype(jnp.float32)
    ref = jax.lax.conv_general_dilated(
        x_bf, w_bf, window_strides=(1, 1), padding="SAME",
        dimension_numbers=("NHWC", "HWIO", "NHWC"))
    ref = jnp.maximum(ref + b_fused, 0.0)

    assert out.shape == (N, H, W, Cout)
    assert jnp.allclose(out, ref, atol=5e-3, rtol=5e-3), "mismatch vs JAX reference"

    print("KERNEL_OK")
</pallas_src>

<mosaic_0001>
module attributes {stable_mosaic.version = 11 : i64} {
  func.func @_repvgg_block_kernel(%arg0: i32, %arg1: i32, %arg2: memref<1x16x16x128xbf16, #tpu.memory_space<vmem>>, %arg3: memref<1152x128xbf16, #tpu.memory_space<vmem>>, %arg4: memref<1x128xf32, #tpu.memory_space<vmem>>, %arg5: memref<1x8x16x128xf32, #tpu.memory_space<vmem>>, %arg6: memref<10x18x128xbf16, #tpu.memory_space<vmem>>, %arg7: memref<8x16x1152xbf16, #tpu.memory_space<vmem>>) attributes {dimension_semantics = [#tpu.dimension_semantics<parallel>, #tpu.dimension_semantics<parallel>], iteration_bounds = array<i64: 2, 2>, scalar_prefetch = 0 : i64, scratch_operands = 2 : i64, tpu.core_type = #tpu.core_type<tc>, window_params = [{transform_indices = @transform_0, window_bounds = array<i64: 1, 16, 16, 128>}, {pipeline_mode = #tpu.pipeline_mode<synchronous>, transform_indices = @transform_1, window_bounds = array<i64: 1152, 128>}, {pipeline_mode = #tpu.pipeline_mode<synchronous>, transform_indices = @transform_2, window_bounds = array<i64: 1, 128>}, {transform_indices = @transform_3, window_bounds = array<i64: 1, 8, 16, 128>}]} {
    %c8_i32 = arith.constant 8 : i32
    %0 = arith.muli %arg1, %c8_i32 : i32
    %1 = tpu.assume_multiple %0, 8 : i32
    %cst = arith.constant 0.000000e+00 : bf16
    %2 = vector.broadcast %cst : bf16 to vector<10x18x128xbf16>
    %c0 = arith.constant 0 : index
    %c0_0 = arith.constant 0 : index
    %c0_1 = arith.constant 0 : index
    %3 = vector.load %arg6[%c0, %c0_0, %c0_1] : memref<10x18x128xbf16, #tpu.memory_space<vmem>>, vector<10x18x128xbf16>
    tpu.vector_store %arg6[%c0, %c0_0, %c0_1], %2 {strides = array<i32>} : memref<10x18x128xbf16, #tpu.memory_space<vmem>>, vector<10x18x128xbf16>,
    %c0_2 = arith.constant 0 : index
    %4 = arith.index_cast %1 : i32 to index
    %c0_3 = arith.constant 0 : index
    %c0_4 = arith.constant 0 : index
    %5 = vector.load %arg2[%c0_2, %4, %c0_3, %c0_4] : memref<1x16x16x128xbf16, #tpu.memory_space<vmem>>, vector<1x8x16x128xbf16>
    %6 = vector.shape_cast %5 : vector<1x8x16x128xbf16> to vector<8x16x128xbf16>
    %c1 = arith.constant 1 : index
    %c1_5 = arith.constant 1 : index
    %c0_6 = arith.constant 0 : index
    %7 = vector.load %arg6[%c1, %c1_5, %c0_6] : memref<10x18x128xbf16, #tpu.memory_space<vmem>>, vector<8x16x128xbf16>
    tpu.vector_store %arg6[%c1, %c1_5, %c0_6], %6 {strides = array<i32>} : memref<10x18x128xbf16, #tpu.memory_space<vmem>>, vector<8x16x128xbf16>,
    %c0_i32 = arith.constant 0 : i32
    %8 = arith.cmpi sgt, %arg1, %c0_i32 : i32
    %9 = arith.extui %8 : i1 to i32
    %c0_i32_7 = arith.constant 0 : i32
    %10 = arith.cmpi ne, %9, %c0_i32_7 : i32
    scf.if %10 {
      %c1_i32_67 = arith.constant 1 : i32
      %43 = arith.subi %1, %c1_i32_67 : i32
      %c0_68 = arith.constant 0 : index
      %44 = arith.index_cast %43 : i32 to index
      %c0_69 = arith.constant 0 : index
      %c0_70 = arith.constant 0 : index
      %45 = vector.load %arg2[%c0_68, %44, %c0_69, %c0_70] : memref<1x16x16x128xbf16, #tpu.memory_space<vmem>>, vector<1x1x16x128xbf16>
      %46 = vector.shape_cast %45 : vector<1x1x16x128xbf16> to vector<1x16x128xbf16>
      %c0_71 = arith.constant 0 : index
      %c1_72 = arith.constant 1 : index
      %c0_73 = arith.constant 0 : index
      %47 = vector.load %arg6[%c0_71, %c1_72, %c0_73] : memref<10x18x128xbf16, #tpu.memory_space<vmem>>, vector<1x16x128xbf16>
      tpu.vector_store %arg6[%c0_71, %c1_72, %c0_73], %46 {strides = array<i32>} : memref<10x18x128xbf16, #tpu.memory_space<vmem>>, vector<1x16x128xbf16>,
    } else {
    }
    %c1_i32 = arith.constant 1 : i32
    %11 = arith.cmpi slt, %arg1, %c1_i32 : i32
    %12 = arith.extui %11 : i1 to i32
    %c0_i32_8 = arith.constant 0 : i32
    %13 = arith.cmpi ne, %12, %c0_i32_8 : i32
    scf.if %13 {
      %c8_i32_67 = arith.constant 8 : i32
      %43 = arith.addi %1, %c8_i32_67 : i32
      %c0_68 = arith.constant 0 : index
      %44 = arith.index_cast %43 : i32 to index
      %c0_69 = arith.constant 0 : index
      %c0_70 = arith.constant 0 : index
      %45 = vector.load %arg2[%c0_68, %44, %c0_69, %c0_70] : memref<1x16x16x128xbf16, #tpu.memory_space<vmem>>, vector<1x1x16x128xbf16>
      %46 = vector.shape_cast %45 : vector<1x1x16x128xbf16> to vector<1x16x128xbf16>
      %c9 = arith.constant 9 : index
      %c1_71 = arith.constant 1 : index
      %c0_72 = arith.constant 0 : index
      %47 = vector.load %arg6[%c9, %c1_71, %c0_72] : memref<10x18x128xbf16, #tpu.memory_space<vmem>>, vector<1x16x128xbf16>
      tpu.vector_store %arg6[%c9, %c1_71, %c0_72], %46 {strides = array<i32>} : memref<10x18x128xbf16, #tpu.memory_space<vmem>>, vector<1x16x128xbf16>,
    } else {
    }
    %c0_9 = arith.constant 0 : index
    %c0_10 = arith.constant 0 : index
    %c0_11 = arith.constant 0 : index
    %14 = vector.load %arg6[%c0_9, %c0_10, %c0_11] : memref<10x18x128xbf16, #tpu.memory_space<vmem>>, vector<8x16x128xbf16>
    %c0_12 = arith.constant 0 : index
    %c0_13 = arith.constant 0 : index
    %c0_14 = arith.constant 0 : index
    %15 = vector.load %arg7[%c0_12, %c0_13, %c0_14] : memref<8x16x1152xbf16, #tpu.memory_space<vmem>>, vector<8x16x128xbf16>
    tpu.vector_store %arg7[%c0_12, %c0_13, %c0_14], %14 {strides = array<i32>} : memref<8x16x1152xbf16, #tpu.memory_space<vmem>>, vector<8x16x128xbf16>,
    %c0_15 = arith.constant 0 : index
    %c1_16 = arith.constant 1 : index
    %c0_17 = arith.constant 0 : index
    %16 = vector.load %arg6[%c0_15, %c1_16, %c0_17] : memref<10x18x128xbf16, #tpu.memory_space<vmem>>, vector<8x16x128xbf16>
    %c0_18 = arith.constant 0 : index
    %c0_19 = arith.constant 0 : index
    %c128 = arith.constant 128 : index
    %17 = vector.load %arg7[%c0_18, %c0_19, %c128] : memref<8x16x1152xbf16, #tpu.memory_space<vmem>>, vector<8x16x128xbf16>
    tpu.vector_store %arg7[%c0_18, %c0_19, %c128], %16 {strides = array<i32>} : memref<8x16x1152xbf16, #tpu.memory_space<vmem>>, vector<8x16x128xbf16>,
    %c0_20 = arith.constant 0 : index
    %c2 = arith.constant 2 : index
    %c0_21 = arith.constant 0 : index
    %18 = vector.load %arg6[%c0_20, %c2, %c0_21] : memref<10x18x128xbf16, #tpu.memory_space<vmem>>, vector<8x16x128xbf16>
    %c0_22 = arith.constant 0 : index
    %c0_23 = arith.constant 0 : index
    %c256 = arith.constant 256 : index
    %19 = vector.load %arg7[%c0_22, %c0_23, %c256] : memref<8x16x1152xbf16, #tpu.memory_space<vmem>>, vector<8x16x128xbf16>
    tpu.vector_store %arg7[%c0_22, %c0_23, %c256], %18 {strides = array<i32>} : memref<8x16x1152xbf16, #tpu.memory_space<vmem>>, vector<8x16x128xbf16>,
    %c1_24 = arith.constant 1 : index
    %c0_25 = arith.constant 0 : index
    %c0_26 = arith.constant 0 : index
    %20 = vector.load %arg6[%c1_24, %c0_25, %c0_26] : memref<10x18x128xbf16, #tpu.memory_space<vmem>>, vector<8x16x128xbf16>
    %c0_27 = arith.constant 0 : index
    %c0_28 = arith.constant 0 : index
    %c384 = arith.constant 384 : index
    %21 = vector.load %arg7[%c0_27, %c0_28, %c384] : memref<8x16x1152xbf16, #tpu.memory_space<vmem>>, vector<8x16x128xbf16>
    tpu.vector_store %arg7[%c0_27, %c0_28, %c384], %20 {strides = array<i32>} : memref<8x16x1152xbf16, #tpu.memory_space<vmem>>, vector<8x16x128xbf16>,
    %c1_29 = arith.constant 1 : index
    %c1_30 = arith.constant 1 : index
    %c0_31 = arith.constant 0 : index
    %22 = vector.load %arg6[%c1_29, %c1_30, %c0_31] : memref<10x18x128xbf16, #tpu.memory_space<vmem>>, vector<8x16x128xbf16>
    %c0_32 = arith.constant 0 : index
    %c0_33 = arith.constant 0 : index
    %c512 = arith.constant 512 : index
    %23 = vector.load %arg7[%c0_32, %c0_33, %c512] : memref<8x16x1152xbf16, #tpu.memory_space<vmem>>, vector<8x16x128xbf16>
    tpu.vector_store %arg7[%c0_32, %c0_33, %c512], %22 {strides = array<i32>} : memref<8x16x1152xbf16, #tpu.memory_space<vmem>>, vector<8x16x128xbf16>,
    %c1_34 = arith.constant 1 : index
    %c2_35 = arith.constant 2 : index
    %c0_36 = arith.constant 0 : index
    %24 = vector.load %arg6[%c1_34, %c2_35, %c0_36] : memref<10x18x128xbf16, #tpu.memory_space<vmem>>, vector<8x16x128xbf16>
    %c0_37 = arith.constant 0 : index
    %c0_38 = arith.constant 0 : index
    %c640 = arith.constant 640 : index
    %25 = vector.load %arg7[%c0_37, %c0_38, %c640] : memref<8x16x1152xbf16, #tpu.memory_space<vmem>>, vector<8x16x128xbf16>
    tpu.vector_store %arg7[%c0_37, %c0_38, %c640], %24 {strides = array<i32>} : memref<8x16x1152xbf16, #tpu.memory_space<vmem>>, vector<8x16x128xbf16>,
    %c2_39 = arith.constant 2 : index
    %c0_40 = arith.constant 0 : index
    %c0_41 = arith.constant 0 : index
    %26 = vector.load %arg6[%c2_39, %c0_40, %c0_41] : memref<10x18x128xbf16, #tpu.memory_space<vmem>>, vector<8x16x128xbf16>
    %c0_42 = arith.constant 0 : index
    %c0_43 = arith.constant 0 : index
    %c768 = arith.constant 768 : index
    %27 = vector.load %arg7[%c0_42, %c0_43, %c768] : memref<8x16x1152xbf16, #tpu.memory_space<vmem>>, vector<8x16x128xbf16>
    tpu.vector_store %arg7[%c0_42, %c0_43, %c768], %26 {strides = array<i32>} : memref<8x16x1152xbf16, #tpu.memory_space<vmem>>, vector<8x16x128xbf16>,
    %c2_44 = arith.constant 2 : index
    %c1_45 = arith.constant 1 : index
    %c0_46 = arith.constant 0 : index
    %28 = vector.load %arg6[%c2_44, %c1_45, %c0_46] : memref<10x18x128xbf16, #tpu.memory_space<vmem>>, vector<8x16x128xbf16>
    %c0_47 = arith.constant 0 : index
    %c0_48 = arith.constant 0 : index
    %c896 = arith.constant 896 : index
    %29 = vector.load %arg7[%c0_47, %c0_48, %c896] : memref<8x16x1152xbf16, #tpu.memory_space<vmem>>, vector<8x16x128xbf16>
    tpu.vector_store %arg7[%c0_47, %c0_48, %c896], %28 {strides = array<i32>} : memref<8x16x1152xbf16, #tpu.memory_space<vmem>>, vector<8x16x128xbf16>,
    %c2_49 = arith.constant 2 : index
    %c2_50 = arith.constant 2 : index
    %c0_51 = arith.constant 0 : index
    %30 = vector.load %arg6[%c2_49, %c2_50, %c0_51] : memref<10x18x128xbf16, #tpu.memory_space<vmem>>, vector<8x16x128xbf16>
    %c0_52 = arith.constant 0 : index
    %c0_53 = arith.constant 0 : index
    %c1024 = arith.constant 1024 : index
    %31 = vector.load %arg7[%c0_52, %c0_53, %c1024] : memref<8x16x1152xbf16, #tpu.memory_space<vmem>>, vector<8x16x128xbf16>
    tpu.vector_store %arg7[%c0_52, %c0_53, %c1024], %30 {strides = array<i32>} : memref<8x16x1152xbf16, #tpu.memory_space<vmem>>, vector<8x16x128xbf16>,
    %c0_54 = arith.constant 0 : index
    %c0_55 = arith.constant 0 : index
    %c0_56 = arith.constant 0 : index
    %32 = vector.load %arg7[%c0_54, %c0_55, %c0_56] : memref<8x16x1152xbf16, #tpu.memory_space<vmem>>, vector<8x16x1152xbf16>
    %33 = vector.shape_cast %32 : vector<8x16x1152xbf16> to vector<128x1152xbf16>
    %c0_57 = arith.constant 0 : index
    %c0_58 = arith.constant 0 : index
    %34 = vector.load %arg3[%c0_57, %c0_58] : memref<1152x128xbf16, #tpu.memory_space<vmem>>, vector<1152x128xbf16>
    %cst_59 = arith.constant dense<0.000000e+00> : vector<128x128xf32>
    %35 = tpu.matmul %33, %34, %cst_59 {dimension_numbers = #tpu.dot_dimension_numbers<[1], [0], [0], [1], [0, 0, 1, 1], [], []>} : vector<128x1152xbf16>, vector<1152x128xbf16>, vector<128x128xf32> -> vector<128x128xf32>
    %c0_60 = arith.constant 0 : index
    %c0_61 = arith.constant 0 : index
    %36 = vector.load %arg4[%c0_60, %c0_61] : memref<1x128xf32, #tpu.memory_space<vmem>>, vector<1x128xf32>
    %37 = vector.broadcast %36 : vector<1x128xf32> to vector<128x128xf32>
    %38 = arith.addf %35, %37 : vector<128x128xf32>
    %cst_62 = arith.constant 0.000000e+00 : f32
    %39 = vector.broadcast %cst_62 : f32 to vector<128x128xf32>
    %40 = arith.maximumf %38, %39 : vector<128x128xf32>
    %41 = vector.shape_cast %40 : vector<128x128xf32> to vector<1x8x16x128xf32>
    %c0_63 = arith.constant 0 : index
    %c0_64 = arith.constant 0 : index
    %c0_65 = arith.constant 0 : index
    %c0_66 = arith.constant 0 : index
    %42 = vector.load %arg5[%c0_63, %c0_64, %c0_65, %c0_66] : memref<1x8x16x128xf32, #tpu.memory_space<vmem>>, vector<1x8x16x128xf32>
    tpu.vector_store %arg5[%c0_63, %c0_64, %c0_65, %c0_66], %41 {strides = array<i32>} : memref<1x8x16x128xf32, #tpu.memory_space<vmem>>, vector<1x8x16x128xf32>,
    return
  }
  func.func @transform_0(%arg0: i32, %arg1: i32) -> (i32, i32, i32, i32) {
    %c0_i32 = arith.constant 0 : i32
    %c0_i32_0 = arith.constant 0 : i32
    %c0_i32_1 = arith.constant 0 : i32
    %c0_i32_2 = arith.constant 0 : i32
    return %arg0, %c0_i32, %c0_i32_0, %c0_i32_1 : i32, i32, i32, i32
  }
  func.func @transform_1(%arg0: i32, %arg1: i32) -> (i32, i32) {
    %c0_i32 = arith.constant 0 : i32
    %c0_i32_0 = arith.constant 0 : i32
    %c0_i32_1 = arith.constant 0 : i32
    return %c0_i32, %c0_i32_0 : i32, i32
  }
  func.func @transform_2(%arg0: i32, %arg1: i32) -> (i32, i32) {
    %c0_i32 = arith.constant 0 : i32
    %c0_i32_0 = arith.constant 0 : i32
    %c0_i32_1 = arith.constant 0 : i32
    return %c0_i32, %c0_i32_0 : i32, i32
  }
  func.func @transform_3(%arg0: i32, %arg1: i32) -> (i32, i32, i32, i32) {
    %c0_i32 = arith.constant 0 : i32
    %c0_i32_0 = arith.constant 0 : i32
    %c0_i32_1 = arith.constant 0 : i32
    return %arg0, %arg1, %c0_i32, %c0_i32_0 : i32, i32, i32, i32
  }
}

</mosaic_0001>

<bundles_post_ra>
// kernel: tpu_custom_call.1
= control target key start
LH: loop header
LB: loop body
LE: loop exit
PB: predicated region body
PF: predicated region fallthrough
CT: control target
= control target key end

     0   :  { %s5331_s0 = inlined_call_operand.hbm [shape: bf16[2,16,16,128], index: 0, kind: input, shape index: {}]   ;;  %s5332_s1 = inlined_call_operand.hbm [shape: bf16[1152,128], index: 1, kind: input, shape index: {}]   ;;  %s5333_s2 = inlined_call_operand.vmem [shape: f32[1,128], index: 2, kind: input, shape index: {}]   ;;  %s5334_s3 = inlined_call_operand.hbm [shape: f32[2,16,16,128], index: 3, kind: output, shape index: {}]  }
   0x1   :  { %5345 = sst [smem:[#allocation19_spill]] %s5332_s1 }
   0x2   :  { %5346 = sst [smem:[#allocation20_spill]] %s5334_s3 }
   0x3   :  { %8 = vsyncpa [#allocation5], 0 }
   0x4   :  { %10 = vsyncpa [#allocation5 + $0x1], 0 }
   0x5   :  { %11 = vsyncpa [#allocation8], 0 }
   0x6   :  { %12 = vsyncpa [#allocation6], 0 }
   0x7   :  { %14 = vsyncpa [#allocation6 + $0x1], 0  ;;  %s4592_s12 = smov 0   ;;  %s4594_s13 = smov 0  }
   0x8   :  { %s4596_s14 = smov 0   ;;  %s4598_s15 = smov 0  }
   0x9   :  { %s4600_s16 = smov 0   ;;  %s4602_s17 = smov 0  }
   0xa   :  { %s4604_s18 = smov 0   ;;  %s4606_s19 = smov 0  }
   0xb   :  { %s4608_s20 = smov 0   ;;  %s4610_s21 = smov 0  }
   0xc   :  { %s4612_s22 = smov 0  }
   0xd LB: > { %5347 = sst [smem:[#allocation13_spill]] %s4524_s12  ;;  %s3454_s23 = sadd.s32 4294967295, %s4564_s22   ;;  %s4564_s22 = sphi %s4612_s22, %s20_s22   ;;  %s4560_s21 = sphi %s4610_s21, %s5387_s21   ;;  %s4556_s20 = sphi %s4608_s20, %s5378_s20   ;;  %s4552_s19 = sphi %s4606_s19, %s5386_s19   ;;  %s4548_s18 = sphi %s4604_s18, %s5377_s18   ;;  %s4544_s17 = sphi %s4602_s17, %s5385_s17   ;;  %s4540_s16 = sphi %s4600_s16, %s5384_s16   ;;  %s4536_s15 = sphi %s4598_s15, %s5383_s15   ;;  %s4532_s14 = sphi %s4596_s14, %s5382_s14   ;;  %s4528_s13 = sphi %s4594_s13, %s5381_s13   ;;  %s4524_s12 = sphi %s4592_s12, %s5380_s12  }
   0xe   : > { %5348 = sst [smem:[#allocation14_spill]] %s4556_s20  ;;  %s3455_s24 = sadd.s32 4294967294, %s4564_s22  }
   0xf   : > { %p52_p0 = scmp.ne.s32.totalorder %s4540_s16, %s4536_s15  ;;  %p4648_p1 = scmp.eq.s32.totalorder %s3454_s23, 0 }
  0x10   : > { %p119_p2 = scmp.ne.s32.totalorder %s4532_s14, %s4528_s13  ;;  %p120_p3 = scmp.eq.s32.totalorder %s3454_s23, 3 }
  0x11   : > { %p4656_p4 = por %p4648_p1, %p52_p0  ;;  %p125_p5 = scmp.ne.s32.totalorder %s4528_s13, %s4524_s12 }
  0x12   : > { %p4662_p6 = por %p120_p3, %p119_p2  ;;  %p126_p7 = scmp.eq.s32.totalorder %s3455_s24, 3 }
  0x13   : > { %p3456_p8 = scmp.ge.s32.totalorder %s4564_s22, 1  ;;  %p133_p9 = scmp.lt.s32.totalorder %s4564_s22, 5 }
  0x14   : > { %s5351_s27 = scalar_select %p4662_p6, 1, 0 }
  0x15   : > { %p4668_p10 = por %p126_p7, %p125_p5  ;;  %p4672_p11 = pnand %p3456_p8, %p133_p9 }
  0x16   : > { %5352 = sst [smem:[#allocation15_spill]] %s5351_s27  ;;  %s4566_s6 = smov [#allocation7]  }
  0x17   : > { %s5353_s28 = scalar_select %p4668_p10, 1, 0 }
  0x18   : > { %s5356_s1 = sld [smem:[#allocation19_spill]]  ;;  %p4267_p12 = pneg %p4672_p11 }
  0x19   : > { %5354 = sst [smem:[#allocation16_spill]] %s5353_s28  ;;  %s146_s7 = sshll.u32 %s4566_s6, 4  ;;  %s147_s7 = int_to_ptr.vmem [resolvable:$true] %s146_s7 }
  0x1a   : > { %p4268_p13 = pnand %p4267_p12, %p4648_p1  ;;  %s5335_s8 = smov 64  }
  0x1b   : > { %s5336_s9 = smov 4   ;;  %s29_s10 = sadd.s32 1, %s4556_s20 }
  0x1c   : > { %s32_s11 = sadd.s32 1, %s4560_s21  ;;  %p30_p0 = scmp.ge.s32.totalorder %s29_s10, 2 }
  0x1d   : > { %s39_s15 = sadd.s32 1, %s4544_s17  ;;  %p46_p2 = scmp.ne.s32.totalorder %s4544_s17, %s4540_s16 }
  0x1e   : > { %s144_s5 = sshll.u32 %s5356_s1, 4  ;;  %p47_p3 = scmp.eq.s32.totalorder %s4564_s22, 0  ;;  %s145_s5 = int_to_ptr.hbm [resolvable:$true] %s144_s5 }
  0x1f   : > { %4270 = dma.hbm_to_vmem [thread:$0]  (!%p4268_p13), %s145_s5, 9216, %s147_s7, [#allocation8], %s5335_s8, %s5335_s8, %s5336_s9  }
  0x20   : > { %s5389_s10 = smov (%p30_p0, %s29_s10), 0  ;;  %s5391_s11 = smov (!%p30_p0, %s32_s11), %s4560_s21 }
  0x21   : > { %5357 = sst [smem:[#allocation17_spill]] %s5389_s10  ;;  %p4695_p5 = por %p47_p3, %p46_p2 }
  0x22   : > { %s105_s24 = ssub.s32 %s4556_s20, %s5389_s10  ;;  %p34_p7 = scmp.ge.s32.totalorder %s5391_s11, 2 }
  0x23   : > { %s109_s30 = sadd.s32 1, %s4532_s14  ;;  %p4280_p8 = scmp.lt.s32.totalorder %s4564_s22, 4 }
  0x24   : > { %s163_s4 = sand.u32 1, %s4544_s17   ;;  %s5393_s11 = smov (%p34_p7, %s5391_s11), 0 }
  0x25   : > { %5359 = sst [smem:[#allocation18_spill]] %s5393_s11  ;;  %s3459_s5 = sshll.u32 %s163_s4, 7 }
  0x26   : > { %s36_s6 = ssub.s32 %s4560_s21, %s5393_s11  ;;  %s4085_s8 = sshll.u32 %s4560_s21, 7 }
  0x27   : > { %p37_p9 = scmp.eq.s32.totalorder %s36_s6, 0  ;;  %s106_s7 = sor.u32 %s105_s24, %s36_s6 }
  0x28   : > { %p107_p12 = scmp.eq.s32.totalorder %s106_s7, 0  ;;  %s172_s28 = scalar_lea.hbm %s5331_s0, %s4085_s8 }
  0x29   : > { %s4710_s9 = scalar_select %p37_p9, %s4544_s17, %s39_s15  }
  0x2a   : > { %s4713_s1 = scalar_select %p107_p12, %s4532_s14, %s109_s30  }
  0x2b   : > { %s167_s12 = scalar_lea.vmem [#allocation4], %s3459_s5  ;;  %s173_s3 = sshll.u32 %s172_s28, 4  ;;  %s174_s3 = int_to_ptr.hbm [resolvable:$true] %s173_s3 }
  0x2c   : > { %s175_s27 = sshll.u32 %s167_s12, 4  ;;  %p4272_p13 = pnand %p4280_p8, %p4695_p5  ;;  %s176_s27 = int_to_ptr.vmem [resolvable:$true] %s175_s27 }
  0x2d   : > { %s164_s11 = scalar_lea.sflag [#allocation5], %s163_s4  ;;  %s5360_s24 = smov 4  }
  0x2e   : > { %s5361_s6 = smov 64   ;;  %187 = sbr.rel (%p4672_p11) target bundleno = 594 (0x252), region = 32 }
  0x2f   : > { %4274 = dma.hbm_to_vmem [thread:$0]  (!%p4272_p13), %s174_s3, 2048, %s176_s27, %s164_s11, %s5361_s6, %s5361_s6, %s5360_s24  }
  0x30   : > { %s189_s20 = sand.u32 (!%p4672_p11), 1, %s4540_s16  }
  0x31   : > { %s4728_s8 = sshll.u32 (!%p4672_p11), %s189_s20, 7  ;;  %s190_s12 = scalar_lea.sflag (!%p4672_p11), [#allocation5], %s189_s20 }
  0x32   : > { %s193_s28 = scalar_lea.vmem (!%p4672_p11), [#allocation4], %s4728_s8 }
  0x33   : > { %4511 = dma.done.wait (%p4656_p4), %s190_s12, 2048  }
  0x34   : > { %4513 = vsyncadd (%p4656_p4), %s190_s12, 4294965248 }
  0x35   : > { %4515 = dma.done.wait (%p4648_p1), [#allocation8], 9216  }
  0x36   : > { %4517 = vsyncadd (%p4648_p1), [#allocation8], 4294958080  ;;  %s219_s3 = sand.u32 1, %s4528_s13   ;;  %s3466_s27 = sshll.u32 %s4548_s18, 3  ;;  %v4569_v0 = vmov 0   ;;  %vm438_vm2 = vcmask 1043456  }
  0x37   : > { %228 = vst [vmem:[#allocation2 + $0xc] sm:$0xf] %v4569_v0  ;;  %s4744_s29 = sshll.u32 %s219_s3, 7  ;;  %s4087_s25 = sshll.u32 %s4548_s18, 6  ;;  %vm439_vm0 = vsmask.f32 7938 }
  0x38   : > { %225 = vst [vmem:[#allocation2] sm:$0xf] %v4569_v0  ;;  %s4755_s26 = scalar_lea.vmem %s193_s28, %s4087_s25 [#allocation4]  ;;  %vm274_vm1 = vsmask.f32 256  ;;  %vm275_vm3 = vsmask.f32 4368  ;;  %vm4791_vm5 = vmand %vm438_vm2, %vm439_vm0 }
  0x39   : > { %226 = vst [vmem:[#allocation2 + $0x4] sm:$0xf] %v4569_v0  ;;  %v258_v1 = vld [vmem:[%s4755_s26] sm:$0xf]  ;;  %v259_v2 = vld [vmem:[%s4755_s26 + $0x4] sm:$0xf]  ;;  %vm4798_vm6 = vmor %vm274_vm1, %vm275_vm3 }
  0x3a   : > { %227 = vst [vmem:[#allocation2 + $0x8] sm:$0x1] %v4569_v0  ;;  %v278_v3 = vshrl.u32 %v258_v1, 16  ;;  %v260_v4 = vld [vmem:[%s4755_s26 + $0x8] sm:$0xf]  ;;  %v286_v5 = vshrl.u32 %v259_v2, 16 }
  0x3b   : > { %229 = vst [vmem:[#allocation2 + $0x10] sm:$0xf] %v4569_v0  ;;  %v261_v6 = vld [vmem:[%s4755_s26 + $0xc] sm:$0xf]  ;;  %v295_v8 = vshrl.u32 %v260_v4, 16  ;;  %v281_v12 = vshll.u32 %v258_v1, 16 }
  0x3c   : > { %230 = vst [vmem:[#allocation2 + $0x14] sm:$0x1] %v4569_v0  ;;  %v280_v7 = vrot.slane %v278_v3, 7  ;;  %v262_v9 = vld [vmem:[%s4755_s26 + $0x10] sm:$0xf]  ;;  %v303_v10 = vshrl.u32 %v261_v6, 16 }
  0x3d   : > { %231 = vst [vmem:[#allocation2 + $0x18] sm:$0xf] %v4569_v0  ;;  %v263_v11 = vld [vmem:[%s4755_s26 + $0x14] sm:$0xf]  ;;  %v288_v13 = vrot.slane %v286_v5, 7  ;;  %v289_v14 = vshll.u32 %v259_v2, 16 }
  0x3e   : > { %232 = vst [vmem:[#allocation2 + $0x1c] sm:$0xf] %v4569_v0  ;;  %vm445_vm4 = vcmask 1040384   ;;  %v312_v15 = vshrl.u32 %v262_v9, 16  ;;  %v284_v16 = vrot.slane %v280_v7, 4  ;;  %v297_v17 = vrot.slane %v295_v8, 7 }
  0x3f   : > { %233 = vst [vmem:[#allocation2 + $0x20] sm:$0x1] %v4569_v0  ;;  %v298_v18 = vshll.u32 %v260_v4, 16  ;;  %v320_v19 = vshrl.u32 %v263_v11, 16  ;;  %v441_v20 = vld [vmem:[#allocation2 + $0xc] sm:$0xf]  ;;  %v283_v24 = vor.u32 %v281_v12, %v280_v7  ;;  %v291_v25 = vor.u32 %v289_v14, %v288_v13  ;;  %vm4814_vm7 = vmand %vm445_vm4, %vm274_vm1 }
  0x40   : > { %234 = vst [vmem:[#allocation2 + $0x24] sm:$0xf] %v4569_v0  ;;  %v305_v21 = vrot.slane %v303_v10, 7  ;;  %v306_v22 = vshll.u32 %v261_v6, 16  ;;  %v4779_v23 = vld [vmem:[%s4755_s26 + $0x18] sm:$0xf] }
  0x41   : > { %235 = vst [vmem:[#allocation2 + $0x28] sm:$0xf] %v4569_v0  ;;  %v4783_v26 = vld [vmem:[%s4755_s26 + $0x1c] sm:$0xf]  ;;  %v4786_v27 = vld [vmem:[%s4755_s26 + $0x20] sm:$0xf]  ;;  %v300_v38 = vor.u32 %v298_v18, %v297_v17  ;;  %v442_v42 = vsel %vm4791_vm5, %v283_v24, %v441_v20  ;;  %v292_v48 = vsel %vm4798_vm6, %v284_v16, %v291_v25 }
  0x42   : > { %236 = vst [vmem:[#allocation2 + $0x2c] sm:$0x1] %v4569_v0  ;;  %v293_v29 = vrot.slane %v288_v13, 4  ;;  %v314_v30 = vrot.slane %v312_v15, 7  ;;  %v315_v31 = vshll.u32 %v262_v9, 16  ;;  %v323_v32 = vshll.u32 %v263_v11, 16 }
  0x43   : > { %237 = vst [vmem:[#allocation2 + $0x30] sm:$0xf] %v4569_v0  ;;  %v447_v34 = vld [vmem:[#allocation2 + $0x14] sm:$0x1]  ;;  %v322_v35 = vrot.slane %v320_v19, 7  ;;  %v329_v36 = vshrl.u32 %v4779_v23, 16  ;;  %v308_v45 = vor.u32 %v306_v22, %v305_v21 }
  0x44   : > { %238 = vst [vmem:[#allocation2 + $0x34] sm:$0xf] %v4569_v0  ;;  %v4804_v37 = vld [vmem:[%s4755_s26 + $0x24] sm:$0xf]  ;;  %v450_v39 = vld [vmem:[#allocation2 + $0x18] sm:$0xf]  ;;  %v317_v49 = vor.u32 %v315_v31, %v314_v30  ;;  %v448_v58 = vsel %vm4814_vm7, %v293_v29, %v447_v34 }
  0x45   : > { %239 = vst [vmem:[#allocation2 + $0x38] sm:$0x1] %v4569_v0  ;;  %v337_v40 = vshrl.u32 %v4783_v26, 16  ;;  %v346_v41 = vshrl.u32 %v4786_v27, 16  ;;  %v301_v44 = vrot.slane %v297_v17, 4  ;;  %v310_v46 = vrot.slane %v305_v21, 4 }
  0x46   : > { %240 = vst [vmem:[#allocation2 + $0x3c] sm:$0xf] %v4569_v0  ;;  %v454_v47 = vld [vmem:[#allocation2 + $0x20] sm:$0x1]  ;;  %v318_v51 = vrot.slane %v314_v30, 4  ;;  %v354_v52 = vshrl.u32 %v4804_v37, 16  ;;  %v325_v54 = vor.u32 %v323_v32, %v322_v35  ;;  %v451_v59 = vsel %vm4791_vm5, %v300_v38, %v450_v39 }
  0x47   : > { %241 = vst [vmem:[#allocation2 + $0x40] sm:$0xf] %v4569_v0  ;;  %v457_v50 = vld [vmem:[#allocation2 + $0x24] sm:$0xf]  ;;  %v268_v53 = vld [vmem:[%s4755_s26 + $0x28] sm:$0xf]  ;;  %v309_v1 = vsel %vm4798_vm6, %v301_v44, %v308_v45 }
  0x48   : > { %242 = vst [vmem:[#allocation2 + $0x44] sm:$0x1] %v4569_v0  ;;  %v331_v55 = vrot.slane %v329_v36, 7  ;;  %v332_v56 = vshll.u32 %v4779_v23, 16  ;;  %v340_v57 = vshll.u32 %v4783_v26, 16  ;;  %v339_v61 = vrot.slane %v337_v40, 7 }
  0x49   : > { %243 = vst [vmem:[#allocation2 + $0x48] sm:$0xf] %v4569_v0  ;;  %v461_v60 = vld [vmem:[#allocation2 + $0x2c] sm:$0x1]  ;;  %v348_v62 = vrot.slane %v346_v41, 7  ;;  %v327_v2 = vrot.slane %v322_v35, 4  ;;  %v458_v9 = vsel %vm4791_vm5, %v317_v49, %v457_v50  ;;  %v326_v10 = vsel %vm4798_vm6, %v318_v51, %v325_v54 }
  0x4a   : > { %244 = vst [vmem:[#allocation2 + $0x4c] sm:$0xf] %v4569_v0  ;;  %v269_v63 = vld [vmem:[%s4755_s26 + $0x2c] sm:$0xf]  ;;  %v349_v3 = vshll.u32 %v4786_v27, 16  ;;  %v363_v4 = vshrl.u32 %v268_v53, 16  ;;  %v334_v11 = vor.u32 %v332_v56, %v331_v55  ;;  %v342_v15 = vor.u32 %v340_v57, %v339_v61 }
  0x4b   : > { %245 = vst [vmem:[#allocation2 + $0x50] sm:$0x1] %v4569_v0  ;;  %v464_v5 = vld [vmem:[#allocation2 + $0x30] sm:$0xf]  ;;  %v356_v6 = vrot.slane %v354_v52, 7  ;;  %v357_v7 = vshll.u32 %v4804_v37, 16  ;;  %v462_v19 = vsel %vm4814_vm7, %v327_v2, %v461_v60 }
  0x4c   : > { %246 = vst [vmem:[#allocation2 + $0x54] sm:$0xf] %v4569_v0  ;;  %v371_v8 = vshrl.u32 %v269_v63, 16  ;;  %v335_v12 = vrot.slane %v331_v55, 4  ;;  %v468_v13 = vld [vmem:[#allocation2 + $0x38] sm:$0x1]  ;;  %v351_v20 = vor.u32 %v349_v3, %v348_v62  ;;  %v465_v30 = vsel %vm4791_vm5, %v334_v11, %v464_v5 }
  0x4d   : > { %247 = vst [vmem:[#allocation2 + $0x58] sm:$0xf] %v4569_v0  ;;  %v270_v14 = vld [vmem:[%s4755_s26 + $0x30] sm:$0xf]  ;;  %v344_v16 = vrot.slane %v339_v61, 4  ;;  %v352_v17 = vrot.slane %v348_v62, 4  ;;  %v359_v25 = vor.u32 %v357_v7, %v356_v6 }
  0x4e   : > { %248 = vst [vmem:[#allocation2 + $0x5c] sm:$0x1] %v4569_v0  ;;  %v380_v18 = vshrl.u32 %v270_v14, 16  ;;  %v471_v21 = vld [vmem:[#allocation2 + $0x3c] sm:$0xf]  ;;  %v365_v22 = vrot.slane %v363_v4, 7  ;;  %v343_v34 = vsel %vm4798_vm6, %v335_v12, %v342_v15 }
  0x4f   : > { %249 = vst [vmem:[#allocation2 + $0x60] sm:$0xf] %v4569_v0  ;;  %v366_v23 = vshll.u32 %v268_v53, 16  ;;  %v271_v24 = vld [vmem:[%s4755_s26 + $0x34] sm:$0xf]  ;;  %v373_v26 = vrot.slane %v371_v8, 7  ;;  %v469_v35 = vsel %vm4814_vm7, %v344_v16, %v468_v13  ;;  %v472_v45 = vsel %vm4791_vm5, %v351_v20, %v471_v21 }
  0x50   : > { %250 = vst [vmem:[#allocation2 + $0x64] sm:$0xf] %v4569_v0  ;;  %v374_v27 = vshll.u32 %v269_v63, 16  ;;  %v388_v29 = vshrl.u32 %v271_v24, 16  ;;  %v361_v31 = vrot.slane %v356_v6, 4  ;;  %v382_v37 = vrot.slane %v380_v18, 7 }
  0x51   : > { %251 = vst [vmem:[#allocation2 + $0x68] sm:$0x1] %v4569_v0  ;;  %v475_v32 = vld [vmem:[#allocation2 + $0x44] sm:$0x1]  ;;  %v478_v36 = vld [vmem:[#allocation2 + $0x48] sm:$0xf]  ;;  %v368_v40 = vor.u32 %v366_v23, %v365_v22 }
  0x52   : > { %252 = vst [vmem:[#allocation2 + $0x6c] sm:$0xf] %v4569_v0  ;;  %v383_v38 = vshll.u32 %v270_v14, 16  ;;  %v272_v39 = vld [vmem:[%s4755_s26 + $0x38] sm:$0xf]  ;;  %v390_v41 = vrot.slane %v388_v29, 7  ;;  %v476_v54 = vsel %vm4814_vm7, %v361_v31, %v475_v32 }
  0x53   : > { %253 = vst [vmem:[#allocation2 + $0x70] sm:$0xf] %v4569_v0  ;;  %v397_v44 = vshrl.u32 %v272_v39, 16  ;;  %v273_v49 = vld [vmem:[%s4755_s26 + $0x3c] sm:$0xf]  ;;  %v378_v50 = vrot.slane %v373_v26, 4 }
  0x54   : > { %254 = vst [vmem:[#allocation2 + $0x74] sm:$0x1] %v4569_v0  ;;  %v455_v0 = vsel %vm4814_vm7, %v310_v46, %v454_v47  ;;  %v360_v46 = vsel %vm4798_vm6, %v352_v17, %v359_v25  ;;  %v369_v47 = vrot.slane %v365_v22, 4  ;;  %v400_v52 = vshll.u32 %v272_v39, 16  ;;  %v482_v55 = vld [vmem:[#allocation2 + $0x50] sm:$0x1] }
  0x55   : > { %443 = vst [vmem:[#allocation2 + $0xc] sm:$0xf] %v442_v42  ;;  %v391_v42 = vshll.u32 %v271_v24, 16  ;;  %v399_v51 = vrot.slane %v397_v44, 7  ;;  %v405_v53 = vshrl.u32 %v273_v49, 16  ;;  %v385_v56 = vor.u32 %v383_v38, %v382_v37  ;;  %s4879_s10 = scalar_lea.vmem [#allocation9], %s4744_s29 }
  0x56   : > { %444 = vst [vmem:[#allocation2 + $0x10] sm:$0xf] %v292_v48  ;;  %v376_v48 = vor.u32 %v374_v27, %v373_v26  ;;  %v408_v57 = vshll.u32 %v273_v49, 16  ;;  %v386_v60 = vrot.slane %v382_v37, 4  ;;  %v395_v63 = vrot.slane %v390_v41, 4  ;;  %p3469_p1 = scmp.le.s32.totalorder %s4548_s18, 0 }
  0x57   : > { %449 = vst [vmem:[#allocation2 + $0x14] sm:$0x1] %v448_v58  ;;  %v479_v58 = vsel %vm4791_vm5, %v368_v40, %v478_v36  ;;  %v393_v61 = vor.u32 %v391_v42, %v390_v41  ;;  %v483_v2 = vsel %vm4814_vm7, %v378_v50, %v482_v55  ;;  %v489_v3 = vld [vmem:[#allocation2 + $0x5c] sm:$0x1]  ;;  %v402_v4 = vor.u32 %v400_v52, %v399_v51  ;;  %v492_v5 = vld [vmem:[#allocation2 + $0x60] sm:$0xf] }
  0x58   : > { %452 = vst [vmem:[#allocation2 + $0x18] sm:$0xf] %v451_v59  ;;  %v485_v59 = vld [vmem:[#allocation2 + $0x54] sm:$0xf]  ;;  %v377_v62 = vsel %vm4798_vm6, %v369_v47, %v376_v48  ;;  %v403_v6 = vrot.slane %v399_v51, 4  ;;  %s3470_s11 = sadd.s32 (!%p3469_p1), 4294967295, %s3466_s27 }
  0x59   : > { %453 = vst [vmem:[#allocation2 + $0x1c] sm:$0xf] %v309_v1  ;;  %v407_v1 = vrot.slane %v405_v53, 7  ;;  %v394_v8 = vsel %vm4798_vm6, %v386_v60, %v393_v61  ;;  %v496_v11 = vld [vmem:[#allocation2 + $0x68] sm:$0x1]  ;;  %v493_v12 = vsel %vm4791_vm5, %v402_v4, %v492_v5  ;;  %s4088_s15 = sshll.u32 (!%p3469_p1), %s3470_s11, 3 }
  0x5a   : > { %456 = vst [vmem:[#allocation2 + $0x20] sm:$0x1] %v455_v0  ;;  %v486_v0 = vsel %vm4791_vm5, %v385_v56, %v485_v59  ;;  %s506_s23 = scalar_lea.vmem (!%p3469_p1), %s193_s28, %s4088_s15 [#allocation4] }
  0x5b   : > { %459 = vst [vmem:[#allocation2 + $0x24] sm:$0xf] %v458_v9  ;;  %v410_v7 = vor.u32 %v408_v57, %v407_v1  ;;  %v412_v9 = vrot.slane %v407_v1, 4 }
  0x5c   : > { %460 = vst [vmem:[#allocation2 + $0x28] sm:$0xf] %v326_v10  ;;  %v490_v10 = vsel %vm4814_vm7, %v395_v63, %v489_v3 }
  0x5d   : > { %463 = vst [vmem:[#allocation2 + $0x2c] sm:$0x1] %v462_v19  ;;  %v411_v13 = vsel %vm4798_vm6, %v403_v6, %v410_v7  ;;  %v497_v14 = vsel %vm4814_vm7, %v412_v9, %v496_v11 }
  0x5e   : > { %466 = vst [vmem:[#allocation2 + $0x30] sm:$0xf] %v465_v30 }
  0x5f   : > { %467 = vst [vmem:[#allocation2 + $0x34] sm:$0xf] %v343_v34 }
  0x60   : > { %470 = vst [vmem:[#allocation2 + $0x38] sm:$0x1] %v469_v35 }
  0x61   : > { %473 = vst [vmem:[#allocation2 + $0x3c] sm:$0xf] %v472_v45 }
  0x62   : > { %474 = vst [vmem:[#allocation2 + $0x40] sm:$0xf] %v360_v46 }
  0x63   : > { %477 = vst [vmem:[#allocation2 + $0x44] sm:$0x1] %v476_v54 }
  0x64   : > { %480 = vst [vmem:[#allocation2 + $0x48] sm:$0xf] %v479_v58 }
  0x65   : > { %481 = vst [vmem:[#allocation2 + $0x4c] sm:$0xf] %v377_v62 }
  0x66   : > { %484 = vst [vmem:[#allocation2 + $0x50] sm:$0x1] %v483_v2 }
  0x67   : > { %487 = vst [vmem:[#allocation2 + $0x54] sm:$0xf] %v486_v0 }
  0x68   : > { %488 = vst [vmem:[#allocation2 + $0x58] sm:$0xf] %v394_v8  ;;  %502 = sbr.rel (%p3469_p1) target bundleno = 120 (0x78), region = 44 }
  0x69   : > { %491 = vst [vmem:[#allocation2 + $0x5c] sm:$0x1] %v490_v10 }
  0x6a   : > { %494 = vst [vmem:[#allocation2 + $0x60] sm:$0xf] %v493_v12 }
  0x6b   : > { %495 = vst [vmem:[#allocation2 + $0x64] sm:$0xf] %v411_v13 }
  0x6c   : > { %498 = vst [vmem:[#allocation2 + $0x68] sm:$0x1] %v497_v14 }
  0x6d   : > { %v507_v15 = vld [vmem:[%s506_s23] sm:$0xf]  ;;  %v508_v16 = vld [vmem:[%s506_s23 + $0x4] sm:$0xf]  ;;  %v533_v24 = vld [vmem:[#allocation2 + $0x8] sm:$0x1] }
  0x6e   : > { %v510_v17 = vshrl.u32 %v507_v15, 16  ;;  %v513_v18 = vshll.u32 %v507_v15, 16  ;;  %v518_v19 = vshrl.u32 %v508_v16, 16  ;;  %v521_v20 = vshll.u32 %v508_v16, 16  ;;  %v529_v23 = vld [vmem:[#allocation2] sm:$0xf] }
  0x70   : > { %v512_v21 = vrot.slane %v510_v17, 7  ;;  %v520_v22 = vrot.slane %v518_v19, 7 }
  0x72   : > { %v515_v25 = vor.u32 %v513_v18, %v512_v21  ;;  %v516_v26 = vrot.slane %v512_v21, 4  ;;  %v523_v27 = vor.u32 %v521_v20, %v520_v22  ;;  %v525_v29 = vrot.slane %v520_v22, 4 }
  0x74   : > { %v530_v30 = vsel %vm4791_vm5, %v515_v25, %v529_v23  ;;  %v524_v31 = vsel %vm4798_vm6, %v516_v26, %v523_v27  ;;  %v534_v32 = vsel %vm4814_vm7, %v525_v29, %v533_v24 }
  0x75   : > { %531 = vst [vmem:[#allocation2] sm:$0xf] %v530_v30 }
  0x76   : > { %532 = vst [vmem:[#allocation2 + $0x4] sm:$0xf] %v524_v31 }
  0x77   : > { %535 = vst [vmem:[#allocation2 + $0x8] sm:$0x1] %v534_v32 }
  0x78 PF: > { %p3473_p4 = scmp.ge.s32.totalorder %s4548_s18, 1 }
  0x7a   : > { %539 = sbr.rel (%p3473_p4) target bundleno = 138 (0x8a), region = 48 }
  0x7f   : > { %v3476_v34 = vld [vmem:[%s4755_s26 + $0x40] sm:$0xf]  ;;  %v3477_v35 = vld [vmem:[%s4755_s26 + $0x44] sm:$0xf]  ;;  %v567_v42 = vld [vmem:[#allocation2 + $0x6c] sm:$0xf] }
  0x80   : > { %v547_v36 = vshrl.u32 %v3476_v34, 16  ;;  %v550_v37 = vshll.u32 %v3476_v34, 16  ;;  %v555_v38 = vshrl.u32 %v3477_v35, 16  ;;  %v558_v39 = vshll.u32 %v3477_v35, 16  ;;  %v571_v44 = vld [vmem:[#allocation2 + $0x74] sm:$0x1] }
  0x82   : > { %v549_v40 = vrot.slane %v547_v36, 7  ;;  %v557_v41 = vrot.slane %v555_v38, 7 }
  0x84   : > { %v552_v45 = vor.u32 %v550_v37, %v549_v40  ;;  %v553_v46 = vrot.slane %v549_v40, 4  ;;  %v560_v47 = vor.u32 %v558_v39, %v557_v41  ;;  %v562_v48 = vrot.slane %v557_v41, 4 }
  0x86   : > { %v568_v49 = vsel %vm4791_vm5, %v552_v45, %v567_v42  ;;  %v561_v50 = vsel %vm4798_vm6, %v553_v46, %v560_v47  ;;  %v572_v51 = vsel %vm4814_vm7, %v562_v48, %v571_v44 }
  0x87   : > { %569 = vst [vmem:[#allocation2 + $0x6c] sm:$0xf] %v568_v49 }
  0x88   : > { %570 = vst [vmem:[#allocation2 + $0x70] sm:$0xf] %v561_v50 }
  0x89   : > { %573 = vst [vmem:[#allocation2 + $0x74] sm:$0x1] %v572_v51 }
  0x8a PF: > { %v4169_v52 = vld [vmem:[#allocation7 + $0x38] sm:$0xff]  ;;  %v4168_v53 = vld [vmem:[#allocation7 + $0x30] sm:$0xff]  ;;  %v578_v54 = vld [vmem:[#allocation2 + $0x18] sm:$0xf]  ;;  %vm630_vm8 = vsmask.f32 3328 }
  0x8b   : > { %4235 = vmatpush.bf16.msra.mxu1 %v4169_v52  ;;  %4236 = vmatpush.bf16.msra.mxu2 %v4169_v52  ;;  %v579_v55 = vld [vmem:[#allocation2 + $0x1c] sm:$0xf]  ;;  %594 = vst [vmem:[#allocation3 + $0x90] sm:$0xf] %v578_v54  ;;  %v582_v28 = vld [vmem:[#allocation2 + $0x30] sm:$0xf] }
  0x8c   : > { %4237 = vmatpush.bf16.msra.mxu3 %v4169_v52  ;;  %2857 = vmatpush.bf16.msra.mxu0 %v4169_v52  ;;  %595 = vst [vmem:[#allocation3 + $0xb4] sm:$0xf] %v579_v55  ;;  %v583_v33 = vld [vmem:[#allocation2 + $0x34] sm:$0xf]  ;;  %v586_v56 = vld [vmem:[#allocation2 + $0x48] sm:$0xf] }
  0x8d   : > { %598 = vst [vmem:[#allocation3 + $0x120] sm:$0xf] %v582_v28  ;;  %v587_v43 = vld [vmem:[#allocation2 + $0x4c] sm:$0xf]  ;;  %v4167_v57 = vld [vmem:[#allocation7 + $0x28] sm:$0xff]  ;;  %v4166_v61 = vld [vmem:[#allocation7 + $0x20] sm:$0xff] }
  0x8e   : > { %599 = vst [vmem:[#allocation3 + $0x144] sm:$0xf] %v583_v33  ;;  %v574_v58 = vld [vmem:[#allocation2] sm:$0xf]  ;;  %v575_v59 = vld [vmem:[#allocation2 + $0x4] sm:$0xf] }
  0x8f   : > { %4238 = vmatpush.bf16.msra.mxu1 %v4168_v53  ;;  %4239 = vmatpush.bf16.msra.mxu2 %v4168_v53  ;;  %602 = vst [vmem:[#allocation3 + $0x1b0] sm:$0xf] %v586_v56  ;;  %v580_v60 = vld [vmem:[#allocation2 + $0x24] sm:$0xf]  ;;  %v581_v62 = vld [vmem:[#allocation2 + $0x28] sm:$0xf] }
  0x90   : > { %4240 = vmatpush.bf16.msra.mxu3 %v4168_v53  ;;  %2858 = vmatpush.bf16.msra.mxu0 %v4168_v53  ;;  %603 = vst [vmem:[#allocation3 + $0x1d4] sm:$0xf] %v587_v43  ;;  %v584_v63 = vld [vmem:[#allocation2 + $0x3c] sm:$0xf]  ;;  %v585_v1 = vld [vmem:[#allocation2 + $0x40] sm:$0xf] }
  0x91   : > { %590 = vst [vmem:[#allocation3] sm:$0xf] %v574_v58  ;;  %v4165_v2 = vld [vmem:[#allocation7 + $0x18] sm:$0xff]  ;;  %v589_v4 = vld [vmem:[#allocation2 + $0x58] sm:$0xf]  ;;  %v4164_v0 = vld [vmem:[#allocation7 + $0x10] sm:$0xff] }
  0x92   : > { %591 = vst [vmem:[#allocation3 + $0x24] sm:$0xf] %v575_v59  ;;  %v588_v3 = vld [vmem:[#allocation2 + $0x54] sm:$0xf]  ;;  %v576_v5 = vld [vmem:[#allocation2 + $0xc] sm:$0xf] }
  0x93   : > { %4241 = vmatpush.bf16.msra.mxu1 %v4167_v57  ;;  %4242 = vmatpush.bf16.msra.mxu2 %v4167_v57  ;;  %596 = vst [vmem:[#allocation3 + $0xd8] sm:$0xf] %v580_v60  ;;  %v577_v6 = vld [vmem:[#allocation2 + $0x10] sm:$0xf]  ;;  %v4163_v7 = vld [vmem:[#allocation7 + $0x8] sm:$0xff]  ;;  %v4162_v17 = vld [vmem:[#allocation7] sm:$0xff] }
  0x94   : > { %4243 = vmatpush.bf16.msra.mxu3 %v4167_v57  ;;  %2859 = vmatpush.bf16.msra.mxu0 %v4167_v57  ;;  %597 = vst [vmem:[#allocation3 + $0xfc] sm:$0xf] %v581_v62  ;;  %v4901_v8 = vld [vmem:[#allocation3 + $0x90] sm:$0xf]  ;;  %v4903_v9 = vld [vmem:[#allocation3 + $0xb0] sm:$0xf0] }
  0x95   : > { %600 = vst [vmem:[#allocation3 + $0x168] sm:$0xf] %v584_v63  ;;  %v606_v10 = vld [vmem:[#allocation2] sm:$0xf]  ;;  %v607_v11 = vld [vmem:[#allocation2 + $0x4] sm:$0xf]  ;;  %v3577_v26 = vor.u32 %v4903_v9, %v4901_v8 }
  0x96   : > { %601 = vst [vmem:[#allocation3 + $0x18c] sm:$0xf] %v585_v1  ;;  %v3648_v12 = vld [vmem:[#allocation3 + $0x120] sm:$0xf]  ;;  %v4130_v13 = vld [vmem:[#allocation3 + $0x140] sm:$0xf0] }
  0x97   : > { %4244 = vmatpush.bf16.msra.mxu1 %v4166_v61  ;;  %4245 = vmatpush.bf16.msra.mxu2 %v4166_v61  ;;  %604 = vst [vmem:[#allocation3 + $0x1f8] sm:$0xf] %v588_v3  ;;  %v608_v14 = vld [vmem:[#allocation2 + $0x8] sm:$0x1]  ;;  %v4907_v16 = vld [vmem:[#allocation3 + $0x1d0] sm:$0xf0]  ;;  %v3649_v31 = vor.u32 %v4130_v13, %v3648_v12 }
  0x98   : > { %4246 = vmatpush.bf16.msra.mxu3 %v4166_v61  ;;  %2860 = vmatpush.bf16.msra.mxu0 %v4166_v61  ;;  %605 = vst [vmem:[#allocation3 + $0x21c] sm:$0xf] %v589_v4  ;;  %v4905_v15 = vld [vmem:[#allocation3 + $0x1b0] sm:$0xf]  ;;  %v3504_v18 = vld [vmem:[#allocation3] sm:$0xf] }
  0x99   : > { %592 = vst [vmem:[#allocation3 + $0x48] sm:$0xf] %v576_v5  ;;  %vm631_vm9 = vsmask.f32 7440  ;;  %v634_v19 = vshrl.u32 %v606_v10, 16  ;;  %v637_v20 = vshll.u32 %v606_v10, 16  ;;  %v3721_v32 = vor.u32 %v4907_v16, %v4905_v15 }
  0x9a   : > { %593 = vst [vmem:[#allocation3 + $0x6c] sm:$0xf] %v577_v6  ;;  %v643_v21 = vshll.u32 %v607_v11, 16  ;;  %v647_v22 = vshrl.u32 %v607_v11, 16  ;;  %v653_v23 = vshll.u32 %v608_v14, 16  ;;  %vm905_vm10 = vcmask 1042432   ;;  %vm4915_vm11 = vmor %vm630_vm8, %vm631_vm9 }
  0x9b   : > { %4247 = vmatpush.bf16.msra.mxu1 %v4165_v2  ;;  %4248 = vmatpush.bf16.msra.mxu2 %v4165_v2  ;;  %v857_v24 = vld [vmem:[#allocation2] sm:$0xe]  ;;  %v858_v25 = vld [vmem:[#allocation2 + $0x4] sm:$0xf]  ;;  %v4094_v27 = vld [vmem:[#allocation3 + $0x20] sm:$0xf0] }
  0x9c   : > { %4249 = vmatpush.bf16.msra.mxu3 %v4165_v2  ;;  %2861 = vmatpush.bf16.msra.mxu0 %v4165_v2  ;;  %v636_v29 = vrot.slane %v634_v19, 4  ;;  %v639_v30 = vrot.slane %v637_v20, 5  ;;  %v4185_v34 = vld [vmem:[#allocation7 + $0xb8] sm:$0xff]  ;;  %v645_v36 = vrot.slane %v643_v21, 5  ;;  %v649_v37 = vrot.slane %v647_v22, 4  ;;  %v4184_v53 = vld [vmem:[#allocation7 + $0xb0] sm:$0xff] }
  0x9d   : > { %v4177_v35 = vld [vmem:[#allocation7 + $0x78] sm:$0xff]  ;;  %v859_v41 = vld [vmem:[#allocation2 + $0x8] sm:$0x1]  ;;  %vm906_vm12 = vcmask 1046532   ;;  %v3478_v42 = vrot.slane %v857_v24, 9  ;;  %v910_v44 = vrot.slane %v858_v25, 5  ;;  %v3505_v45 = vor.u32 %v4094_v27, %v3504_v18 }
  0x9e   : > { %v4193_v38 = vld [vmem:[#allocation7 + $0xf8] sm:$0xff]  ;;  %v640_v40 = vor.u32 %v639_v30, %v636_v29  ;;  %v650_v46 = vor.u32 %v649_v37, %v645_v36  ;;  %v655_v47 = vrot.slane %v653_v23, 5  ;;  %vm4920_vm13 = vmor %vm905_vm10, %vm906_vm12  ;;  %v913_v49 = vrot.slane %v859_v41, 5  ;;  %v996_v50 = vld [vmem:[#allocation2 + $0xc] sm:$0xf]  ;;  %s4234_s5 = sshll.u32 %s4548_s18, 4 }
  0x9f   : > { %4250 = vmatpush.bf16.msra.mxu1 %v4164_v0  ;;  %4251 = vmatpush.bf16.msra.mxu2 %v4164_v0  ;;  %v997_v51 = vld [vmem:[#allocation2 + $0x10] sm:$0xf]  ;;  %v911_v55 = vsel %vm4920_vm13, %v3478_v42, %v910_v44  ;;  %v912_v28 = vrot.slane %v910_v44, 4  ;;  %1012 = vst [vmem:[#allocation3 + $0xc] sm:$0xf] %v996_v50  ;;  %v4176_v33 = vld [vmem:[#allocation7 + $0x70] sm:$0xff] }
  0xa0   : > { %4252 = vmatpush.bf16.msra.mxu3 %v4164_v0  ;;  %2862 = vmatpush.bf16.msra.mxu0 %v4164_v0  ;;  %v4201_v52 = vld [vmem:[#allocation7 + $0x138] sm:$0xff]  ;;  %v641_v54 = vrot.slane %v640_v40, 4  ;;  %v651_v56 = vrot.slane %v650_v46, 4  ;;  %980 = vst [vmem:[#allocation3 + $0x8] sm:$0xf] %v911_v55  ;;  %v4192_v61 = vld [vmem:[#allocation7 + $0xf0] sm:$0xff] }
  0xa1   : > { %v1028_v43 = vld [vmem:[#allocation2 + $0xc] sm:$0xf]  ;;  %v914_v58 = vsel %vm4920_vm13, %v912_v28, %v913_v49  ;;  %1013 = vst [vmem:[#allocation3 + $0x30] sm:$0xf] %v997_v51  ;;  %v1029_v59 = vld [vmem:[#allocation2 + $0x10] sm:$0xf] }
  0xa2   : > { %v646_v57 = vsel %vm4915_vm11, %v641_v54, %v645_v36  ;;  %v1030_v60 = vld [vmem:[#allocation2 + $0x14] sm:$0x1]  ;;  %v656_v62 = vsel %vm4915_vm11, %v651_v56, %v655_v47  ;;  %v1053_v63 = vshrl.u32 %v1028_v43, 16  ;;  %v1056_v1 = vshll.u32 %v1028_v43, 16  ;;  %v4200_v3 = vld [vmem:[#allocation7 + $0x130] sm:$0xff]  ;;  %v4183_v4 = vld [vmem:[#allocation7 + $0xa8] sm:$0xff] }
  0xa3   : > { %4253 = vmatpush.bf16.msra.mxu1 %v4163_v7  ;;  %4254 = vmatpush.bf16.msra.mxu2 %v4163_v7  ;;  %841 = vst [vmem:[#allocation3 + $0x4] sm:$0xf] %v646_v57  ;;  %v1062_v2 = vshll.u32 %v1029_v59, 16  ;;  %v1066_v0 = vshrl.u32 %v1029_v59, 16  ;;  %v1072_v5 = vshll.u32 %v1030_v60, 16  ;;  %v4175_v6 = vld [vmem:[#allocation7 + $0x68] sm:$0xff] }
  0xa4   : > { %4255 = vmatpush.bf16.msra.mxu3 %v4163_v7  ;;  %2863 = vmatpush.bf16.msra.mxu0 %v4163_v7  ;;  %842 = vst [vmem:[#allocation3 + $0x28] sm:$0xf] %v656_v62  ;;  %v1055_v7 = vrot.slane %v1053_v63, 4  ;;  %v1058_v8 = vrot.slane %v1056_v1, 5  ;;  %v4191_v10 = vld [vmem:[#allocation7 + $0xe8] sm:$0xff]  ;;  %v4182_v20 = vld [vmem:[#allocation7 + $0xa0] sm:$0xff] }
  0xa5   : > { %981 = vst [vmem:[#allocation3 + $0x2c] sm:$0xf] %v914_v58  ;;  %v1064_v9 = vrot.slane %v1062_v2, 5  ;;  %v1068_v11 = vrot.slane %v1066_v0, 4  ;;  %v609_v12 = vld [vmem:[#allocation2 + $0xc] sm:$0xf] }
  0xa6   : > { %v610_v13 = vld [vmem:[#allocation2 + $0x10] sm:$0xf]  ;;  %v4199_v14 = vld [vmem:[#allocation7 + $0x128] sm:$0xff]  ;;  %v1059_v15 = vor.u32 %v1058_v8, %v1055_v7  ;;  %v1074_v16 = vrot.slane %v1072_v5, 5  ;;  %v658_v18 = vshrl.u32 %v609_v12, 16  ;;  %v661_v19 = vshll.u32 %v609_v12, 16 }
  0xa7   : > { %4256 = vmatpush.bf16.msra.mxu1 %v4162_v17  ;;  %4257 = vmatpush.bf16.msra.mxu2 %v4162_v17  ;;  %v4932_v21 = vld [vmem:[#allocation3 + $0xd8] sm:$0xf]  ;;  %v4934_v22 = vld [vmem:[#allocation3 + $0xf8] sm:$0xf0]  ;;  %v1069_v23 = vor.u32 %v1068_v11, %v1064_v9  ;;  %v667_v24 = vshll.u32 %v610_v13, 16  ;;  %v671_v25 = vshrl.u32 %v610_v13, 16 }
  0xa8   : > { %4258 = vmatpush.bf16.msra.mxu3 %v4162_v17  ;;  %2864 = vmatpush.bf16.msra.mxu0 %v4162_v17  ;;  %v611_v17 = vld [vmem:[#allocation2 + $0x14] sm:$0x1]  ;;  %v4174_v27 = vld [vmem:[#allocation7 + $0x60] sm:$0xff]  ;;  %v4936_v29 = vld [vmem:[#allocation3 + $0x168] sm:$0xf]  ;;  %v3613_v28 = vor.u32 %v4934_v22, %v4932_v21  ;;  %s4081_s7 = sshll.u32 %s4552_s19, 5 }
  0xa9   : > { %v4139_v30 = vld [vmem:[#allocation3 + $0x188] sm:$0xf0]  ;;  %v4198_v36 = vld [vmem:[#allocation7 + $0x120] sm:$0xff]  ;;  %v3756_v37 = vld [vmem:[#allocation3 + $0x1f8] sm:$0xf]  ;;  %v1070_v40 = vrot.slane %v1069_v23, 4  ;;  %s3343_s24 = sadd.s32 %s4234_s5, %s4081_s7 }
  0xaa   : > { %2875 = vmatmul.bf16.vlgmr.msra.gmra.mxu1 %v3577_v26  ;;  %2885 = vmatmul.bf16.vlgmr.msra.gmra.mxu2 %v3649_v31  ;;  %v677_v26 = vshll.u32 %v611_v17, 16  ;;  %v1060_v31 = vrot.slane %v1059_v15, 4  ;;  %v669_v41 = vrot.slane %v667_v24, 5  ;;  %v673_v42 = vrot.slane %v671_v25, 4  ;;  %v4181_v44 = vld [vmem:[#allocation7 + $0x98] sm:$0xff]  ;;  %v4196_v21 = vld [vmem:[#allocation7 + $0x110] sm:$0xff] }
  0xab   : > { %2955 = vmatpush.bf16.msrb.mxu2 %v4185_v34  ;;  %2906 = vmatpush.bf16.msrb.mxu1 %v4177_v35  ;;  %v663_v34 = vrot.slane %v661_v19, 5  ;;  %v4190_v35 = vld [vmem:[#allocation7 + $0xe0] sm:$0xff]  ;;  %v4103_v46 = vld [vmem:[#allocation3 + $0x68] sm:$0xf0]  ;;  %v860_v50 = vld [vmem:[#allocation2 + $0xc] sm:$0xe]  ;;  %v3685_v57 = vor.u32 %v4139_v30, %v4936_v29 }
  0xac   : > { %2895 = vmatmul.bf16.vlgmr.msra.gmra.mxu3 %v3721_v32  ;;  %2865 = vmatmul.bf16.vlgmr.msra.gmra.mxu0 %v3505_v45  ;;  %v660_v32 = vrot.slane %v658_v18, 4  ;;  %v3540_v45 = vld [vmem:[#allocation3 + $0x48] sm:$0xf]  ;;  %v1065_v47 = vsel %vm4915_vm11, %v1060_v31, %v1064_v9  ;;  %v4173_v51 = vld [vmem:[#allocation7 + $0x58] sm:$0xff]  ;;  %v679_v54 = vrot.slane %v677_v26, 5  ;;  %v3479_v43 = vrot.slane %v860_v50, 9 }
  0xad   : > { %3004 = vmatpush.bf16.msrb.mxu3 %v4193_v38  ;;  %3053 = vmatpush.bf16.msrb.mxu0 %v4201_v52  ;;  %v4157_v38 = vld [vmem:[#allocation3 + $0x218] sm:$0xf0]  ;;  %v1075_v52 = vsel %vm4915_vm11, %v1070_v40, %v1074_v16  ;;  %1260 = vst [vmem:[#allocation3 + $0x10] sm:$0xf] %v1065_v47  ;;  %v861_v55 = vld [vmem:[#allocation2 + $0x10] sm:$0xf]  ;;  %v3541_v2 = vor.u32 %v4103_v46, %v3540_v45 }
  0xae   : > { %v664_v49 = vor.u32 %v663_v34, %v660_v32  ;;  %1261 = vst [vmem:[#allocation3 + $0x34] sm:$0xf] %v1075_v52  ;;  %v862_v56 = vld [vmem:[#allocation2 + $0x14] sm:$0x1]  ;;  %v998_v63 = vld [vmem:[#allocation2 + $0x18] sm:$0xf]  ;;  %v3757_v1 = vor.u32 %v4157_v38, %v3756_v37 }
  0xaf   : > { %2956 = vmatpush.bf16.msrb.mxu2 %v4184_v53  ;;  %2907 = vmatpush.bf16.msrb.mxu1 %v4176_v33  ;;  %v674_v53 = vor.u32 %v673_v42, %v669_v41  ;;  %v4189_v58 = vld [vmem:[#allocation7 + $0xd8] sm:$0xff]  ;;  %v920_v62 = vrot.slane %v862_v56, 5  ;;  %v999_v5 = vld [vmem:[#allocation2 + $0x1c] sm:$0xf]  ;;  %1014 = vst [vmem:[#allocation3 + $0x54] sm:$0xf] %v998_v63 }
  0xb0   : > { %v665_v33 = vrot.slane %v664_v49, 4  ;;  %v4197_v59 = vld [vmem:[#allocation7 + $0x118] sm:$0xff]  ;;  %v1033_v12 = vld [vmem:[#allocation2 + $0x20] sm:$0x1]  ;;  %1015 = vst [vmem:[#allocation3 + $0x78] sm:$0xf] %v999_v5 }
  0xb1   : > { %3005 = vmatpush.bf16.msrb.mxu3 %v4192_v61  ;;  %3054 = vmatpush.bf16.msrb.mxu0 %v4200_v3  ;;  %v675_v60 = vrot.slane %v674_v53, 4  ;;  %v917_v61 = vrot.slane %v861_v55, 5  ;;  %v4180_v3 = vld [vmem:[#allocation7 + $0x90] sm:$0xff]  ;;  %v1096_v18 = vshll.u32 %v1033_v12, 16  ;;  %v4179_v24 = vld [vmem:[#allocation7 + $0x88] sm:$0xff]  ;;  %v4209_v45 = vld [vmem:[#allocation7 + $0x178] sm:$0xff] }
  0xb2   : > { %v670_v0 = vsel %vm4915_vm11, %v665_v33, %v669_v41  ;;  %v4171_v25 = vld [vmem:[#allocation7 + $0x48] sm:$0xff]  ;;  %v612_v32 = vld [vmem:[#allocation2 + $0x18] sm:$0xf]  ;;  %v613_v34 = vld [vmem:[#allocation2 + $0x1c] sm:$0xf]  ;;  %s4082_s6 = sshll.u32 %s3343_s24, 3 }
  0xb3   : > { %2957 = vmatpush.bf16.msrb.mxu2 %v4183_v4  ;;  %2908 = vmatpush.bf16.msrb.mxu1 %v4175_v6  ;;  %v4172_v4 = vld [vmem:[#allocation7 + $0x50] sm:$0xff]  ;;  %v1031_v6 = vld [vmem:[#allocation2 + $0x18] sm:$0xf]  ;;  %v680_v7 = vsel %vm4915_vm11, %v675_v60, %v679_v54  ;;  %843 = vst [vmem:[#allocation3 + $0x4c] sm:$0xf] %v670_v0  ;;  %v918_v8 = vsel %vm4920_vm13, %v3479_v43, %v917_v61  ;;  %v919_v9 = vrot.slane %v917_v61, 4 }
  0xb4   : > { %v1077_v11 = vshrl.u32 %v1031_v6, 16  ;;  %844 = vst [vmem:[#allocation3 + $0x70] sm:$0xf] %v680_v7  ;;  %v1080_v13 = vshll.u32 %v1031_v6, 16  ;;  %v4195_v29 = vld [vmem:[#allocation7 + $0x108] sm:$0xff]  ;;  %v1098_v31 = vrot.slane %v1096_v18, 5 }
  0xb5   : > { %3006 = vmatpush.bf16.msrb.mxu3 %v4191_v10  ;;  %3055 = vmatpush.bf16.msrb.mxu0 %v4199_v14  ;;  %v1032_v10 = vld [vmem:[#allocation2 + $0x1c] sm:$0xf]  ;;  %v921_v15 = vsel %vm4920_vm13, %v919_v9, %v920_v62  ;;  %982 = vst [vmem:[#allocation3 + $0x50] sm:$0xf] %v918_v8  ;;  %v614_v38 = vld [vmem:[#allocation2 + $0x20] sm:$0x1] }
  0xb6   : > { %v1086_v14 = vshll.u32 %v1032_v10, 16  ;;  %v1079_v16 = vrot.slane %v1077_v11, 4  ;;  %v1090_v17 = vshrl.u32 %v1032_v10, 16  ;;  %983 = vst [vmem:[#allocation3 + $0x74] sm:$0xf] %v921_v15  ;;  %v1082_v19 = vrot.slane %v1080_v13, 5 }
  0xb7   : > { %2958 = vmatpush.bf16.msrb.mxu2 %v4182_v20  ;;  %2909 = vmatpush.bf16.msrb.mxu1 %v4174_v27  ;;  %v4188_v20 = vld [vmem:[#allocation7 + $0xd0] sm:$0xff]  ;;  %v4187_v27 = vld [vmem:[#allocation7 + $0xc8] sm:$0xff]  ;;  %v682_v40 = vshrl.u32 %v612_v32, 16  ;;  %v685_v47 = vshll.u32 %v612_v32, 16  ;;  %v691_v49 = vshll.u32 %v613_v34, 16  ;;  %v695_v50 = vshrl.u32 %v613_v34, 16 }
  0xb8   : > { %v1088_v22 = vrot.slane %v1086_v14, 5  ;;  %v1092_v23 = vrot.slane %v1090_v17, 4  ;;  %v1083_v26 = vor.u32 %v1082_v19, %v1079_v16  ;;  %v4953_v41 = vld [vmem:[#allocation3 + $0xc] sm:$0xf]  ;;  %v4955_v42 = vld [vmem:[#allocation3 + $0x2c] sm:$0xf0] }
  0xb9   : > { %3007 = vmatpush.bf16.msrb.mxu3 %v4190_v35  ;;  %3056 = vmatpush.bf16.msrb.mxu0 %v4198_v36  ;;  %v4178_v35 = vld [vmem:[#allocation7 + $0x80] sm:$0xff]  ;;  %v4959_v52 = vld [vmem:[#allocation3 + $0x24] sm:$0xf0]  ;;  %v4963_v54 = vld [vmem:[#allocation3 + $0x28] sm:$0xf0]  ;;  %v701_v33 = vshll.u32 %v614_v38, 16  ;;  %v3517_v7 = vor.u32 %v4953_v41, %v4955_v42 }
  0xba   : > { %2880 = vmatmul.bf16.gmra.mxu1 %v3613_v28  ;;  %2890 = vmatmul.bf16.gmra.mxu2 %v3685_v57  ;;  %v1093_v30 = vor.u32 %v1092_v23, %v1088_v22  ;;  %v4170_v36 = vld [vmem:[#allocation7 + $0x40] sm:$0xff]  ;;  %v1084_v37 = vrot.slane %v1083_v26, 4  ;;  %v4961_v53 = vld [vmem:[#allocation3 + $0x8] sm:$0xf]  ;;  %v684_v28 = vrot.slane %v682_v40, 4  ;;  %v687_v60 = vrot.slane %v685_v47, 5 }
  0xbb   : > { %2959 = vmatpush.bf16.msrb.mxu2 %v4181_v44  ;;  %2910 = vmatpush.bf16.msrb.mxu1 %v4173_v51  ;;  %v4217_v44 = vld [vmem:[#allocation7 + $0x1b8] sm:$0xff]  ;;  %v4957_v51 = vld [vmem:[#allocation3 + $0x4] sm:$0xf]  ;;  %v863_v56 = vld [vmem:[#allocation2 + $0x18] sm:$0xe]  ;;  %v693_v61 = vrot.slane %v691_v49, 5  ;;  %v3513_v14 = vor.u32 %v4963_v54, %v4961_v53 }
  0xbc   : > { %2900 = vmatmul.bf16.gmra.mxu3 %v3757_v1  ;;  %2870 = vmatmul.bf16.gmra.mxu0 %v3541_v2  ;;  %v1094_v46 = vrot.slane %v1093_v30, 4  ;;  %v1089_v55 = vsel %vm4915_vm11, %v1084_v37, %v1088_v22  ;;  %v4186_v43 = vld [vmem:[#allocation7 + $0xc0] sm:$0xff]  ;;  %v4096_v62 = vld [vmem:[#allocation3 + $0x30] sm:$0xf0]  ;;  %v4225_v63 = vld [vmem:[#allocation7 + $0x1f8] sm:$0xff]  ;;  %v697_v2 = vrot.slane %v695_v50, 4  ;;  %v3509_v13 = vor.u32 %v4957_v51, %v4959_v52 }
  0xbd   : > { %3008 = vmatpush.bf16.msrb.mxu3 %v4189_v58  ;;  %3057 = vmatpush.bf16.msrb.mxu0 %v4197_v59  ;;  %v4194_v57 = vld [vmem:[#allocation7 + $0x100] sm:$0xff]  ;;  %v3520_v58 = vld [vmem:[#allocation3 + $0x10] sm:$0xf]  ;;  %1262 = vst [vmem:[#allocation3 + $0x58] sm:$0xf] %v1089_v55  ;;  %v4233_v1 = vld [vmem:[#allocation7 + $0x238] sm:$0xff] }
  0xbe   : > { %v1099_v59 = vsel %vm4915_vm11, %v1094_v46, %v1098_v31  ;;  %v864_v0 = vld [vmem:[#allocation2 + $0x1c] sm:$0xf]  ;;  %v865_v5 = vld [vmem:[#allocation2 + $0x20] sm:$0x1]  ;;  %v3480_v6 = vrot.slane %v863_v56, 9  ;;  %v698_v8 = vor.u32 %v697_v2, %v693_v61  ;;  %v4216_v15 = vld [vmem:[#allocation7 + $0x1b0] sm:$0xff]  ;;  %v3521_v19 = vor.u32 %v4096_v62, %v3520_v58 }
  0xbf   : > { %2960 = vmatpush.bf16.msrb.mxu2 %v4180_v3  ;;  %2911 = vmatpush.bf16.msrb.mxu1 %v4172_v4  ;;  %1263 = vst [vmem:[#allocation3 + $0x7c] sm:$0xf] %v1099_v59  ;;  %v688_v3 = vor.u32 %v687_v60, %v684_v28  ;;  %v703_v4 = vrot.slane %v701_v33, 5  ;;  %v924_v9 = vrot.slane %v864_v0, 5  ;;  %v927_v10 = vrot.slane %v865_v5, 5  ;;  %v4208_v16 = vld [vmem:[#allocation7 + $0x170] sm:$0xff] }
  0xc0   : > { %v1000_v11 = vld [vmem:[#allocation2 + $0x24] sm:$0xf]  ;;  %v1001_v12 = vld [vmem:[#allocation2 + $0x28] sm:$0xf]  ;;  %v617_v28 = vld [vmem:[#allocation2 + $0x2c] sm:$0x1] }
  0xc1   : > { %3009 = vmatpush.bf16.msrb.mxu3 %v4188_v20  ;;  %3058 = vmatpush.bf16.msrb.mxu0 %v4196_v21  ;;  %v689_v17 = vrot.slane %v688_v3, 4  ;;  %1016 = vst [vmem:[#allocation3 + $0x9c] sm:$0xf] %v1000_v11  ;;  %v1034_v18 = vld [vmem:[#allocation2 + $0x24] sm:$0xf]  ;;  %v699_v20 = vrot.slane %v698_v8, 4  ;;  %v925_v21 = vsel %vm4920_vm13, %v3480_v6, %v924_v9 }
  0xc2   : > { %v926_v22 = vrot.slane %v924_v9, 4  ;;  %1017 = vst [vmem:[#allocation3 + $0xc0] sm:$0xf] %v1001_v12  ;;  %v1035_v23 = vld [vmem:[#allocation2 + $0x28] sm:$0xf]  ;;  %v1101_v26 = vshrl.u32 %v1034_v18, 16 }
  0xc3   : > { %2961 = vmatpush.bf16.msrb.mxu2 %v4179_v24  ;;  %2912 = vmatpush.bf16.msrb.mxu1 %v4171_v25  ;;  %v694_v24 = vsel %vm4915_vm11, %v689_v17, %v693_v61  ;;  %984 = vst [vmem:[#allocation3 + $0x98] sm:$0xf] %v925_v21  ;;  %v1036_v25 = vld [vmem:[#allocation2 + $0x2c] sm:$0x1]  ;;  %v704_v31 = vsel %vm4915_vm11, %v699_v20, %v703_v4  ;;  %v1110_v34 = vshll.u32 %v1035_v23, 16  ;;  %v4215_v42 = vld [vmem:[#allocation7 + $0x1a8] sm:$0xff] }
  0xc4   : > { %v4232_v30 = vld [vmem:[#allocation7 + $0x230] sm:$0xff]  ;;  %845 = vst [vmem:[#allocation3 + $0x94] sm:$0xf] %v694_v24  ;;  %v928_v32 = vsel %vm4920_vm13, %v926_v22, %v927_v10  ;;  %v1120_v41 = vshll.u32 %v1036_v25, 16  ;;  %v4223_v49 = vld [vmem:[#allocation7 + $0x1e8] sm:$0xff]  ;;  %v725_v2 = vshll.u32 %v617_v28, 16 }
  0xc5   : > { %3010 = vmatpush.bf16.msrb.mxu3 %v4187_v27  ;;  %3059 = vmatpush.bf16.msrb.mxu0 %v4195_v29  ;;  %v1104_v27 = vshll.u32 %v1034_v18, 16  ;;  %v4224_v29 = vld [vmem:[#allocation7 + $0x1f0] sm:$0xff]  ;;  %846 = vst [vmem:[#allocation3 + $0xb8] sm:$0xf] %v704_v31  ;;  %v1112_v38 = vrot.slane %v1110_v34, 5  ;;  %v4231_v50 = vld [vmem:[#allocation7 + $0x228] sm:$0xff] }
  0xc6   : > { %985 = vst [vmem:[#allocation3 + $0xbc] sm:$0xf] %v928_v32  ;;  %v1122_v47 = vrot.slane %v1120_v41, 5  ;;  %v615_v51 = vld [vmem:[#allocation2 + $0x24] sm:$0xf]  ;;  %v727_v9 = vrot.slane %v725_v2, 5 }
  0xc7   : > { %2962 = vmatpush.bf16.msrb.mxu2 %v4178_v35  ;;  %2913 = vmatpush.bf16.msrb.mxu1 %v4170_v36  ;;  %v1114_v35 = vshrl.u32 %v1035_v23, 16  ;;  %v1103_v36 = vrot.slane %v1101_v26, 4  ;;  %v1106_v37 = vrot.slane %v1104_v27, 5  ;;  %v616_v53 = vld [vmem:[#allocation2 + $0x28] sm:$0xf]  ;;  %v706_v54 = vshrl.u32 %v615_v51, 16 }
  0xc8   : > { %v709_v33 = vshll.u32 %v615_v51, 16  ;;  %v4099_v56 = vld [vmem:[#allocation3 + $0x4c] sm:$0xf]  ;;  %v715_v59 = vshll.u32 %v616_v53, 16  ;;  %v719_v60 = vshrl.u32 %v616_v53, 16  ;;  %v4230_v51 = vld [vmem:[#allocation7 + $0x220] sm:$0xff] }
  0xc9   : > { %3011 = vmatpush.bf16.msrb.mxu3 %v4186_v43  ;;  %3060 = vmatpush.bf16.msrb.mxu0 %v4194_v57  ;;  %v1116_v40 = vrot.slane %v1114_v35, 4  ;;  %v3542_v43 = vld [vmem:[#allocation3 + $0x6c] sm:$0xf0]  ;;  %v708_v58 = vrot.slane %v706_v54, 4  ;;  %v4104_v62 = vld [vmem:[#allocation3 + $0x70] sm:$0xf0] }
  0xca   : > { %2914 = vmatmul.bf16.vlgmr.msrb.gmra.mxu1 %v3509_v13  ;;  %2963 = vmatmul.bf16.vlgmr.msrb.gmra.mxu2 %v3513_v14  ;;  %v3548_v61 = vld [vmem:[#allocation3 + $0x50] sm:$0xf]  ;;  %v4100_v3 = vld [vmem:[#allocation3 + $0x54] sm:$0xf]  ;;  %v3550_v4 = vld [vmem:[#allocation3 + $0x74] sm:$0xf0]  ;;  %v3545_v17 = vor.u32 %v4099_v56, %v3542_v43 }
  0xcb   : > { %3151 = vmatpush.bf16.msra.mxu2 %v4217_v44  ;;  %3102 = vmatpush.bf16.msra.mxu1 %v4209_v45  ;;  %v1107_v44 = vor.u32 %v1106_v37, %v1103_v36  ;;  %v4207_v45 = vld [vmem:[#allocation7 + $0x168] sm:$0xff]  ;;  %v1117_v46 = vor.u32 %v1116_v40, %v1112_v38  ;;  %v3556_v0 = vld [vmem:[#allocation3 + $0x58] sm:$0xf]  ;;  %v4105_v5 = vld [vmem:[#allocation3 + $0x78] sm:$0xf0]  ;;  %v717_v6 = vrot.slane %v715_v59, 5  ;;  %v3549_v21 = vor.u32 %v4104_v62, %v3548_v61 }
  0xcc   : > { %3012 = vmatmul.bf16.vlgmr.msrb.gmra.mxu3 %v3517_v7  ;;  %3061 = vmatmul.bf16.vlgmr.msrb.gmra.mxu0 %v3521_v19  ;;  %v721_v7 = vrot.slane %v719_v60, 4  ;;  %v866_v10 = vld [vmem:[#allocation2 + $0x24] sm:$0xe]  ;;  %v867_v11 = vld [vmem:[#allocation2 + $0x28] sm:$0xf]  ;;  %v3553_v26 = vor.u32 %v4100_v3, %v3550_v4  ;;  %v3557_v27 = vor.u32 %v4105_v5, %v3556_v0  ;;  %s5372_s19 = sld [smem:[#allocation20_spill]] }
  0xcd   : > { %3200 = vmatpush.bf16.msra.mxu3 %v4225_v63  ;;  %3249 = vmatpush.bf16.msra.mxu0 %v4233_v1  ;;  %v1108_v52 = vrot.slane %v1107_v44, 4  ;;  %v1118_v55 = vrot.slane %v1117_v46, 4  ;;  %v711_v1 = vrot.slane %v709_v33, 5  ;;  %v868_v13 = vld [vmem:[#allocation2 + $0x2c] sm:$0x1]  ;;  %v3481_v14 = vrot.slane %v866_v10, 9 }
  0xce   : > { %v722_v12 = vor.u32 %v721_v7, %v717_v6  ;;  %v934_v19 = vrot.slane %v868_v13, 5  ;;  %v1003_v20 = vld [vmem:[#allocation2 + $0x34] sm:$0xf]  ;;  %v1037_v25 = vld [vmem:[#allocation2 + $0x30] sm:$0xf]  ;;  %v4214_v44 = vld [vmem:[#allocation7 + $0x1a0] sm:$0xff] }
  0xcf   : > { %3152 = vmatpush.bf16.msra.mxu2 %v4216_v15  ;;  %3103 = vmatpush.bf16.msra.mxu1 %v4208_v16  ;;  %v1113_v57 = vsel %vm4915_vm11, %v1108_v52, %v1112_v38  ;;  %v1123_v63 = vsel %vm4915_vm11, %v1118_v55, %v1122_v47  ;;  %v712_v8 = vor.u32 %v711_v1, %v708_v58  ;;  %v931_v15 = vrot.slane %v867_v11, 5  ;;  %v1002_v16 = vld [vmem:[#allocation2 + $0x30] sm:$0xf]  ;;  %v1039_v31 = vld [vmem:[#allocation2 + $0x38] sm:$0x1]  ;;  %s3346_s27 = sshll.u32 %s4879_s10, 4  ;;  %s3347_s27 = int_to_ptr.vmem [resolvable:$true] %s3346_s27 }
  0xd0   : > { %1264 = vst [vmem:[#allocation3 + $0xa0] sm:$0xf] %v1113_v57  ;;  %v723_v22 = vrot.slane %v722_v12, 4  ;;  %v1125_v35 = vshrl.u32 %v1037_v25, 16  ;;  %v1128_v36 = vshll.u32 %v1037_v25, 16  ;;  %v4222_v47 = vld [vmem:[#allocation7 + $0x1e0] sm:$0xff] }
  0xd1   : > { %3201 = vmatpush.bf16.msra.mxu3 %v4224_v29  ;;  %3250 = vmatpush.bf16.msra.mxu0 %v4232_v30  ;;  %1265 = vst [vmem:[#allocation3 + $0xc4] sm:$0xf] %v1123_v63  ;;  %v713_v18 = vrot.slane %v712_v8, 4  ;;  %v932_v23 = vsel %vm4920_vm13, %v3481_v14, %v931_v15  ;;  %v933_v24 = vrot.slane %v931_v15, 4  ;;  %v1038_v30 = vld [vmem:[#allocation2 + $0x34] sm:$0xf] }
  0xd2   : > { %1018 = vst [vmem:[#allocation3 + $0xe4] sm:$0xf] %v1002_v16  ;;  %v728_v32 = vsel %vm4915_vm11, %v723_v22, %v727_v9  ;;  %v1134_v37 = vshll.u32 %v1038_v30, 16  ;;  %v1138_v38 = vshrl.u32 %v1038_v30, 16  ;;  %v1127_v40 = vrot.slane %v1125_v35, 4  ;;  %s5373_s8 = smov %s5372_s19  ;;  %s3345_s12 = scalar_lea.hbm %s5372_s19, %s4082_s6 }
  0xd3   : > { %3153 = vmatpush.bf16.msra.mxu2 %v4215_v42  ;;  %3104 = vmatpush.bf16.msra.mxu1 %v4207_v45  ;;  %1019 = vst [vmem:[#allocation3 + $0x108] sm:$0xf] %v1003_v20  ;;  %v718_v29 = vsel %vm4915_vm11, %v713_v18, %v717_v6  ;;  %v935_v34 = vsel %vm4920_vm13, %v933_v24, %v934_v19  ;;  %v1130_v41 = vrot.slane %v1128_v36, 5  ;;  %v1144_v42 = vshll.u32 %v1039_v31, 16  ;;  %v618_v52 = vld [vmem:[#allocation2 + $0x30] sm:$0xf] }
  0xd4   : > { %986 = vst [vmem:[#allocation3 + $0xe0] sm:$0xf] %v932_v23  ;;  %v1136_v45 = vrot.slane %v1134_v37, 5  ;;  %v1140_v46 = vrot.slane %v1138_v38, 4  ;;  %v619_v55 = vld [vmem:[#allocation2 + $0x34] sm:$0xf] }
  0xd5   : > { %3202 = vmatpush.bf16.msra.mxu3 %v4223_v49  ;;  %3251 = vmatpush.bf16.msra.mxu0 %v4231_v50  ;;  %847 = vst [vmem:[#allocation3 + $0xdc] sm:$0xf] %v718_v29  ;;  %v4206_v49 = vld [vmem:[#allocation7 + $0x160] sm:$0xff]  ;;  %v1131_v50 = vor.u32 %v1130_v41, %v1127_v40  ;;  %v1146_v54 = vrot.slane %v1144_v42, 5  ;;  %v730_v56 = vshrl.u32 %v618_v52, 16  ;;  %v733_v43 = vshll.u32 %v618_v52, 16 }
  0xd6   : > { %848 = vst [vmem:[#allocation3 + $0x100] sm:$0xf] %v728_v32  ;;  %v1141_v53 = vor.u32 %v1140_v46, %v1136_v45  ;;  %v620_v28 = vld [vmem:[#allocation2 + $0x38] sm:$0x1]  ;;  %v739_v58 = vshll.u32 %v619_v55, 16  ;;  %v743_v59 = vshrl.u32 %v619_v55, 16 }
  0xd7   : > { %987 = vst [vmem:[#allocation3 + $0x104] sm:$0xf] %v935_v34  ;;  %3154 = vmatpush.bf16.msra.mxu2 %v4214_v44  ;;  %v1132_v33 = vrot.slane %v1131_v50, 4  ;;  %3105 = vmatpush.bf16.msra.mxu1 %v4206_v49  ;;  %v749_v60 = vshll.u32 %v620_v28, 16  ;;  %v4109_v61 = vld [vmem:[#allocation3 + $0x9c] sm:$0xf] }
  0xd8   : > { %v1142_v57 = vrot.slane %v1141_v53, 4  ;;  %v3586_v62 = vld [vmem:[#allocation3 + $0xbc] sm:$0xf0]  ;;  %v732_v1 = vrot.slane %v730_v56, 4  ;;  %v735_v2 = vrot.slane %v733_v43, 5  ;;  %v741_v10 = vrot.slane %v739_v58, 5 }
  0xd9   : > { %3203 = vmatpush.bf16.msra.mxu3 %v4222_v47  ;;  %3252 = vmatpush.bf16.msra.mxu0 %v4230_v51  ;;  %v1137_v63 = vsel %vm4915_vm11, %v1132_v33, %v1136_v45  ;;  %v869_v3 = vld [vmem:[#allocation2 + $0x30] sm:$0xe]  ;;  %v4108_v4 = vld [vmem:[#allocation3 + $0x94] sm:$0xf]  ;;  %v4113_v6 = vld [vmem:[#allocation3 + $0xb8] sm:$0xf0]  ;;  %v3589_v23 = vor.u32 %v4109_v61, %v3586_v62 }
  0xda   : > { %2919 = vmatmul.bf16.gmra.mxu1 %v3545_v17  ;;  %2968 = vmatmul.bf16.gmra.mxu2 %v3549_v21  ;;  %v3578_v0 = vld [vmem:[#allocation3 + $0xb4] sm:$0xf0]  ;;  %v3592_v7 = vld [vmem:[#allocation3 + $0xa0] sm:$0xf]  ;;  %v4114_v8 = vld [vmem:[#allocation3 + $0xc0] sm:$0xf0]  ;;  %v1147_v9 = vsel %vm4915_vm11, %v1142_v57, %v1146_v54  ;;  %v736_v12 = vor.u32 %v735_v2, %v732_v1 }
  0xdb   : > { %v3584_v5 = vld [vmem:[#allocation3 + $0x98] sm:$0xf]  ;;  %1266 = vst [vmem:[#allocation3 + $0xe8] sm:$0xf] %v1137_v63  ;;  %v745_v11 = vrot.slane %v743_v59, 4  ;;  %v3482_v14 = vrot.slane %v869_v3, 9  ;;  %v3581_v29 = vor.u32 %v4108_v4, %v3578_v0  ;;  %v3593_v31 = vor.u32 %v4114_v8, %v3592_v7 }
  0xdc   : > { %3017 = vmatmul.bf16.gmra.mxu3 %v3553_v26  ;;  %3066 = vmatmul.bf16.gmra.mxu0 %v3557_v27  ;;  %1267 = vst [vmem:[#allocation3 + $0x10c] sm:$0xf] %v1147_v9  ;;  %v870_v13 = vld [vmem:[#allocation2 + $0x34] sm:$0xf]  ;;  %v751_v16 = vrot.slane %v749_v60, 5  ;;  %v737_v20 = vrot.slane %v736_v12, 4  ;;  %v3585_v30 = vor.u32 %v4113_v6, %v3584_v5 }
  0xdd   : > { %v746_v15 = vor.u32 %v745_v11, %v741_v10  ;;  %v871_v17 = vld [vmem:[#allocation2 + $0x38] sm:$0x1]  ;;  %v938_v18 = vrot.slane %v870_v13, 5  ;;  %v1004_v19 = vld [vmem:[#allocation2 + $0x3c] sm:$0xf]  ;;  %v4213_v52 = vld [vmem:[#allocation7 + $0x198] sm:$0xff] }
  0xde   : > { %v941_v21 = vrot.slane %v871_v17, 5  ;;  %v1005_v22 = vld [vmem:[#allocation2 + $0x40] sm:$0xf]  ;;  %1020 = vst [vmem:[#allocation3 + $0x12c] sm:$0xf] %v1004_v19  ;;  %v742_v32 = vsel %vm4915_vm11, %v737_v20, %v741_v10  ;;  %v4221_v54 = vld [vmem:[#allocation7 + $0x1d8] sm:$0xff]  ;;  %3155 = vmatpush.bf16.msra.mxu2 %v4213_v52 }
  0xdf   : > { %v747_v24 = vrot.slane %v746_v15, 4  ;;  %v939_v25 = vsel %vm4920_vm13, %v3482_v14, %v938_v18  ;;  %v940_v26 = vrot.slane %v938_v18, 4  ;;  %1021 = vst [vmem:[#allocation3 + $0x150] sm:$0xf] %v1005_v22  ;;  %v1040_v27 = vld [vmem:[#allocation2 + $0x3c] sm:$0xf]  ;;  %3204 = vmatpush.bf16.msra.mxu3 %v4221_v54 }
  0xe0   : > { %988 = vst [vmem:[#allocation3 + $0x128] sm:$0xf] %v939_v25  ;;  %v1041_v34 = vld [vmem:[#allocation2 + $0x40] sm:$0xf]  ;;  %v1042_v37 = vld [vmem:[#allocation2 + $0x44] sm:$0x1] }
  0xe1   : > { %v752_v35 = vsel %vm4915_vm11, %v747_v24, %v751_v16  ;;  %849 = vst [vmem:[#allocation3 + $0x124] sm:$0xf] %v742_v32  ;;  %v942_v36 = vsel %vm4920_vm13, %v940_v26, %v941_v21  ;;  %v1149_v38 = vshrl.u32 %v1040_v27, 16  ;;  %v1152_v40 = vshll.u32 %v1040_v27, 16  ;;  %v621_v44 = vld [vmem:[#allocation2 + $0x3c] sm:$0xf] }
  0xe2   : > { %850 = vst [vmem:[#allocation3 + $0x148] sm:$0xf] %v752_v35  ;;  %v1158_v41 = vshll.u32 %v1041_v34, 16  ;;  %v1162_v42 = vshrl.u32 %v1041_v34, 16  ;;  %v1168_v50 = vshll.u32 %v1042_v37, 16  ;;  %v754_v55 = vshrl.u32 %v621_v44, 16 }
  0xe3   : > { %989 = vst [vmem:[#allocation3 + $0x14c] sm:$0xf] %v942_v36  ;;  %v1151_v45 = vrot.slane %v1149_v38, 4  ;;  %v1154_v46 = vrot.slane %v1152_v40, 5  ;;  %v622_v51 = vld [vmem:[#allocation2 + $0x40] sm:$0xf] }
  0xe4   : > { %v1160_v47 = vrot.slane %v1158_v41, 5  ;;  %v1164_v49 = vrot.slane %v1162_v42, 4  ;;  %v757_v28 = vshll.u32 %v621_v44, 16  ;;  %v1170_v56 = vrot.slane %v1168_v50, 5  ;;  %v4205_v43 = vld [vmem:[#allocation7 + $0x158] sm:$0xff]  ;;  %s3348_s29 = sshll.u32 %s3345_s12, 4  ;;  %s3349_s29 = int_to_ptr.hbm [resolvable:$true] %s3348_s29 }
  0xe5   : > { %v1155_v53 = vor.u32 %v1154_v46, %v1151_v45  ;;  %v4229_v57 = vld [vmem:[#allocation7 + $0x218] sm:$0xff]  ;;  %v763_v58 = vshll.u32 %v622_v51, 16  ;;  %v623_v60 = vld [vmem:[#allocation2 + $0x44] sm:$0x1]  ;;  %v756_v61 = vrot.slane %v754_v55, 4  ;;  %3106 = vmatpush.bf16.msra.mxu1 %v4205_v43  ;;  %v767_v2 = vshrl.u32 %v622_v51, 16 }
  0xe6   : > { %v1165_v33 = vor.u32 %v1164_v49, %v1160_v47  ;;  %3253 = vmatpush.bf16.msra.mxu0 %v4229_v57  ;;  %v759_v63 = vrot.slane %v757_v28, 5  ;;  %v773_v4 = vshll.u32 %v623_v60, 16  ;;  %v872_v0 = vld [vmem:[#allocation2 + $0x3c] sm:$0xe]  ;;  %v4117_v5 = vld [vmem:[#allocation3 + $0xdc] sm:$0xf] }
  0xe7   : > { %v1156_v59 = vrot.slane %v1155_v53, 4  ;;  %v765_v1 = vrot.slane %v763_v58, 5  ;;  %v3614_v6 = vld [vmem:[#allocation3 + $0xfc] sm:$0xf0]  ;;  %v4122_v8 = vld [vmem:[#allocation3 + $0x100] sm:$0xf0] }
  0xe8   : > { %v1166_v62 = vrot.slane %v1165_v33, 4  ;;  %v3620_v7 = vld [vmem:[#allocation3 + $0xe0] sm:$0xf]  ;;  %v760_v10 = vor.u32 %v759_v63, %v756_v61  ;;  %v769_v11 = vrot.slane %v767_v2, 4  ;;  %v775_v12 = vrot.slane %v773_v4, 5  ;;  %v4220_v58 = vld [vmem:[#allocation7 + $0x1d0] sm:$0xff] }
  0xe9   : > { %v1161_v3 = vsel %vm4915_vm11, %v1156_v59, %v1160_v47  ;;  %v873_v13 = vld [vmem:[#allocation2 + $0x40] sm:$0xf]  ;;  %v3483_v14 = vrot.slane %v872_v0, 9  ;;  %v4118_v15 = vld [vmem:[#allocation3 + $0xe4] sm:$0xf]  ;;  %v3617_v32 = vor.u32 %v4117_v5, %v3614_v6  ;;  %v3621_v34 = vor.u32 %v4122_v8, %v3620_v7  ;;  %v4204_v61 = vld [vmem:[#allocation7 + $0x150] sm:$0xff]  ;;  %3205 = vmatpush.bf16.msra.mxu3 %v4220_v58 }
  0xea   : > { %2924 = vmatmul.bf16.gmra.mxu1 %v3581_v29  ;;  %2973 = vmatmul.bf16.gmra.mxu2 %v3585_v30  ;;  %v1171_v9 = vsel %vm4915_vm11, %v1166_v62, %v1170_v56  ;;  %1268 = vst [vmem:[#allocation3 + $0x130] sm:$0xf] %v1161_v3  ;;  %v3622_v16 = vld [vmem:[#allocation3 + $0x104] sm:$0xf0]  ;;  %v4123_v18 = vld [vmem:[#allocation3 + $0x108] sm:$0xf0]  ;;  %v770_v20 = vor.u32 %v769_v11, %v765_v1 }
  0xeb   : > { %1269 = vst [vmem:[#allocation3 + $0x154] sm:$0xf] %v1171_v9  ;;  %v3628_v17 = vld [vmem:[#allocation3 + $0xe8] sm:$0xf]  ;;  %v761_v19 = vrot.slane %v760_v10, 4  ;;  %v945_v22 = vrot.slane %v873_v13, 5  ;;  %v3625_v42 = vor.u32 %v4118_v15, %v3622_v16  ;;  %3107 = vmatpush.bf16.msra.mxu1 %v4204_v61 }
  0xec   : > { %3022 = vmatmul.bf16.gmra.mxu3 %v3589_v23  ;;  %3071 = vmatmul.bf16.gmra.mxu0 %v3593_v31  ;;  %v874_v21 = vld [vmem:[#allocation2 + $0x44] sm:$0x1]  ;;  %v1006_v23 = vld [vmem:[#allocation2 + $0x48] sm:$0xf]  ;;  %v1007_v25 = vld [vmem:[#allocation2 + $0x4c] sm:$0xf]  ;;  %v3629_v44 = vor.u32 %v4123_v18, %v3628_v17 }
  0xed   : > { %v948_v24 = vrot.slane %v874_v21, 5  ;;  %1022 = vst [vmem:[#allocation3 + $0x174] sm:$0xf] %v1006_v23  ;;  %v766_v26 = vsel %vm4915_vm11, %v761_v19, %v765_v1  ;;  %v771_v27 = vrot.slane %v770_v20, 4  ;;  %v946_v29 = vsel %vm4920_vm13, %v3483_v14, %v945_v22  ;;  %v1043_v31 = vld [vmem:[#allocation2 + $0x48] sm:$0xf] }
  0xee   : > { %v947_v30 = vrot.slane %v945_v22, 4  ;;  %1023 = vst [vmem:[#allocation3 + $0x198] sm:$0xf] %v1007_v25  ;;  %v1044_v35 = vld [vmem:[#allocation2 + $0x4c] sm:$0xf]  ;;  %v1173_v40 = vshrl.u32 %v1043_v31, 16 }
  0xef   : > { %851 = vst [vmem:[#allocation3 + $0x16c] sm:$0xf] %v766_v26  ;;  %v1045_v36 = vld [vmem:[#allocation2 + $0x50] sm:$0x1]  ;;  %v776_v37 = vsel %vm4915_vm11, %v771_v27, %v775_v12  ;;  %v1176_v41 = vshll.u32 %v1043_v31, 16  ;;  %v1182_v45 = vshll.u32 %v1044_v35, 16 }
  0xf0   : > { %v949_v38 = vsel %vm4920_vm13, %v947_v30, %v948_v24  ;;  %990 = vst [vmem:[#allocation3 + $0x170] sm:$0xf] %v946_v29  ;;  %v1186_v46 = vshrl.u32 %v1044_v35, 16  ;;  %v1175_v47 = vrot.slane %v1173_v40, 4  ;;  %v1192_v52 = vshll.u32 %v1045_v36, 16  ;;  %v4212_v56 = vld [vmem:[#allocation7 + $0x190] sm:$0xff] }
  0xf1   : > { %852 = vst [vmem:[#allocation3 + $0x190] sm:$0xf] %v776_v37  ;;  %v1178_v49 = vrot.slane %v1176_v41, 5  ;;  %v1184_v50 = vrot.slane %v1182_v45, 5  ;;  %v624_v53 = vld [vmem:[#allocation2 + $0x48] sm:$0xf]  ;;  %3156 = vmatpush.bf16.msra.mxu2 %v4212_v56 }
  0xf2   : > { %991 = vst [vmem:[#allocation3 + $0x194] sm:$0xf] %v949_v38  ;;  %v1188_v51 = vrot.slane %v1186_v46, 4  ;;  %v625_v55 = vld [vmem:[#allocation2 + $0x4c] sm:$0xf]  ;;  %v778_v28 = vshrl.u32 %v624_v53, 16 }
  0xf3   : > { %v1179_v54 = vor.u32 %v1178_v49, %v1175_v47  ;;  %v781_v33 = vshll.u32 %v624_v53, 16  ;;  %v1194_v57 = vrot.slane %v1192_v52, 5  ;;  %v787_v59 = vshll.u32 %v625_v55, 16  ;;  %v4228_v62 = vld [vmem:[#allocation7 + $0x210] sm:$0xff]  ;;  %v626_v4 = vld [vmem:[#allocation2 + $0x50] sm:$0x1] }
  0xf4   : > { %v1189_v43 = vor.u32 %v1188_v51, %v1184_v50  ;;  %v780_v63 = vrot.slane %v778_v28, 4  ;;  %3254 = vmatpush.bf16.msra.mxu0 %v4228_v62  ;;  %v791_v5 = vshrl.u32 %v625_v55, 16  ;;  %v797_v8 = vshll.u32 %v626_v4, 16  ;;  %v4126_v9 = vld [vmem:[#allocation3 + $0x124] sm:$0xf]  ;;  %v4219_v62 = vld [vmem:[#allocation7 + $0x1c8] sm:$0xff] }
  0xf5   : > { %v1180_v60 = vrot.slane %v1179_v54, 4  ;;  %v783_v2 = vrot.slane %v781_v33, 5  ;;  %v789_v0 = vrot.slane %v787_v59, 5  ;;  %v3650_v10 = vld [vmem:[#allocation3 + $0x144] sm:$0xf0]  ;;  %3206 = vmatpush.bf16.msra.mxu3 %v4219_v62  ;;  %s3331_s25 = scalar_lea.sflag [#allocation6], %s219_s3 }
  0xf6   : > { %v1190_v1 = vrot.slane %v1189_v43, 4  ;;  %v3656_v11 = vld [vmem:[#allocation3 + $0x128] sm:$0xf]  ;;  %v4131_v12 = vld [vmem:[#allocation3 + $0x148] sm:$0xf0]  ;;  %v793_v13 = vrot.slane %v791_v5, 4  ;;  %v3653_v37 = vor.u32 %v4126_v9, %v3650_v10 }
  0xf7   : > { %v1185_v3 = vsel %vm4915_vm11, %v1180_v60, %v1184_v50  ;;  %v784_v7 = vor.u32 %v783_v2, %v780_v63  ;;  %v875_v14 = vld [vmem:[#allocation2 + $0x48] sm:$0xe]  ;;  %v799_v16 = vrot.slane %v797_v8, 5  ;;  %v876_v17 = vld [vmem:[#allocation2 + $0x4c] sm:$0xf]  ;;  %v3657_v38 = vor.u32 %v4131_v12, %v3656_v11  ;;  %v4211_v60 = vld [vmem:[#allocation7 + $0x188] sm:$0xff] }
  0xf8   : > { %v1195_v6 = vsel %vm4915_vm11, %v1190_v1, %v1194_v57  ;;  %1270 = vst [vmem:[#allocation3 + $0x178] sm:$0xf] %v1185_v3  ;;  %v877_v18 = vld [vmem:[#allocation2 + $0x50] sm:$0x1]  ;;  %v4127_v19 = vld [vmem:[#allocation3 + $0x12c] sm:$0xf]  ;;  %v794_v23 = vor.u32 %v793_v13, %v789_v0  ;;  %3157 = vmatpush.bf16.msra.mxu2 %v4211_v60 }
  0xf9   : > { %1271 = vst [vmem:[#allocation3 + $0x19c] sm:$0xf] %v1195_v6  ;;  %v785_v15 = vrot.slane %v784_v7, 4  ;;  %v3658_v20 = vld [vmem:[#allocation3 + $0x14c] sm:$0xf0]  ;;  %v3484_v24 = vrot.slane %v875_v14, 9 }
  0xfa   : > { %2929 = vmatmul.bf16.gmra.mxu1 %v3617_v32  ;;  %2978 = vmatmul.bf16.gmra.mxu2 %v3621_v34  ;;  %v3664_v21 = vld [vmem:[#allocation3 + $0x130] sm:$0xf]  ;;  %v4132_v22 = vld [vmem:[#allocation3 + $0x150] sm:$0xf0]  ;;  %v952_v25 = vrot.slane %v876_v17, 5  ;;  %v955_v26 = vrot.slane %v877_v18, 5  ;;  %v3661_v49 = vor.u32 %v4127_v19, %v3658_v20 }
  0xfb   : > { %v1008_v27 = vld [vmem:[#allocation2 + $0x54] sm:$0xf]  ;;  %v790_v29 = vsel %vm4915_vm11, %v785_v15, %v789_v0  ;;  %v1009_v30 = vld [vmem:[#allocation2 + $0x58] sm:$0xf]  ;;  %v795_v32 = vrot.slane %v794_v23, 4  ;;  %v3665_v50 = vor.u32 %v4132_v22, %v3664_v21  ;;  %v4203_v11 = vld [vmem:[#allocation7 + $0x148] sm:$0xff] }
  0xfc   : > { %3027 = vmatmul.bf16.gmra.mxu3 %v3625_v42  ;;  %3076 = vmatmul.bf16.gmra.mxu0 %v3629_v44  ;;  %1024 = vst [vmem:[#allocation3 + $0x1bc] sm:$0xf] %v1008_v27  ;;  %v1046_v31 = vld [vmem:[#allocation2 + $0x54] sm:$0xf]  ;;  %v953_v34 = vsel %vm4920_vm13, %v3484_v24, %v952_v25  ;;  %v954_v35 = vrot.slane %v952_v25, 4  ;;  %v4227_v21 = vld [vmem:[#allocation7 + $0x208] sm:$0xff] }
  0xfd   : > { %853 = vst [vmem:[#allocation3 + $0x1b4] sm:$0xf] %v790_v29  ;;  %v1047_v36 = vld [vmem:[#allocation2 + $0x58] sm:$0xf]  ;;  %v1048_v40 = vld [vmem:[#allocation2 + $0x5c] sm:$0x1]  ;;  %v800_v44 = vsel %vm4915_vm11, %v795_v32, %v799_v16  ;;  %3108 = vmatpush.bf16.msra.mxu1 %v4203_v11  ;;  %3255 = vmatpush.bf16.msra.mxu0 %v4227_v21 }
  0xfe   : > { %992 = vst [vmem:[#allocation3 + $0x1b8] sm:$0xf] %v953_v34  ;;  %v1197_v41 = vshrl.u32 %v1046_v31, 16  ;;  %v1200_v42 = vshll.u32 %v1046_v31, 16  ;;  %v956_v45 = vsel %vm4920_vm13, %v954_v35, %v955_v26  ;;  %v1206_v46 = vshll.u32 %v1047_v36, 16  ;;  %s4452_s26 = sshra.s32 %s3349_s29, 4  ;;  %s4453_s26 = int_to_ptr.hbm [resolvable:$true] %s4452_s26 }
  0xff   : > { %1025 = vst [vmem:[#allocation3 + $0x1e0] sm:$0xf] %v1009_v30  ;;  %v1210_v47 = vshrl.u32 %v1047_v36, 16  ;;  %v1216_v55 = vshll.u32 %v1048_v40, 16  ;;  %v627_v33 = vld [vmem:[#allocation2 + $0x54] sm:$0xf]  ;;  %p4459_p3 = scmp.lt.s32.totalorder %s4453_s26, %s5373_s8 }
 0x100   : > { %854 = vst [vmem:[#allocation3 + $0x1d8] sm:$0xf] %v800_v44  ;;  %v1199_v51 = vrot.slane %v1197_v41, 4  ;;  %v1202_v52 = vrot.slane %v1200_v42, 5  ;;  %v1208_v53 = vrot.slane %v1206_v46, 5  ;;  %v802_v58 = vshrl.u32 %v627_v33, 16 }
 0x101   : > { %993 = vst [vmem:[#allocation3 + $0x1dc] sm:$0xf] %v956_v45  ;;  %v1212_v54 = vrot.slane %v1210_v47, 4  ;;  %v628_v56 = vld [vmem:[#allocation2 + $0x58] sm:$0xf]  ;;  %v1218_v57 = vrot.slane %v1216_v55, 5 }
 0x102   : > { %v1203_v28 = vor.u32 %v1202_v52, %v1199_v51  ;;  %v805_v59 = vshll.u32 %v627_v33, 16  ;;  %v811_v63 = vshll.u32 %v628_v56, 16  ;;  %v1049_v1 = vld [vmem:[#allocation2 + $0x60] sm:$0xf]  ;;  %v629_v3 = vld [vmem:[#allocation2 + $0x5c] sm:$0x1] }
 0x103   : > { %v1213_v43 = vor.u32 %v1212_v54, %v1208_v53  ;;  %v804_v4 = vrot.slane %v802_v58, 4  ;;  %v815_v7 = vshrl.u32 %v628_v56, 16  ;;  %v821_v9 = vshll.u32 %v629_v3, 16  ;;  %v878_v15 = vld [vmem:[#allocation2 + $0x54] sm:$0xe]  ;;  %v4210_v3 = vld [vmem:[#allocation7 + $0x180] sm:$0xff] }
 0x104   : > { %v1204_v61 = vrot.slane %v1203_v28, 4  ;;  %v807_v5 = vrot.slane %v805_v59, 5  ;;  %v813_v6 = vrot.slane %v811_v63, 5  ;;  %v1221_v10 = vshrl.u32 %v1049_v1, 16  ;;  %v879_v16 = vld [vmem:[#allocation2 + $0x58] sm:$0xf]  ;;  %3158 = vmatpush.bf16.msra.mxu2 %v4210_v3 }
 0x105   : > { %v1214_v2 = vrot.slane %v1213_v43, 4  ;;  %v817_v13 = vrot.slane %v815_v7, 4  ;;  %v823_v14 = vrot.slane %v821_v9, 5  ;;  %v4135_v17 = vld [vmem:[#allocation3 + $0x16c] sm:$0xf]  ;;  %v3485_v25 = vrot.slane %v878_v15, 9 }
 0x106   : > { %v1209_v0 = vsel %vm4915_vm11, %v1204_v61, %v1208_v53  ;;  %v808_v12 = vor.u32 %v807_v5, %v804_v4  ;;  %v3686_v18 = vld [vmem:[#allocation3 + $0x18c] sm:$0xf0]  ;;  %v4140_v20 = vld [vmem:[#allocation3 + $0x190] sm:$0xf0]  ;;  %v880_v24 = vld [vmem:[#allocation2 + $0x5c] sm:$0x1] }
 0x107   : > { %v1219_v8 = vsel %vm4915_vm11, %v1214_v2, %v1218_v57  ;;  %1272 = vst [vmem:[#allocation3 + $0x1c0] sm:$0xf] %v1209_v0  ;;  %v3692_v19 = vld [vmem:[#allocation3 + $0x170] sm:$0xf]  ;;  %v818_v23 = vor.u32 %v817_v13, %v813_v6  ;;  %v959_v26 = vrot.slane %v879_v16, 5  ;;  %v962_v32 = vrot.slane %v880_v24, 5 }
 0x108   : > { %1273 = vst [vmem:[#allocation3 + $0x1e4] sm:$0xf] %v1219_v8  ;;  %v809_v22 = vrot.slane %v808_v12, 4  ;;  %v4136_v27 = vld [vmem:[#allocation3 + $0x174] sm:$0xf]  ;;  %v1223_v35 = vrot.slane %v1221_v10, 4  ;;  %v3689_v53 = vor.u32 %v4135_v17, %v3686_v18  ;;  %v3693_v54 = vor.u32 %v4140_v20, %v3692_v19 }
 0x109   : > { %v3694_v29 = vld [vmem:[#allocation3 + $0x194] sm:$0xf0]  ;;  %v4141_v31 = vld [vmem:[#allocation3 + $0x198] sm:$0xf0]  ;;  %v1010_v34 = vld [vmem:[#allocation2 + $0x60] sm:$0xf]  ;;  %v960_v40 = vsel %vm4920_vm13, %v3485_v25, %v959_v26 }
 0x10a   : > { %2934 = vmatmul.bf16.gmra.mxu1 %v3653_v37  ;;  %2983 = vmatmul.bf16.gmra.mxu2 %v3657_v38  ;;  %v3700_v30 = vld [vmem:[#allocation3 + $0x178] sm:$0xf]  ;;  %v1224_v36 = vshll.u32 %v1049_v1, 16  ;;  %v814_v37 = vsel %vm4915_vm11, %v809_v22, %v813_v6  ;;  %v819_v38 = vrot.slane %v818_v23, 4  ;;  %v961_v41 = vrot.slane %v959_v26, 4  ;;  %v4218_v0 = vld [vmem:[#allocation7 + $0x1c0] sm:$0xff] }
 0x10b   : > { %1026 = vst [vmem:[#allocation3 + $0x204] sm:$0xf] %v1010_v34  ;;  %v1050_v42 = vld [vmem:[#allocation2 + $0x64] sm:$0xf]  ;;  %v1051_v44 = vld [vmem:[#allocation2 + $0x68] sm:$0x1]  ;;  %v3697_v33 = vor.u32 %v4136_v27, %v3694_v29  ;;  %v3701_v56 = vor.u32 %v4141_v31, %v3700_v30  ;;  %3207 = vmatpush.bf16.msra.mxu3 %v4218_v0 }
 0x10c   : > { %3032 = vmatmul.bf16.gmra.mxu3 %v3661_v49  ;;  %3081 = vmatmul.bf16.gmra.mxu0 %v3665_v50  ;;  %855 = vst [vmem:[#allocation3 + $0x1fc] sm:$0xf] %v814_v37  ;;  %v1226_v45 = vrot.slane %v1224_v36, 5  ;;  %v1230_v46 = vshll.u32 %v1050_v42, 16  ;;  %v824_v47 = vsel %vm4915_vm11, %v819_v38, %v823_v14  ;;  %v963_v49 = vsel %vm4920_vm13, %v961_v41, %v962_v32  ;;  %v1011_v50 = vld [vmem:[#allocation2 + $0x64] sm:$0xf] }
 0x10d   : > { %994 = vst [vmem:[#allocation3 + $0x200] sm:$0xf] %v960_v40  ;;  %v1234_v51 = vshrl.u32 %v1050_v42, 16  ;;  %v1240_v52 = vshll.u32 %v1051_v44, 16  ;;  %v1445_v57 = vld [vmem:[#allocation2 + $0x18] sm:$0xf] }
 0x10e   : > { %856 = vst [vmem:[#allocation3 + $0x220] sm:$0xf] %v824_v47  ;;  %v1227_v55 = vor.u32 %v1226_v45, %v1223_v35  ;;  %v1232_v28 = vrot.slane %v1230_v46, 5  ;;  %v1470_v59 = vshrl.u32 %v1445_v57, 16  ;;  %v1473_v62 = vshll.u32 %v1445_v57, 16  ;;  %v4202_v15 = vld [vmem:[#allocation7 + $0x140] sm:$0xff] }
 0x10f   : > { %995 = vst [vmem:[#allocation3 + $0x224] sm:$0xf] %v963_v49  ;;  %v1236_v43 = vrot.slane %v1234_v51, 4  ;;  %v1242_v61 = vrot.slane %v1240_v52, 5  ;;  %v1446_v1 = vld [vmem:[#allocation2 + $0x1c] sm:$0xf]  ;;  %3109 = vmatpush.bf16.msra.mxu1 %v4202_v15 }
 0x110   : > { %1027 = vst [vmem:[#allocation3 + $0x228] sm:$0xf] %v1011_v50  ;;  %v1228_v58 = vrot.slane %v1227_v55, 4  ;;  %v1472_v2 = vrot.slane %v1470_v59, 4  ;;  %v1277_v5 = vld [vmem:[#allocation2 + $0x10] sm:$0xf] }
 0x111   : > { %v1237_v60 = vor.u32 %v1236_v43, %v1232_v28  ;;  %v1475_v6 = vrot.slane %v1473_v62, 5  ;;  %v1276_v8 = vld [vmem:[#allocation2 + $0xc] sm:$0xe]  ;;  %v1278_v9 = vld [vmem:[#allocation2 + $0x14] sm:$0x1]  ;;  %v1479_v10 = vshll.u32 %v1446_v1, 16 }
 0x112   : > { %v1233_v63 = vsel %vm4915_vm11, %v1228_v58, %v1232_v28  ;;  %v1483_v11 = vshrl.u32 %v1446_v1, 16  ;;  %v3486_v12 = vrot.slane %v1276_v8, 9  ;;  %v1326_v13 = vrot.slane %v1277_v5, 5  ;;  %v1447_v17 = vld [vmem:[#allocation2 + $0x20] sm:$0x1]  ;;  %v4226_v27 = vld [vmem:[#allocation7 + $0x200] sm:$0xff] }
 0x113   : > { %v1238_v4 = vrot.slane %v1237_v60, 4  ;;  %1274 = vst [vmem:[#allocation3 + $0x208] sm:$0xf] %v1233_v63  ;;  %v1476_v14 = vor.u32 %v1475_v6, %v1472_v2  ;;  %v1329_v16 = vrot.slane %v1278_v9, 5  ;;  %v1413_v20 = vld [vmem:[#allocation2 + $0x18] sm:$0xf]  ;;  %3256 = vmatpush.bf16.msra.mxu0 %v4226_v27 }
 0x114   : > { %v1327_v18 = vsel %vm4920_vm13, %v3486_v12, %v1326_v13  ;;  %v1328_v19 = vrot.slane %v1326_v13, 4  ;;  %v1414_v21 = vld [vmem:[#allocation2 + $0x1c] sm:$0xf]  ;;  %v4144_v23 = vld [vmem:[#allocation3 + $0x1b4] sm:$0xf]  ;;  %v1481_v29 = vrot.slane %v1479_v10, 5 }
 0x115   : > { %v1243_v7 = vsel %vm4915_vm11, %v1238_v4, %v1242_v61  ;;  %v1477_v22 = vrot.slane %v1476_v14, 4  ;;  %v3722_v24 = vld [vmem:[#allocation3 + $0x1d4] sm:$0xf0]  ;;  %v4149_v26 = vld [vmem:[#allocation3 + $0x1d8] sm:$0xf0]  ;;  %v1485_v30 = vrot.slane %v1483_v11, 4 }
 0x116   : > { %1275 = vst [vmem:[#allocation3 + $0x22c] sm:$0xf] %v1243_v7  ;;  %v3728_v25 = vld [vmem:[#allocation3 + $0x1b8] sm:$0xf]  ;;  %v1489_v31 = vshll.u32 %v1447_v17, 16  ;;  %v1330_v37 = vsel %vm4920_vm13, %v1328_v19, %v1329_v16  ;;  %v3725_v51 = vor.u32 %v4144_v23, %v3722_v24  ;;  %s4454_s11 = scalar_lea.hbm %s4453_s26, 128 }
 0x117   : > { %1396 = vst [vmem:[#allocation3 + $0x14] sm:$0xf] %v1327_v18  ;;  %v4145_v32 = vld [vmem:[#allocation3 + $0x1bc] sm:$0xf]  ;;  %v3730_v34 = vld [vmem:[#allocation3 + $0x1dc] sm:$0xf0]  ;;  %v1482_v40 = vsel %vm4915_vm11, %v1477_v22, %v1481_v29  ;;  %v1486_v41 = vor.u32 %v1485_v30, %v1481_v29  ;;  %v3729_v52 = vor.u32 %v4149_v26, %v3728_v25  ;;  %p4455_p11 = scmp.ne.s32.totalorder %s4453_s26, %s4454_s11 }
 0x118   : > { %v3736_v35 = vld [vmem:[#allocation3 + $0x1c0] sm:$0xf]  ;;  %v4150_v36 = vld [vmem:[#allocation3 + $0x1e0] sm:$0xf0]  ;;  %1429 = vst [vmem:[#allocation3 + $0x18] sm:$0xf] %v1413_v20  ;;  %v3733_v28 = vor.u32 %v4145_v32, %v3730_v34 }
 0x119   : > { %v1693_v38 = vld [vmem:[#allocation2 + $0x18] sm:$0xe]  ;;  %1397 = vst [vmem:[#allocation3 + $0x38] sm:$0xf] %v1330_v37  ;;  %v1491_v42 = vrot.slane %v1489_v31, 5  ;;  %v1487_v49 = vrot.slane %v1486_v41, 4  ;;  %p4456_p0 = pnand %p4455_p11, %p4662_p6 }
 0x11a   : > { %2939 = vmatmul.bf16.gmra.mxu1 %v3689_v53  ;;  %2988 = vmatmul.bf16.gmra.mxu2 %v3693_v54  ;;  %v1694_v44 = vld [vmem:[#allocation2 + $0x1c] sm:$0xf]  ;;  %v3494_v45 = vrot.slane %v1693_v38, 9  ;;  %1430 = vst [vmem:[#allocation3 + $0x3c] sm:$0xf] %v1414_v21  ;;  %s4458_s30 = scalar_lea.hbm %s5373_s8, 512 }
 0x11b   : > { %v1695_v46 = vld [vmem:[#allocation2 + $0x20] sm:$0x1]  ;;  %v1743_v47 = vrot.slane %v1694_v44, 5  ;;  %1677 = vst [vmem:[#allocation3 + $0x1c] sm:$0xf] %v1482_v40  ;;  %p4457_p2 = pneg %p4456_p0  ;;  %p4460_p5 = scmp.lt.s32.totalorder %s4458_s30, %s4454_s11 }
 0x11c   : > { %3037 = vmatmul.bf16.gmra.mxu3 %v3697_v33  ;;  %3086 = vmatmul.bf16.gmra.mxu0 %v3701_v56  ;;  %v1746_v50 = vrot.slane %v1695_v46, 5  ;;  %v3737_v33 = vor.u32 %v4150_v36, %v3736_v35  ;;  %v1492_v56 = vsel %vm4915_vm11, %v1487_v49, %v1491_v42  ;;  %v1448_v43 = vld [vmem:[#allocation2 + $0x24] sm:$0xf]  ;;  %v1449_v57 = vld [vmem:[#allocation2 + $0x28] sm:$0xf] }
 0x11d   : > { %v1744_v53 = vsel %vm4920_vm13, %v3494_v45, %v1743_v47  ;;  %v1745_v54 = vrot.slane %v1743_v47, 4  ;;  %1678 = vst [vmem:[#allocation3 + $0x40] sm:$0xf] %v1492_v56  ;;  %v1494_v60 = vshrl.u32 %v1448_v43, 16  ;;  %v1497_v61 = vshll.u32 %v1448_v43, 16  ;;  %p4461_p7 = por %p4460_p5, %p4459_p3 }
 0x11e   : > { %1813 = vst [vmem:[#allocation3 + $0x20] sm:$0xf] %v1744_v53  ;;  %v1503_v62 = vshll.u32 %v1449_v57, 16  ;;  %v1507_v63 = vshrl.u32 %v1449_v57, 16  ;;  %v1280_v3 = vld [vmem:[#allocation2 + $0x1c] sm:$0xf] }
 0x11f   : > { %v1747_v59 = vsel %vm4920_vm13, %v1745_v54, %v1746_v50  ;;  %v1496_v1 = vrot.slane %v1494_v60, 4  ;;  %v1499_v2 = vrot.slane %v1497_v61, 5  ;;  %v1450_v4 = vld [vmem:[#allocation2 + $0x2c] sm:$0x1]  ;;  %v5066_v0 = vld [vmem:[%s5333_s2] ss:$0 sm:$0xff]  ;;  %p4462_p8 = pnand %p4461_p7, %p4457_p2 }
 0x120   : > { %1814 = vst [vmem:[#allocation3 + $0x44] sm:$0xf] %v1747_v59  ;;  %v1333_v5 = vrot.slane %v1280_v3, 5  ;;  %v1505_v7 = vrot.slane %v1503_v62, 5  ;;  %v1279_v9 = vld [vmem:[#allocation2 + $0x18] sm:$0xe] }
 0x121   : > { %v1500_v6 = vor.u32 %v1499_v2, %v1496_v1  ;;  %v1281_v10 = vld [vmem:[#allocation2 + $0x20] sm:$0x1]  ;;  %v1509_v11 = vrot.slane %v1507_v63, 4  ;;  %v1513_v12 = vshll.u32 %v1450_v4, 16  ;;  %v3487_v15 = vrot.slane %v1279_v9, 9 }
 0x122   : > { %v1335_v16 = vrot.slane %v1333_v5, 4  ;;  %v1336_v17 = vrot.slane %v1281_v10, 5  ;;  %v1696_v23 = vld [vmem:[#allocation2 + $0x24] sm:$0xe]  ;;  %v1416_v29 = vld [vmem:[#allocation2 + $0x28] sm:$0xf] }
 0x123   : > { %v1501_v20 = vrot.slane %v1500_v6, 4  ;;  %v1510_v21 = vor.u32 %v1509_v11, %v1505_v7  ;;  %v1515_v22 = vrot.slane %v1513_v12, 5  ;;  %v1334_v25 = vsel %vm4920_vm13, %v3487_v15, %v1333_v5  ;;  %v1415_v27 = vld [vmem:[#allocation2 + $0x24] sm:$0xf]  ;;  %v4153_v30 = vld [vmem:[#allocation3 + $0x1fc] sm:$0xf] }
 0x124   : > { %v1337_v26 = vsel %vm4920_vm13, %v1335_v16, %v1336_v17  ;;  %v3758_v31 = vld [vmem:[#allocation3 + $0x21c] sm:$0xf0]  ;;  %v4158_v34 = vld [vmem:[#allocation3 + $0x220] sm:$0xf0]  ;;  %1398 = vst [vmem:[#allocation3 + $0x5c] sm:$0xf] %v1334_v25 }
 0x125   : > { %v3764_v32 = vld [vmem:[#allocation3 + $0x200] sm:$0xf]  ;;  %v1511_v35 = vrot.slane %v1510_v21, 4  ;;  %v1697_v36 = vld [vmem:[#allocation2 + $0x28] sm:$0xf]  ;;  %v1506_v40 = vsel %vm4915_vm11, %v1501_v20, %v1505_v7  ;;  %v3495_v42 = vrot.slane %v1696_v23, 9 }
 0x126   : > { %v4154_v37 = vld [vmem:[#allocation3 + $0x204] sm:$0xf]  ;;  %v3766_v38 = vld [vmem:[#allocation3 + $0x224] sm:$0xf0]  ;;  %1399 = vst [vmem:[#allocation3 + $0x80] sm:$0xf] %v1337_v26 }
 0x127   : > { %v5055_v55 = vpop.f32.mrf.mxu1  ;;  %v1698_v41 = vld [vmem:[#allocation2 + $0x2c] sm:$0x1]  ;;  %v1750_v44 = vrot.slane %v1697_v36, 5  ;;  %v3772_v45 = vld [vmem:[#allocation3 + $0x208] sm:$0xf]  ;;  %v1516_v46 = vsel %vm4915_vm11, %v1511_v35, %v1515_v22  ;;  %v3769_v59 = vor.u32 %v4154_v37, %v3766_v38 }
 0x128   : > { %1431 = vst [vmem:[#allocation3 + $0x60] sm:$0xf] %v1415_v27  ;;  %v1753_v47 = vrot.slane %v1698_v41, 5  ;;  %v4159_v49 = vld [vmem:[#allocation3 + $0x228] sm:$0xf0] }
 0x129   : > { %v5059_v58 = vpop.f32.mrf.mxu0  ;;  %1432 = vst [vmem:[#allocation3 + $0x84] sm:$0xf] %v1416_v29  ;;  %v1751_v50 = vsel %vm4920_vm13, %v3495_v42, %v1750_v44  ;;  %v3773_v60 = vor.u32 %v4159_v49, %v3772_v45  ;;  %v1451_v61 = vld [vmem:[#allocation2 + $0x30] sm:$0xf]  ;;  %v1452_v62 = vld [vmem:[#allocation2 + $0x34] sm:$0xf] }
 0x12a   : > { %2944 = vmatmul.bf16.gmra.mxu1 %v3725_v51  ;;  %2993 = vmatmul.bf16.gmra.mxu2 %v3729_v52  ;;  %v1752_v51 = vrot.slane %v1750_v44, 4  ;;  %1679 = vst [vmem:[#allocation3 + $0x64] sm:$0xf] %v1506_v40  ;;  %v1518_v1 = vshrl.u32 %v1451_v61, 16  ;;  %v1521_v2 = vshll.u32 %v1451_v61, 16  ;;  %v1527_v3 = vshll.u32 %v1452_v62, 16 }
 0x12b   : > { %1680 = vst [vmem:[#allocation3 + $0x88] sm:$0xf] %v1516_v46  ;;  %v1283_v6 = vld [vmem:[#allocation2 + $0x28] sm:$0xf]  ;;  %v1531_v7 = vshrl.u32 %v1452_v62, 16  ;;  %v2867_v61 = vadd.f32 %v5066_v0, %v5059_v58 }
 0x12c   : > { %3042 = vmatmul.bf16.gmra.mxu3 %v3733_v28  ;;  %3091 = vmatmul.bf16.gmra.mxu0 %v3737_v33  ;;  %v3761_v28 = vor.u32 %v4153_v30, %v3758_v31  ;;  %v3765_v33 = vor.u32 %v4158_v34, %v3764_v32  ;;  %v1754_v56 = vsel %vm4920_vm13, %v1752_v51, %v1753_v47  ;;  %v1520_v4 = vrot.slane %v1518_v1, 4  ;;  %v1453_v9 = vld [vmem:[#allocation2 + $0x38] sm:$0x1]  ;;  %v1282_v12 = vld [vmem:[#allocation2 + $0x24] sm:$0xe] }
 0x12d   : > { %v2886_v8 = vpop.f32.mrf.mxu2  ;;  %1815 = vst [vmem:[#allocation3 + $0x68] sm:$0xf] %v1751_v50  ;;  %v1523_v5 = vrot.slane %v1521_v2, 5  ;;  %v1529_v15 = vrot.slane %v1527_v3, 5  ;;  %v3488_v20 = vrot.slane %v1282_v12, 9  ;;  %v1533_v27 = vrot.slane %v1531_v7, 4 }
 0x12e   : > { %v5069_v13 = vadd.f32 %v5066_v0, %v2886_v8  ;;  %1816 = vst [vmem:[#allocation3 + $0x8c] sm:$0xf] %v1754_v56  ;;  %v1340_v8 = vrot.slane %v1283_v6, 5  ;;  %v1700_v29 = vld [vmem:[#allocation2 + $0x34] sm:$0xf]  ;;  %v1537_v35 = vshll.u32 %v1453_v9, 16 }
 0x12f   : > { %v2896_v14 = vpop.f32.mrf.mxu3  ;;  %v5074_v19 = vpop.f32.mrf.mxu1  ;;  %v1524_v10 = vor.u32 %v1523_v5, %v1520_v4  ;;  %v1417_v32 = vld [vmem:[#allocation2 + $0x30] sm:$0xf]  ;;  %v1418_v34 = vld [vmem:[#allocation2 + $0x34] sm:$0xf]  ;;  %v4092_v36 = vld [vmem:[#allocation3 + $0x14] sm:$0xf]  ;;  %v1534_v44 = vor.u32 %v1533_v27, %v1529_v15 }
 0x130   : > { %v5072_v18 = vadd.f32 %v5066_v0, %v2896_v14  ;;  %v1284_v14 = vld [vmem:[#allocation2 + $0x2c] sm:$0x1]  ;;  %v1342_v21 = vrot.slane %v1340_v8, 4  ;;  %v1341_v31 = vsel %vm4920_vm13, %v3488_v20, %v1340_v8  ;;  %v3522_v37 = vld [vmem:[#allocation3 + $0x34] sm:$0xf0]  ;;  %v1539_v50 = vrot.slane %v1537_v35, 5 }
 0x131   : > { %v5076_v24 = vpop.f32.mrf.mxu0  ;;  %v1343_v25 = vrot.slane %v1284_v14, 5  ;;  %v1525_v26 = vrot.slane %v1524_v10, 4  ;;  %v3528_v38 = vld [vmem:[#allocation3 + $0x18] sm:$0xf]  ;;  %v4097_v40 = vld [vmem:[#allocation3 + $0x38] sm:$0xf0]  ;;  %v3525_v4 = vor.u32 %v4092_v36, %v3522_v37 }
 0x132   : > { %1400 = vst [vmem:[#allocation3 + $0xa4] sm:$0xf] %v1341_v31  ;;  %v1699_v45 = vld [vmem:[#allocation2 + $0x30] sm:$0xe]  ;;  %v1701_v46 = vld [vmem:[#allocation2 + $0x38] sm:$0x1]  ;;  %v3529_v5 = vor.u32 %v4097_v40, %v3528_v38  ;;  %v2869_v38 = vadd.f32 %v5066_v0, %v5076_v24 }
 0x133   : > { %v1344_v41 = vsel %vm4920_vm13, %v1342_v21, %v1343_v25  ;;  %v1530_v42 = vsel %vm4915_vm11, %v1525_v26, %v1529_v15  ;;  %v4093_v47 = vld [vmem:[#allocation3 + $0x1c] sm:$0xf]  ;;  %v3536_v49 = vld [vmem:[#allocation3 + $0x20] sm:$0xf]  ;;  %v3496_v51 = vrot.slane %v1699_v45, 9 }
 0x134   : > { %1401 = vst [vmem:[#allocation3 + $0xc8] sm:$0xf] %v1344_v41  ;;  %v4098_v56 = vld [vmem:[#allocation3 + $0x40] sm:$0xf0]  ;;  %v1286_v26 = vld [vmem:[#allocation2 + $0x34] sm:$0xf] }
 0x135   : > { %v2888_v52 = vpop.f32.mrf.mxu2  ;;  %1433 = vst [vmem:[#allocation3 + $0xa8] sm:$0xf] %v1417_v32  ;;  %v3537_v9 = vor.u32 %v4098_v56, %v3536_v49  ;;  %v1454_v10 = vld [vmem:[#allocation2 + $0x3c] sm:$0xf]  ;;  %v1456_v31 = vld [vmem:[#allocation2 + $0x44] sm:$0x1] }
 0x136   : > { %v5089_v53 = vadd.f32 %v5066_v0, %v2888_v52  ;;  %v1757_v52 = vrot.slane %v1700_v29, 5  ;;  %1434 = vst [vmem:[#allocation3 + $0xcc] sm:$0xf] %v1418_v34  ;;  %v1542_v15 = vshrl.u32 %v1454_v10, 16  ;;  %v1347_v29 = vrot.slane %v1286_v26, 5 }
 0x137   : > { %v2898_v54 = vpop.f32.mrf.mxu3  ;;  %v5096_v57 = vpop.f32.mrf.mxu1  ;;  %1681 = vst [vmem:[#allocation3 + $0xac] sm:$0xf] %v1530_v42  ;;  %v1285_v35 = vld [vmem:[#allocation2 + $0x30] sm:$0xe]  ;;  %v1287_v36 = vld [vmem:[#allocation2 + $0x38] sm:$0x1] }
 0x138   : > { %v5094_v43 = vadd.f32 %v5066_v0, %v2898_v54  ;;  %v1760_v54 = vrot.slane %v1701_v46, 5  ;;  %v1544_v21 = vrot.slane %v1542_v15, 4  ;;  %v3489_v42 = vrot.slane %v1285_v35, 9  ;;  %v1419_v56 = vld [vmem:[#allocation2 + $0x3c] sm:$0xf] }
 0x139   : > { %v5098_v63 = vpop.f32.mrf.mxu0  ;;  %v1350_v46 = vrot.slane %v1287_v36, 5  ;;  %v4101_v24 = vld [vmem:[#allocation3 + $0x5c] sm:$0xf]  ;;  %1435 = vst [vmem:[#allocation3 + $0xf0] sm:$0xf] %v1419_v56 }
 0x13a   : > { %2949 = vmatmul.bf16.gmra.mxu1 %v3761_v28  ;;  %2998 = vmatmul.bf16.gmra.mxu2 %v3765_v33  ;;  %v3530_v28 = vld [vmem:[#allocation3 + $0x3c] sm:$0xf0]  ;;  %v1535_v33 = vrot.slane %v1534_v44, 4  ;;  %v1349_v44 = vrot.slane %v1347_v29, 4 }
 0x13b   : > { %v3533_v58 = vor.u32 %v4093_v47, %v3530_v28 }
 0x13c   : > { %3047 = vmatmul.bf16.gmra.mxu3 %v3769_v59  ;;  %3096 = vmatmul.bf16.gmra.mxu0 %v3773_v60  ;;  %v1758_v59 = vsel %vm4920_vm13, %v3496_v51, %v1757_v52  ;;  %v1759_v60 = vrot.slane %v1757_v52, 4  ;;  %v1540_v1 = vsel %vm4915_vm11, %v1535_v33, %v1539_v50  ;;  %v1561_v50 = vshll.u32 %v1456_v31, 16  ;;  %v1703_v51 = vld [vmem:[#allocation2 + $0x40] sm:$0xf] }
 0x13d   : > { %v2891_v11 = vpop.f32.mrf.mxu2  ;;  %1682 = vst [vmem:[#allocation3 + $0xd0] sm:$0xf] %v1540_v1  ;;  %v1348_v33 = vsel %vm4920_vm13, %v3489_v42, %v1347_v29  ;;  %v4106_v1 = vld [vmem:[#allocation3 + $0x80] sm:$0xf0]  ;;  %v1458_v42 = vld [vmem:[#allocation2 + $0x4c] sm:$0xf] }
 0x13e   : > { %v5101_v16 = vadd.f32 %v5066_v0, %v2891_v11  ;;  %v1761_v6 = vsel %vm4920_vm13, %v1759_v60, %v1760_v54  ;;  %1817 = vst [vmem:[#allocation3 + $0xb0] sm:$0xf] %v1758_v59  ;;  %v1455_v11 = vld [vmem:[#allocation2 + $0x40] sm:$0xf]  ;;  %v1702_v60 = vld [vmem:[#allocation2 + $0x3c] sm:$0xe] }
 0x13f   : > { %v2901_v17 = vpop.f32.mrf.mxu3  ;;  %v5106_v23 = vpop.f32.mrf.mxu1  ;;  %1818 = vst [vmem:[#allocation3 + $0xd4] sm:$0xf] %v1761_v6  ;;  %v1551_v20 = vshll.u32 %v1455_v11, 16  ;;  %v1555_v27 = vshrl.u32 %v1455_v11, 16  ;;  %v1420_v59 = vld [vmem:[#allocation2 + $0x40] sm:$0xf] }
 0x140   : > { %v5104_v22 = vadd.f32 %v5066_v0, %v2901_v17  ;;  %v1545_v17 = vshll.u32 %v1454_v10, 16  ;;  %1402 = vst [vmem:[#allocation3 + $0xec] sm:$0xf] %v1348_v33  ;;  %v1563_v6 = vrot.slane %v1561_v50, 5  ;;  %v3497_v10 = vrot.slane %v1702_v60, 9 }
 0x141   : > { %v5108_v30 = vpop.f32.mrf.mxu0  ;;  %v1553_v37 = vrot.slane %v1551_v20, 5  ;;  %v1557_v49 = vrot.slane %v1555_v27, 4  ;;  %v1764_v11 = vrot.slane %v1703_v51, 5  ;;  %1436 = vst [vmem:[#allocation3 + $0x114] sm:$0xf] %v1420_v59  ;;  %v2872_v27 = vadd.f32 %v5066_v0, %v5098_v63 }
 0x142   : > { %v1547_v25 = vrot.slane %v1545_v17, 5  ;;  %v3572_v17 = vld [vmem:[#allocation3 + $0x68] sm:$0xf]  ;;  %v1579_v33 = vshrl.u32 %v1458_v42, 16  ;;  %v1459_v59 = vld [vmem:[#allocation2 + $0x50] sm:$0x1] }
 0x143   : > { %v1766_v26 = vrot.slane %v1764_v11, 4 }
 0x144   : > { %v1548_v32 = vor.u32 %v1547_v25, %v1544_v21  ;;  %v4107_v21 = vld [vmem:[#allocation3 + $0x88] sm:$0xf0]  ;;  %v1765_v25 = vsel %vm4920_vm13, %v3497_v10, %v1764_v11  ;;  %v1581_v10 = vrot.slane %v1579_v33, 4  ;;  %v1585_v11 = vshll.u32 %v1459_v59, 16 }
 0x145   : > { %v2893_v62 = vpop.f32.mrf.mxu2  ;;  %1819 = vst [vmem:[#allocation3 + $0xf8] sm:$0xf] %v1765_v25  ;;  %v2877_v33 = vadd.f32 %v5066_v0, %v5055_v55 }
 0x146   : > { %v5123_v2 = vadd.f32 %v5066_v0, %v2893_v62  ;;  %v1549_v47 = vrot.slane %v1548_v32, 4  ;;  %v3564_v62 = vld [vmem:[#allocation3 + $0x60] sm:$0xf] }
 0x147   : > { %v2903_v3 = vpop.f32.mrf.mxu3  ;;  %v2915_v8 = vpop.f32.mrf.mxu1  ;;  %v3565_v35 = vor.u32 %v4106_v1, %v3564_v62  ;;  %v1290_v62 = vld [vmem:[#allocation2 + $0x44] sm:$0x1] }
 0x148   : > { %v5128_v7 = vadd.f32 %v5066_v0, %v2903_v3  ;;  %v2916_v12 = vadd.f32 %v2915_v8, %v2867_v61  ;;  %v3558_v61 = vld [vmem:[#allocation3 + $0x7c] sm:$0xf0]  ;;  %v1351_v3 = vsel %vm4920_vm13, %v1349_v44, %v1350_v46  ;;  %v1704_v8 = vld [vmem:[#allocation2 + $0x44] sm:$0x1] }
 0x149   : > { %v3062_v14 = vpop.f32.mrf.mxu0  ;;  %1403 = vst [vmem:[#allocation3 + $0x110] sm:$0xf] %v1351_v3  ;;  %v2874_v3 = vadd.f32 %v5066_v0, %v5108_v30  ;;  %v4110_v30 = vld [vmem:[#allocation3 + $0xa4] sm:$0xf] }
 0x14a   : > { %3110 = vmatmul.bf16.vlgmr.msra.gmra.mxu1 %v3525_v4  ;;  %3159 = vmatmul.bf16.vlgmr.msra.gmra.mxu2 %v3529_v5  ;;  %v1554_v4 = vsel %vm4915_vm11, %v1549_v47, %v1553_v37  ;;  %v1558_v5 = vor.u32 %v1557_v49, %v1553_v37  ;;  %v1575_v49 = vshll.u32 %v1458_v42, 16 }
 0x14b   : > { %1683 = vst [vmem:[#allocation3 + $0xf4] sm:$0xf] %v1554_v4 }
 0x14c   : > { %3208 = vmatmul.bf16.vlgmr.msra.gmra.mxu3 %v3533_v58  ;;  %3257 = vmatmul.bf16.vlgmr.msra.gmra.mxu0 %v3537_v9  ;;  %v4102_v58 = vld [vmem:[#allocation3 + $0x64] sm:$0xf]  ;;  %v3566_v9 = vld [vmem:[#allocation3 + $0x84] sm:$0xf0]  ;;  %v1559_v20 = vrot.slane %v1558_v5, 4  ;;  %v1577_v1 = vrot.slane %v1575_v49, 5 }
 0x14d   : > { %v2964_v34 = vpop.f32.mrf.mxu2 }
 0x14e   : > { %v2965_v40 = vadd.f32 %v2964_v34, %v2916_v12  ;;  %v1767_v12 = vrot.slane %v1704_v8, 5  ;;  %v1564_v31 = vsel %vm4915_vm11, %v1559_v20, %v1563_v6  ;;  %v3561_v34 = vor.u32 %v4101_v24, %v3558_v61  ;;  %v1288_v61 = vld [vmem:[#allocation2 + $0x3c] sm:$0xe] }
 0x14f   : > { %v3013_v41 = vpop.f32.mrf.mxu3  ;;  %v2917_v45 = vpop.f32.mrf.mxu1  ;;  %1684 = vst [vmem:[#allocation3 + $0x118] sm:$0xf] %v1564_v31  ;;  %v3490_v6 = vrot.slane %v1288_v61, 9  ;;  %v3594_v31 = vld [vmem:[#allocation3 + $0xc4] sm:$0xf0] }
 0x150   : > { %v3014_v52 = vadd.f32 %v3013_v41, %v2965_v40  ;;  %v2918_v54 = vadd.f32 %v2917_v45, %v2869_v38  ;;  %v1768_v36 = vsel %vm4920_vm13, %v1766_v26, %v1767_v12  ;;  %v3569_v38 = vor.u32 %v4102_v58, %v3566_v9  ;;  %v1457_v41 = vld [vmem:[#allocation2 + $0x48] sm:$0xf]  ;;  %v1706_v12 = vld [vmem:[#allocation2 + $0x4c] sm:$0xf] }
 0x151   : > { %v3064_v28 = vpop.f32.mrf.mxu0  ;;  %v3573_v40 = vor.u32 %v4107_v21, %v3572_v17  ;;  %1820 = vst [vmem:[#allocation3 + $0x11c] sm:$0xf] %v1768_v36  ;;  %v1566_v46 = vshrl.u32 %v1457_v41, 16  ;;  %v1569_v47 = vshll.u32 %v1457_v41, 16  ;;  %v1357_v58 = vrot.slane %v1290_v62, 5 }
 0x152   : > { %v5138_v15 = vadd.f32 %v3062_v14, %v3014_v52  ;;  %v1421_v26 = vld [vmem:[#allocation2 + $0x48] sm:$0xf]  ;;  %v1582_v36 = vor.u32 %v1581_v10, %v1577_v1 }
 0x153   : > { %v1568_v50 = vrot.slane %v1566_v46, 4  ;;  %v1571_v51 = vrot.slane %v1569_v47, 5  ;;  %v3602_v41 = vld [vmem:[#allocation3 + $0xcc] sm:$0xf0]  ;;  %1437 = vst [vmem:[#allocation3 + $0x138] sm:$0xf] %v1421_v26 }
 0x154   : > { %v3608_v47 = vld [vmem:[#allocation3 + $0xb0] sm:$0xf]  ;;  %v1583_v49 = vrot.slane %v1582_v36, 4 }
 0x155   : > { %v2966_v29 = vpop.f32.mrf.mxu2  ;;  %v1572_v60 = vor.u32 %v1571_v51, %v1568_v50  ;;  %v4116_v50 = vld [vmem:[#allocation3 + $0xd0] sm:$0xf0] }
 0x156   : > { %v2967_v32 = vadd.f32 %v2966_v29, %v2918_v54  ;;  %v1289_v54 = vld [vmem:[#allocation2 + $0x40] sm:$0xf]  ;;  %v1705_v29 = vld [vmem:[#allocation2 + $0x48] sm:$0xe] }
 0x157   : > { %v3015_v14 = vpop.f32.mrf.mxu3  ;;  %v2920_v37 = vpop.f32.mrf.mxu1  ;;  %v1354_v56 = vrot.slane %v1289_v54, 5  ;;  %v1573_v9 = vrot.slane %v1572_v60, 4  ;;  %v3498_v42 = vrot.slane %v1705_v29, 9 }
 0x158   : > { %v3016_v63 = vadd.f32 %v3015_v14, %v2967_v32  ;;  %v2921_v44 = vadd.f32 %v2920_v37, %v2872_v27  ;;  %v1422_v27 = vld [vmem:[#allocation2 + $0x4c] sm:$0xf]  ;;  %v3600_v32 = vld [vmem:[#allocation3 + $0xa8] sm:$0xf]  ;;  %v4115_v14 = vld [vmem:[#allocation3 + $0xc8] sm:$0xf0] }
 0x159   : > { %v3067_v45 = vpop.f32.mrf.mxu0  ;;  %v1356_v8 = vrot.slane %v1354_v56, 4  ;;  %v1355_v25 = vsel %vm4920_vm13, %v3490_v6, %v1354_v56  ;;  %v1587_v37 = vrot.slane %v1585_v11, 5  ;;  %1438 = vst [vmem:[#allocation3 + $0x15c] sm:$0xf] %v1422_v27  ;;  %v3601_v61 = vor.u32 %v4115_v14, %v3600_v32  ;;  %v1461_v6 = vld [vmem:[#allocation2 + $0x58] sm:$0xf] }
 0x15a   : > { %3115 = vmatmul.bf16.gmra.mxu1 %v3561_v34  ;;  %3164 = vmatmul.bf16.gmra.mxu2 %v3565_v35  ;;  %v5148_v52 = vadd.f32 %v3064_v28, %v3016_v63  ;;  %1404 = vst [vmem:[#allocation3 + $0x134] sm:$0xf] %v1355_v25  ;;  %v1578_v35 = vsel %vm4915_vm11, %v1573_v9, %v1577_v1  ;;  %v1771_v63 = vrot.slane %v1706_v12, 5  ;;  %v1599_v10 = vshll.u32 %v1461_v6, 16  ;;  %v1462_v27 = vld [vmem:[#allocation2 + $0x5c] sm:$0x1] }
 0x15b   : > { %v1358_v34 = vsel %vm4920_vm13, %v1356_v8, %v1357_v58  ;;  %v1588_v59 = vsel %vm4915_vm11, %v1583_v49, %v1587_v37  ;;  %1685 = vst [vmem:[#allocation3 + $0x13c] sm:$0xf] %v1578_v35  ;;  %v1603_v25 = vshrl.u32 %v1461_v6, 16  ;;  %v1293_v32 = vld [vmem:[#allocation2 + $0x50] sm:$0x1] }
 0x15c   : > { %3213 = vmatmul.bf16.gmra.mxu3 %v3569_v38  ;;  %3262 = vmatmul.bf16.gmra.mxu0 %v3573_v40  ;;  %v1707_v38 = vld [vmem:[#allocation2 + $0x50] sm:$0x1]  ;;  %v4111_v40 = vld [vmem:[#allocation3 + $0xac] sm:$0xf]  ;;  %1405 = vst [vmem:[#allocation3 + $0x158] sm:$0xf] %v1358_v34  ;;  %v1772_v51 = vsel %vm4920_vm13, %v3498_v42, %v1771_v63  ;;  %v2879_v34 = vadd.f32 %v5066_v0, %v5074_v19 }
 0x15d   : > { %v2969_v24 = vpop.f32.mrf.mxu2  ;;  %v1773_v54 = vrot.slane %v1771_v63, 4  ;;  %1686 = vst [vmem:[#allocation3 + $0x160] sm:$0xf] %v1588_v59  ;;  %v1601_v14 = vrot.slane %v1599_v10, 5  ;;  %v1605_v42 = vrot.slane %v1603_v25, 4  ;;  %v1609_v63 = vshll.u32 %v1462_v27, 16 }
 0x15e   : > { %v2970_v4 = vadd.f32 %v2969_v24, %v2921_v44  ;;  %v1774_v44 = vrot.slane %v1707_v38, 5  ;;  %v3597_v24 = vor.u32 %v4110_v30, %v3594_v31  ;;  %1821 = vst [vmem:[#allocation3 + $0x140] sm:$0xf] %v1772_v51  ;;  %v1291_v31 = vld [vmem:[#allocation2 + $0x48] sm:$0xe]  ;;  %v2882_v25 = vadd.f32 %v5066_v0, %v5096_v57 }
 0x15f   : > { %v3018_v5 = vpop.f32.mrf.mxu3  ;;  %v2922_v28 = vpop.f32.mrf.mxu1  ;;  %v3491_v37 = vrot.slane %v1291_v31, 9  ;;  %v4119_v19 = vld [vmem:[#allocation3 + $0xec] sm:$0xf]  ;;  %v3630_v59 = vld [vmem:[#allocation3 + $0x10c] sm:$0xf0] }
 0x160   : > { %v3019_v17 = vadd.f32 %v3018_v5, %v2970_v4  ;;  %v2923_v20 = vadd.f32 %v2922_v28, %v2874_v3  ;;  %v1775_v62 = vsel %vm4920_vm13, %v1773_v54, %v1774_v44  ;;  %v3605_v3 = vor.u32 %v4111_v40, %v3602_v41  ;;  %v1460_v5 = vld [vmem:[#allocation2 + $0x54] sm:$0xf]  ;;  %v1709_v44 = vld [vmem:[#allocation2 + $0x58] sm:$0xf] }
 0x161   : > { %v3069_v21 = vpop.f32.mrf.mxu0  ;;  %v3609_v4 = vor.u32 %v4116_v50, %v3608_v47  ;;  %1822 = vst [vmem:[#allocation3 + $0x164] sm:$0xf] %v1775_v62  ;;  %v1590_v58 = vshrl.u32 %v1460_v5, 16  ;;  %v1593_v9 = vshll.u32 %v1460_v5, 16  ;;  %v1364_v40 = vrot.slane %v1293_v32, 5 }
 0x162   : > { %v5158_v46 = vadd.f32 %v3067_v45, %v3019_v17  ;;  %v1423_v54 = vld [vmem:[#allocation2 + $0x54] sm:$0xf]  ;;  %v1606_v62 = vor.u32 %v1605_v42, %v1601_v14  ;;  %v3638_v5 = vld [vmem:[#allocation3 + $0x114] sm:$0xf0] }
 0x163   : > { %v1592_v11 = vrot.slane %v1590_v58, 4  ;;  %v1595_v12 = vrot.slane %v1593_v9, 5  ;;  %v3644_v9 = vld [vmem:[#allocation3 + $0xf8] sm:$0xf]  ;;  %1439 = vst [vmem:[#allocation3 + $0x180] sm:$0xf] %v1423_v54 }
 0x164   : > { %v1607_v10 = vrot.slane %v1606_v62, 4 }
 0x165   : > { %v2971_v56 = vpop.f32.mrf.mxu2  ;;  %v1596_v29 = vor.u32 %v1595_v12, %v1592_v11  ;;  %v4125_v11 = vld [vmem:[#allocation3 + $0x118] sm:$0xf0] }
 0x166   : > { %v2972_v60 = vadd.f32 %v2971_v56, %v2923_v20  ;;  %v1292_v20 = vld [vmem:[#allocation2 + $0x4c] sm:$0xf]  ;;  %v1708_v56 = vld [vmem:[#allocation2 + $0x54] sm:$0xe] }
 0x167   : > { %v3020_v45 = vpop.f32.mrf.mxu3  ;;  %v2925_v1 = vpop.f32.mrf.mxu1  ;;  %v1361_v26 = vrot.slane %v1292_v20, 5  ;;  %v1597_v41 = vrot.slane %v1596_v29, 4  ;;  %v3499_v6 = vrot.slane %v1708_v56, 9 }
 0x168   : > { %v3021_v55 = vadd.f32 %v3020_v45, %v2972_v60  ;;  %v2926_v8 = vadd.f32 %v2925_v1, %v2877_v33  ;;  %v1424_v33 = vld [vmem:[#allocation2 + $0x58] sm:$0xf]  ;;  %v3636_v60 = vld [vmem:[#allocation3 + $0xf0] sm:$0xf]  ;;  %v4124_v45 = vld [vmem:[#allocation3 + $0x110] sm:$0xf0] }
 0x169   : > { %v3072_v28 = vpop.f32.mrf.mxu0  ;;  %v1363_v38 = vrot.slane %v1361_v26, 4  ;;  %v1362_v51 = vsel %vm4920_vm13, %v3491_v37, %v1361_v26  ;;  %v1611_v1 = vrot.slane %v1609_v63, 5  ;;  %1440 = vst [vmem:[#allocation3 + $0x1a4] sm:$0xf] %v1424_v33  ;;  %v3637_v31 = vor.u32 %v4124_v45, %v3636_v60  ;;  %v1464_v37 = vld [vmem:[#allocation2 + $0x64] sm:$0xf] }
 0x16a   : > { %3120 = vmatmul.bf16.gmra.mxu1 %v3597_v24  ;;  %3169 = vmatmul.bf16.gmra.mxu2 %v3601_v61  ;;  %v5168_v17 = vadd.f32 %v3069_v21, %v3021_v55  ;;  %1406 = vst [vmem:[#allocation3 + $0x17c] sm:$0xf] %v1362_v51  ;;  %v1602_v61 = vsel %vm4915_vm11, %v1597_v41, %v1601_v14  ;;  %v1778_v55 = vrot.slane %v1709_v44, 5  ;;  %v1623_v42 = vshll.u32 %v1464_v37, 16  ;;  %v1465_v33 = vld [vmem:[#allocation2 + $0x68] sm:$0x1] }
 0x16b   : > { %v1365_v24 = vsel %vm4920_vm13, %v1363_v38, %v1364_v40  ;;  %v1612_v27 = vsel %vm4915_vm11, %v1607_v10, %v1611_v1  ;;  %1687 = vst [vmem:[#allocation3 + $0x184] sm:$0xf] %v1602_v61  ;;  %v1627_v51 = vshrl.u32 %v1464_v37, 16  ;;  %v1296_v60 = vld [vmem:[#allocation2 + $0x5c] sm:$0x1] }
 0x16c   : > { %3218 = vmatmul.bf16.gmra.mxu3 %v3605_v3  ;;  %3267 = vmatmul.bf16.gmra.mxu0 %v3609_v4  ;;  %v1710_v3 = vld [vmem:[#allocation2 + $0x5c] sm:$0x1]  ;;  %v4120_v4 = vld [vmem:[#allocation3 + $0xf4] sm:$0xf]  ;;  %1407 = vst [vmem:[#allocation3 + $0x1a0] sm:$0xf] %v1365_v24  ;;  %v1779_v12 = vsel %vm4920_vm13, %v3499_v6, %v1778_v55  ;;  %v2884_v24 = vadd.f32 %v5066_v0, %v5106_v23 }
 0x16d   : > { %v2974_v30 = vpop.f32.mrf.mxu2  ;;  %v1780_v20 = vrot.slane %v1778_v55, 4  ;;  %1688 = vst [vmem:[#allocation3 + $0x1a8] sm:$0xf] %v1612_v27  ;;  %v1625_v45 = vrot.slane %v1623_v42, 5  ;;  %v1629_v6 = vrot.slane %v1627_v51, 4  ;;  %v1633_v55 = vshll.u32 %v1465_v33, 16 }
 0x16e   : > { %v2975_v35 = vadd.f32 %v2974_v30, %v2926_v8  ;;  %v1781_v8 = vrot.slane %v1710_v3, 5  ;;  %v3633_v30 = vor.u32 %v4119_v19, %v3630_v59  ;;  %1823 = vst [vmem:[#allocation3 + $0x188] sm:$0xf] %v1779_v12  ;;  %v1294_v59 = vld [vmem:[#allocation2 + $0x54] sm:$0xe] }
 0x16f   : > { %v3023_v36 = vpop.f32.mrf.mxu3  ;;  %v2927_v21 = vpop.f32.mrf.mxu1  ;;  %v3492_v1 = vrot.slane %v1294_v59, 9  ;;  %v4128_v0 = vld [vmem:[#allocation3 + $0x134] sm:$0xf]  ;;  %v3666_v23 = vld [vmem:[#allocation3 + $0x154] sm:$0xf0] }
 0x170   : > { %v3024_v47 = vadd.f32 %v3023_v36, %v2975_v35  ;;  %v2928_v49 = vadd.f32 %v2927_v21, %v2879_v34  ;;  %v1782_v32 = vsel %vm4920_vm13, %v1780_v20, %v1781_v8  ;;  %v3641_v34 = vor.u32 %v4120_v4, %v3638_v5  ;;  %v1463_v36 = vld [vmem:[#allocation2 + $0x60] sm:$0xf]  ;;  %v1712_v8 = vld [vmem:[#allocation2 + $0x64] sm:$0xf]  ;;  %v3672_v27 = vld [vmem:[#allocation3 + $0x138] sm:$0xf] }
 0x171   : > { %v3074_v50 = vpop.f32.mrf.mxu0  ;;  %v3645_v35 = vor.u32 %v4125_v11, %v3644_v9  ;;  %1824 = vst [vmem:[#allocation3 + $0x1ac] sm:$0xf] %v1782_v32  ;;  %v1614_v40 = vshrl.u32 %v1463_v36, 16  ;;  %v1617_v41 = vshll.u32 %v1463_v36, 16  ;;  %v1371_v4 = vrot.slane %v1296_v60, 5 }
 0x172   : > { %v5178_v58 = vadd.f32 %v3072_v28, %v3024_v47  ;;  %v1425_v20 = vld [vmem:[#allocation2 + $0x60] sm:$0xf]  ;;  %v1635_v32 = vrot.slane %v1633_v55, 5  ;;  %v1785_v37 = vrot.slane %v1712_v8, 5  ;;  %v4134_v42 = vld [vmem:[#allocation3 + $0x160] sm:$0xf0] }
 0x173   : > { %v1616_v63 = vrot.slane %v1614_v40, 4  ;;  %v1619_v44 = vrot.slane %v1617_v41, 5  ;;  %v3680_v40 = vld [vmem:[#allocation3 + $0x140] sm:$0xf]  ;;  %1441 = vst [vmem:[#allocation3 + $0x1c8] sm:$0xf] %v1425_v20 }
 0x174   : > { %v1468_v20 = vld [vmem:[#allocation2 + $0x74] sm:$0x1] }
 0x175   : > { %v2976_v26 = vpop.f32.mrf.mxu2  ;;  %v1620_v56 = vor.u32 %v1619_v44, %v1616_v63  ;;  %v1787_v44 = vrot.slane %v1785_v37, 4 }
 0x176   : > { %v2977_v29 = vadd.f32 %v2976_v26, %v2928_v49  ;;  %v1295_v49 = vld [vmem:[#allocation2 + $0x58] sm:$0xf]  ;;  %v1711_v26 = vld [vmem:[#allocation2 + $0x60] sm:$0xe] }
 0x177   : > { %v3025_v28 = vpop.f32.mrf.mxu3  ;;  %v2930_v14 = vpop.f32.mrf.mxu1  ;;  %v1368_v54 = vrot.slane %v1295_v49, 5  ;;  %v1621_v5 = vrot.slane %v1620_v56, 4  ;;  %v3500_v36 = vrot.slane %v1711_v26, 9  ;;  %v3669_v56 = vor.u32 %v4128_v0, %v3666_v23  ;;  %v1299_v0 = vld [vmem:[#allocation2 + $0x68] sm:$0x1] }
 0x178   : > { %v3026_v57 = vadd.f32 %v3025_v28, %v2977_v29  ;;  %v2931_v38 = vadd.f32 %v2930_v14, %v2882_v25  ;;  %v1426_v25 = vld [vmem:[#allocation2 + $0x64] sm:$0xf]  ;;  %v4133_v29 = vld [vmem:[#allocation3 + $0x158] sm:$0xf0]  ;;  %v1713_v14 = vld [vmem:[#allocation2 + $0x68] sm:$0x1] }
 0x179   : > { %v3077_v21 = vpop.f32.mrf.mxu0  ;;  %v1370_v3 = vrot.slane %v1368_v54, 4  ;;  %v1369_v12 = vsel %vm4920_vm13, %v3492_v1, %v1368_v54  ;;  %1442 = vst [vmem:[#allocation3 + $0x1ec] sm:$0xf] %v1426_v25  ;;  %v1786_v63 = vsel %vm4920_vm13, %v3500_v36, %v1785_v37 }
 0x17a   : > { %3125 = vmatmul.bf16.gmra.mxu1 %v3633_v30  ;;  %3174 = vmatmul.bf16.gmra.mxu2 %v3637_v31  ;;  %v5188_v47 = vadd.f32 %v3074_v50, %v3026_v57  ;;  %1408 = vst [vmem:[#allocation3 + $0x1c4] sm:$0xf] %v1369_v12  ;;  %v1626_v30 = vsel %vm4915_vm11, %v1621_v5, %v1625_v45  ;;  %v1788_v57 = vrot.slane %v1713_v14, 5 }
 0x17b   : > { %v1372_v28 = vsel %vm4920_vm13, %v1370_v3, %v1371_v4  ;;  %v1630_v31 = vor.u32 %v1629_v6, %v1625_v45  ;;  %1689 = vst [vmem:[#allocation3 + $0x1cc] sm:$0xf] %v1626_v30  ;;  %v3681_v45 = vor.u32 %v4134_v42, %v3680_v40  ;;  %v1428_v42 = vld [vmem:[#allocation2 + $0x70] sm:$0xf] }
 0x17c   : > { %3223 = vmatmul.bf16.gmra.mxu3 %v3641_v34  ;;  %3272 = vmatmul.bf16.gmra.mxu0 %v3645_v35  ;;  %v4129_v34 = vld [vmem:[#allocation3 + $0x13c] sm:$0xf]  ;;  %v3674_v35 = vld [vmem:[#allocation3 + $0x15c] sm:$0xf0]  ;;  %1409 = vst [vmem:[#allocation3 + $0x1e8] sm:$0xf] %v1372_v28 }
 0x17d   : > { %v2979_v19 = vpop.f32.mrf.mxu2  ;;  %v1631_v41 = vrot.slane %v1630_v31, 4  ;;  %v3677_v60 = vor.u32 %v4129_v34, %v3674_v35  ;;  %1825 = vst [vmem:[#allocation3 + $0x1d0] sm:$0xf] %v1786_v63  ;;  %v1657_v34 = vshll.u32 %v1468_v20, 16  ;;  %v1715_v35 = vld [vmem:[#allocation2 + $0x70] sm:$0xf] }
 0x17e   : > { %v2980_v61 = vadd.f32 %v2979_v19, %v2931_v38  ;;  %v3673_v19 = vor.u32 %v4133_v29, %v3672_v27  ;;  %v1714_v63 = vld [vmem:[#allocation2 + $0x6c] sm:$0xe]  ;;  %1444 = vst [vmem:[#allocation3 + $0x234] sm:$0xf] %v1428_v42 }
 0x17f   : > { %v3028_v62 = vpop.f32.mrf.mxu3  ;;  %v2932_v50 = vpop.f32.mrf.mxu1  ;;  %v1636_v51 = vsel %vm4915_vm11, %v1631_v41, %v1635_v32  ;;  %v1378_v32 = vrot.slane %v1299_v0, 5  ;;  %v1427_v41 = vld [vmem:[#allocation2 + $0x6c] sm:$0xf] }
 0x180   : > { %v3029_v9 = vadd.f32 %v3028_v62, %v2980_v61  ;;  %v2933_v10 = vadd.f32 %v2932_v50, %v2884_v24  ;;  %1690 = vst [vmem:[#allocation3 + $0x1f0] sm:$0xf] %v1636_v51  ;;  %v1466_v24 = vld [vmem:[#allocation2 + $0x6c] sm:$0xf]  ;;  %v1467_v61 = vld [vmem:[#allocation2 + $0x70] sm:$0xf] }
 0x181   : > { %v3079_v11 = vpop.f32.mrf.mxu0  ;;  %v1638_v50 = vshrl.u32 %v1466_v24, 16  ;;  %v1641_v4 = vshll.u32 %v1466_v24, 16  ;;  %v1647_v5 = vshll.u32 %v1467_v61, 16  ;;  %v3708_v51 = vld [vmem:[#allocation3 + $0x180] sm:$0xf]  ;;  %v1792_v24 = vrot.slane %v1715_v35, 5 }
 0x182   : > { %v5198_v38 = vadd.f32 %v3077_v21, %v3029_v9  ;;  %v1789_v21 = vsel %vm4920_vm13, %v1787_v44, %v1788_v57  ;;  %v1298_v9 = vld [vmem:[#allocation2 + $0x64] sm:$0xf]  ;;  %v4137_v44 = vld [vmem:[#allocation3 + $0x17c] sm:$0xf]  ;;  %1443 = vst [vmem:[#allocation3 + $0x210] sm:$0xf] %v1427_v41 }
 0x183   : > { %1826 = vst [vmem:[#allocation3 + $0x1f4] sm:$0xf] %v1789_v21  ;;  %v1640_v6 = vrot.slane %v1638_v50, 4  ;;  %v1643_v55 = vrot.slane %v1641_v4, 5  ;;  %v1375_v12 = vrot.slane %v1298_v9, 5  ;;  %v1649_v23 = vrot.slane %v1647_v5, 5 }
 0x184   : > { %v1716_v21 = vld [vmem:[#allocation2 + $0x74] sm:$0x1]  ;;  %v4143_v4 = vld [vmem:[#allocation3 + $0x1a8] sm:$0xf0]  ;;  %v3738_v35 = vld [vmem:[#allocation3 + $0x1e4] sm:$0xf0] }
 0x185   : > { %v2981_v49 = vpop.f32.mrf.mxu2  ;;  %v1644_v25 = vor.u32 %v1643_v55, %v1640_v6  ;;  %v1377_v30 = vrot.slane %v1375_v12, 4  ;;  %v1794_v6 = vrot.slane %v1792_v24, 4 }
 0x186   : > { %v2982_v54 = vadd.f32 %v2981_v49, %v2933_v10  ;;  %v1651_v10 = vshrl.u32 %v1467_v61, 16  ;;  %v3702_v49 = vld [vmem:[#allocation3 + $0x19c] sm:$0xf0]  ;;  %v1795_v61 = vrot.slane %v1716_v21, 5 }
 0x187   : > { %v3030_v33 = vpop.f32.mrf.mxu3  ;;  %v2935_v59 = vpop.f32.mrf.mxu1  ;;  %v1645_v14 = vrot.slane %v1644_v25, 4  ;;  %v3705_v20 = vor.u32 %v4137_v44, %v3702_v49  ;;  %v3746_v41 = vld [vmem:[#allocation3 + $0x1ec] sm:$0xf0] }
 0x188   : > { %v3031_v62 = vadd.f32 %v3030_v33, %v2982_v54  ;;  %v2936_v1 = vadd.f32 %v2935_v59, %v5069_v13  ;;  %v1297_v13 = vld [vmem:[#allocation2 + $0x60] sm:$0xe]  ;;  %v4142_v54 = vld [vmem:[#allocation3 + $0x1a0] sm:$0xf0]  ;;  %v1379_v33 = vsel %vm4920_vm13, %v1377_v30, %v1378_v32 }
 0x189   : > { %v3082_v3 = vpop.f32.mrf.mxu0  ;;  %v3493_v28 = vrot.slane %v1297_v13, 9  ;;  %v4138_v59 = vld [vmem:[#allocation3 + $0x184] sm:$0xf]  ;;  %1411 = vst [vmem:[#allocation3 + $0x230] sm:$0xf] %v1379_v33  ;;  %v3709_v25 = vor.u32 %v4142_v54, %v3708_v51 }
 0x18a   : > { %3130 = vmatmul.bf16.gmra.mxu1 %v3669_v56  ;;  %3179 = vmatmul.bf16.gmra.mxu2 %v3673_v19  ;;  %v5207_v8 = vadd.f32 %v3079_v11, %v3031_v62  ;;  %v1653_v11 = vrot.slane %v1651_v10, 4  ;;  %v1650_v56 = vsel %vm4915_vm11, %v1645_v14, %v1649_v23  ;;  %v4152_v42 = vld [vmem:[#allocation3 + $0x1f0] sm:$0xf0] }
 0x18b   : > { %v1376_v40 = vsel %vm4920_vm13, %v3493_v28, %v1375_v12  ;;  %1691 = vst [vmem:[#allocation3 + $0x214] sm:$0xf] %v1650_v56 }
 0x18c   : > { %3228 = vmatmul.bf16.gmra.mxu3 %v3677_v60  ;;  %3277 = vmatmul.bf16.gmra.mxu0 %v3681_v45  ;;  %1410 = vst [vmem:[#allocation3 + $0x20c] sm:$0xf] %v1376_v40  ;;  %v1654_v19 = vor.u32 %v1653_v11, %v1649_v23  ;;  %v3710_v60 = vld [vmem:[#allocation3 + $0x1a4] sm:$0xf0]  ;;  %v3501_v45 = vrot.slane %v1714_v63, 9 }
 0x18d   : > { %v2984_v26 = vpop.f32.mrf.mxu2  ;;  %v3713_v13 = vor.u32 %v4138_v59, %v3710_v60  ;;  %v4147_v40 = vld [vmem:[#allocation3 + $0x1cc] sm:$0xf] }
 0x18e   : > { %v2985_v27 = vadd.f32 %v2984_v26, %v2936_v1  ;;  %v3716_v1 = vld [vmem:[#allocation3 + $0x188] sm:$0xf]  ;;  %v1655_v50 = vrot.slane %v1654_v19, 4  ;;  %v1793_v5 = vsel %vm4920_vm13, %v3501_v45, %v1792_v24  ;;  %v3749_v56 = vor.u32 %v4147_v40, %v3746_v41 }
 0x18f   : > { %v3033_v29 = vpop.f32.mrf.mxu3  ;;  %v2937_v31 = vpop.f32.mrf.mxu1  ;;  %v3717_v0 = vor.u32 %v4143_v4, %v3716_v1  ;;  %1827 = vst [vmem:[#allocation3 + $0x218] sm:$0xf] %v1793_v5 }
 0x190   : > { %v3034_v36 = vadd.f32 %v3033_v29, %v2985_v27  ;;  %v2938_v37 = vadd.f32 %v2937_v31, %v5089_v53  ;;  %v1659_v53 = vrot.slane %v1657_v34, 5  ;;  %v4146_v34 = vld [vmem:[#allocation3 + $0x1c4] sm:$0xf] }
 0x191   : > { %v3084_v57 = vpop.f32.mrf.mxu0  ;;  %v3741_v51 = vor.u32 %v4146_v34, %v3738_v35 }
 0x192   : > { %v5216_v62 = vadd.f32 %v3082_v3, %v3034_v36  ;;  %v1660_v9 = vsel %vm4915_vm11, %v1655_v50, %v1659_v53  ;;  %v1796_v3 = vsel %vm4920_vm13, %v1794_v6, %v1795_v61  ;;  %v3774_v6 = vld [vmem:[#allocation3 + $0x22c] sm:$0xf0] }
 0x193   : > { %1692 = vst [vmem:[#allocation3 + $0x238] sm:$0xf] %v1660_v9  ;;  %v4155_v5 = vld [vmem:[#allocation3 + $0x20c] sm:$0xf]  ;;  %v4160_v9 = vld [vmem:[#allocation3 + $0x230] sm:$0xf0] }
 0x194   : > { %1828 = vst [vmem:[#allocation3 + $0x23c] sm:$0xf] %v1796_v3 }
 0x195   : > { %v2986_v55 = vpop.f32.mrf.mxu2 }
 0x196   : > { %v2987_v10 = vadd.f32 %v2986_v55, %v2938_v37  ;;  %v4151_v37 = vld [vmem:[#allocation3 + $0x1e8] sm:$0xf0] }
 0x197   : > { %v3035_v12 = vpop.f32.mrf.mxu3  ;;  %v2940_v26 = vpop.f32.mrf.mxu1 }
 0x198   : > { %v3036_v23 = vadd.f32 %v3035_v12, %v2987_v10  ;;  %v2941_v27 = vadd.f32 %v2940_v26, %v5101_v16  ;;  %v3744_v16 = vld [vmem:[#allocation3 + $0x1c8] sm:$0xf]  ;;  %v4156_v10 = vld [vmem:[#allocation3 + $0x214] sm:$0xf] }
 0x199   : > { %v3087_v29 = vpop.f32.mrf.mxu0  ;;  %v3745_v54 = vor.u32 %v4151_v37, %v3744_v16 }
 0x19a   : > { %3135 = vmatmul.bf16.gmra.mxu1 %v3705_v20  ;;  %3184 = vmatmul.bf16.gmra.mxu2 %v3709_v25  ;;  %v5225_v39 = vadd.f32 %v3084_v57, %v3036_v23  ;;  %v3752_v57 = vld [vmem:[#allocation3 + $0x1d0] sm:$0xf]  ;;  %v3782_v12 = vld [vmem:[#allocation3 + $0x234] sm:$0xf0] }
 0x19b   : > { %v3753_v19 = vor.u32 %v4152_v42, %v3752_v57  ;;  %v3788_v20 = vld [vmem:[#allocation3 + $0x218] sm:$0xf]  ;;  %v4161_v25 = vld [vmem:[#allocation3 + $0x238] sm:$0xf0] }
 0x19c   : > { %3233 = vmatmul.bf16.gmra.mxu3 %v3713_v13  ;;  %3282 = vmatmul.bf16.gmra.mxu0 %v3717_v0  ;;  %v3777_v0 = vor.u32 %v4155_v5, %v3774_v6 }
 0x19d   : > { %v2989_v28 = vpop.f32.mrf.mxu2 }
 0x19e   : > { %v2990_v30 = vadd.f32 %v2989_v28, %v2941_v27  ;;  %v3789_v28 = vor.u32 %v4161_v25, %v3788_v20 }
 0x19f   : > { %v3038_v31 = vpop.f32.mrf.mxu3  ;;  %v2942_v48 = vpop.f32.mrf.mxu1 }
 0x1a0   : > { %v3039_v32 = vadd.f32 %v3038_v31, %v2990_v30  ;;  %v2943_v14 = vadd.f32 %v2942_v48, %v5123_v2 }
 0x1a1   : > { %v3089_v11 = vpop.f32.mrf.mxu0 }
 0x1a2   : > { %v5228_v36 = vadd.f32 %v3087_v29, %v3039_v32  ;;  %v3785_v29 = vor.u32 %v4156_v10, %v3782_v12 }
 0x1a5   : > { %v2991_v63 = vpop.f32.mrf.mxu2 }
 0x1a6   : > { %v2992_v44 = vadd.f32 %v2991_v63, %v2943_v14 }
 0x1a7   : > { %v3040_v49 = vpop.f32.mrf.mxu3  ;;  %v2945_v33 = vpop.f32.mrf.mxu1 }
 0x1a8   : > { %v3041_v2 = vadd.f32 %v3040_v49, %v2992_v44  ;;  %v2946_v53 = vadd.f32 %v2945_v33, %v5072_v18  ;;  %v3780_v18 = vld [vmem:[#allocation3 + $0x210] sm:$0xf] }
 0x1a9   : > { %v3092_v21 = vpop.f32.mrf.mxu0  ;;  %v3781_v23 = vor.u32 %v4160_v9, %v3780_v18 }
 0x1aa   : > { %3140 = vmatmul.bf16.gmra.mxu1 %v3741_v51  ;;  %3189 = vmatmul.bf16.gmra.mxu2 %v3745_v54  ;;  %v5231_v59 = vadd.f32 %v3089_v11, %v3041_v2 }
 0x1ac   : > { %3238 = vmatmul.bf16.gmra.mxu3 %v3749_v56  ;;  %3287 = vmatmul.bf16.gmra.mxu0 %v3753_v19 }
 0x1ad   : > { %v2994_v60 = vpop.f32.mrf.mxu2 }
 0x1ae   : > { %v2995_v45 = vadd.f32 %v2994_v60, %v2946_v53 }
 0x1af   : > { %v3043_v24 = vpop.f32.mrf.mxu3  ;;  %v2947_v61 = vpop.f32.mrf.mxu1 }
 0x1b0   : > { %v3044_v1 = vadd.f32 %v3043_v24, %v2995_v45  ;;  %v2948_v50 = vadd.f32 %v2947_v61, %v5094_v43 }
 0x1b1   : > { %v3094_v4 = vpop.f32.mrf.mxu0 }
 0x1b2   : > { %v5234_v55 = vadd.f32 %v3092_v21, %v3044_v1 }
 0x1b5   : > { %v2996_v3 = vpop.f32.mrf.mxu2 }
 0x1b6   : > { %v2997_v26 = vadd.f32 %v2996_v3, %v2948_v50 }
 0x1b7   : > { %v3045_v13 = vpop.f32.mrf.mxu3  ;;  %v2950_v27 = vpop.f32.mrf.mxu1 }
 0x1b8   : > { %v3046_v43 = vadd.f32 %v3045_v13, %v2997_v26  ;;  %v2951_v30 = vadd.f32 %v2950_v27, %v5104_v22 }
 0x1b9   : > { %v3097_v31 = vpop.f32.mrf.mxu0 }
 0x1ba   : > { %3145 = vmatmul.bf16.gmra.mxu1 %v3777_v0  ;;  %3194 = vmatmul.bf16.gmra.mxu2 %v3781_v23  ;;  %v5237_v48 = vadd.f32 %v3094_v4, %v3046_v43 }
 0x1bc   : > { %3243 = vmatmul.bf16.gmra.mxu3 %v3785_v29  ;;  %3292 = vmatmul.bf16.gmra.mxu0 %v3789_v28 }
 0x1bd   : > { %v2999_v32 = vpop.f32.mrf.mxu2 }
 0x1be   : > { %v3000_v14 = vadd.f32 %v2999_v32, %v2951_v30 }
 0x1bf   : > { %v3048_v11 = vpop.f32.mrf.mxu3  ;;  %v2952_v34 = vpop.f32.mrf.mxu1 }
 0x1c0   : > { %v3049_v35 = vadd.f32 %v3048_v11, %v3000_v14  ;;  %v2953_v16 = vadd.f32 %v2952_v34, %v5128_v7 }
 0x1c1   : > { %v3099_v37 = vpop.f32.mrf.mxu0 }
 0x1c2   : > { %v5240_v40 = vadd.f32 %v3097_v31, %v3049_v35 }
 0x1c5   : > { %v3001_v41 = vpop.f32.mrf.mxu2 }
 0x1c6   : > { %v3002_v57 = vadd.f32 %v3001_v41, %v2953_v16 }
 0x1c7   : > { %v3050_v22 = vpop.f32.mrf.mxu3  ;;  %v3111_v42 = vpop.f32.mrf.mxu1 }
 0x1c8   : > { %v3051_v63 = vadd.f32 %v3050_v22, %v3002_v57  ;;  %v3112_v51 = vadd.f32 %v3111_v42, %v5138_v15 }
 0x1c9   : > { %v3258_v44 = vpop.f32.mrf.mxu0 }
 0x1ca   : > { %v5242_v49 = vadd.f32 %v3099_v37, %v3051_v63 }
 0x1cd   : > { %v3160_v54 = vpop.f32.mrf.mxu2 }
 0x1ce   : > { %v3161_v33 = vadd.f32 %v3160_v54, %v3112_v51 }
 0x1cf   : > { %v3209_v56 = vpop.f32.mrf.mxu3  ;;  %v3113_v19 = vpop.f32.mrf.mxu1 }
 0x1d0   : > { %v3210_v2 = vadd.f32 %v3209_v56, %v3161_v33  ;;  %v3114_v60 = vadd.f32 %v3113_v19, %v5148_v52 }
 0x1d1   : > { %v3260_v7 = vpop.f32.mrf.mxu0 }
 0x1d2   : > { %v3259_v53 = vadd.f32 %v3258_v44, %v3210_v2 }
 0x1d4   : > { %v3298_v21 = vmax.f32 %v3259_v53, 0.0 }
 0x1d5   : > { %v3162_v45 = vpop.f32.mrf.mxu2 }
 0x1d6   : > { %3314 = vst [vmem:[%s4879_s10] sm:$0xff] %v3298_v21  ;;  %v3163_v24 = vadd.f32 %v3162_v45, %v3114_v60 }
 0x1d7   : > { %v3211_v61 = vpop.f32.mrf.mxu3  ;;  %v3116_v1 = vpop.f32.mrf.mxu1 }
 0x1d8   : > { %v3212_v50 = vadd.f32 %v3211_v61, %v3163_v24  ;;  %v3117_v6 = vadd.f32 %v3116_v1, %v5158_v46 }
 0x1d9   : > { %v3263_v4 = vpop.f32.mrf.mxu0 }
 0x1da   : > { %v3261_v15 = vadd.f32 %v3260_v7, %v3212_v50 }
 0x1dc   : > { %v3299_v5 = vmax.f32 %v3261_v15, 0.0 }
 0x1dd   : > { %v3165_v18 = vpop.f32.mrf.mxu2 }
 0x1de   : > { %3315 = vst [vmem:[%s4879_s10 + $0x8] sm:$0xff] %v3299_v5  ;;  %v3166_v9 = vadd.f32 %v3165_v18, %v3117_v6 }
 0x1df   : > { %v3214_v10 = vpop.f32.mrf.mxu3  ;;  %v3118_v12 = vpop.f32.mrf.mxu1 }
 0x1e0   : > { %v3215_v20 = vadd.f32 %v3214_v10, %v3166_v9  ;;  %v3119_v26 = vadd.f32 %v3118_v12, %v5168_v17 }
 0x1e1   : > { %v3265_v52 = vpop.f32.mrf.mxu0 }
 0x1e2   : > { %v3264_v25 = vadd.f32 %v3263_v4, %v3215_v20 }
 0x1e4   : > { %v3300_v3 = vmax.f32 %v3264_v25, 0.0 }
 0x1e5   : > { %v3167_v13 = vpop.f32.mrf.mxu2 }
 0x1e6   : > { %3316 = vst [vmem:[%s4879_s10 + $0x10] sm:$0xff] %v3300_v3  ;;  %v3168_v0 = vadd.f32 %v3167_v13, %v3119_v26 }
 0x1e7   : > { %v3216_v23 = vpop.f32.mrf.mxu3  ;;  %v3121_v27 = vpop.f32.mrf.mxu1 }
 0x1e8   : > { %v3217_v29 = vadd.f32 %v3216_v23, %v3168_v0  ;;  %v3122_v30 = vadd.f32 %v3121_v27, %v5178_v58 }
 0x1e9   : > { %v3268_v46 = vpop.f32.mrf.mxu0 }
 0x1ea   : > { %v3266_v28 = vadd.f32 %v3265_v52, %v3217_v29 }
 0x1ec   : > { %v3301_v43 = vmax.f32 %v3266_v28, 0.0 }
 0x1ed   : > { %v3170_v31 = vpop.f32.mrf.mxu2 }
 0x1ee   : > { %3317 = vst [vmem:[%s4879_s10 + $0x18] sm:$0xff] %v3301_v43  ;;  %v3171_v32 = vadd.f32 %v3170_v31, %v3122_v30 }
 0x1ef   : > { %v3219_v14 = vpop.f32.mrf.mxu3  ;;  %v3123_v11 = vpop.f32.mrf.mxu1 }
 0x1f0   : > { %v3220_v34 = vadd.f32 %v3219_v14, %v3171_v32  ;;  %v3124_v37 = vadd.f32 %v3123_v11, %v5188_v47 }
 0x1f1   : > { %v3270_v17 = vpop.f32.mrf.mxu0 }
 0x1f2   : > { %v3269_v35 = vadd.f32 %v3268_v46, %v3220_v34 }
 0x1f4   : > { %v3302_v16 = vmax.f32 %v3269_v35, 0.0 }
 0x1f5   : > { %v3172_v41 = vpop.f32.mrf.mxu2 }
 0x1f6   : > { %3318 = vst [vmem:[%s4879_s10 + $0x20] sm:$0xff] %v3302_v16  ;;  %v3173_v57 = vadd.f32 %v3172_v41, %v3124_v37 }
 0x1f7   : > { %v3221_v22 = vpop.f32.mrf.mxu3  ;;  %v3126_v42 = vpop.f32.mrf.mxu1 }
 0x1f8   : > { %v3222_v63 = vadd.f32 %v3221_v22, %v3173_v57  ;;  %v3127_v54 = vadd.f32 %v3126_v42, %v5198_v38 }
 0x1f9   : > { %v3273_v58 = vpop.f32.mrf.mxu0 }
 0x1fa   : > { %v3271_v44 = vadd.f32 %v3270_v17, %v3222_v63 }
 0x1fc   : > { %v3303_v51 = vmax.f32 %v3271_v44, 0.0 }
 0x1fd   : > { %v3175_v33 = vpop.f32.mrf.mxu2 }
 0x1fe   : > { %3319 = vst [vmem:[%s4879_s10 + $0x28] sm:$0xff] %v3303_v51  ;;  %v3176_v56 = vadd.f32 %v3175_v33, %v3127_v54 }
 0x1ff   : > { %v3224_v19 = vpop.f32.mrf.mxu3  ;;  %v3128_v2 = vpop.f32.mrf.mxu1 }
 0x200   : > { %v3225_v7 = vadd.f32 %v3224_v19, %v3176_v56  ;;  %v3129_v60 = vadd.f32 %v3128_v2, %v5207_v8 }
 0x201   : > { %v3275_v47 = vpop.f32.mrf.mxu0 }
 0x202   : > { %v3274_v53 = vadd.f32 %v3273_v58, %v3225_v7 }
 0x204   : > { %v3304_v21 = vmax.f32 %v3274_v53, 0.0 }
 0x205   : > { %v3177_v45 = vpop.f32.mrf.mxu2 }
 0x206   : > { %3320 = vst [vmem:[%s4879_s10 + $0x30] sm:$0xff] %v3304_v21  ;;  %v3178_v24 = vadd.f32 %v3177_v45, %v3129_v60 }
 0x207   : > { %v3226_v61 = vpop.f32.mrf.mxu3  ;;  %v3131_v1 = vpop.f32.mrf.mxu1 }
 0x208   : > { %v3227_v50 = vadd.f32 %v3226_v61, %v3178_v24  ;;  %v3132_v5 = vadd.f32 %v3131_v1, %v5216_v62 }
 0x209   : > { %v3278_v38 = vpop.f32.mrf.mxu0 }
 0x20a   : > { %v3276_v4 = vadd.f32 %v3275_v47, %v3227_v50 }
 0x20c   : > { %v3305_v15 = vmax.f32 %v3276_v4, 0.0 }
 0x20d   : > { %v3180_v6 = vpop.f32.mrf.mxu2 }
 0x20e   : > { %3321 = vst [vmem:[%s4879_s10 + $0x38] sm:$0xff] %v3305_v15  ;;  %v3181_v18 = vadd.f32 %v3180_v6, %v3132_v5 }
 0x20f   : > { %v3229_v9 = vpop.f32.mrf.mxu3  ;;  %v3133_v10 = vpop.f32.mrf.mxu1 }
 0x210   : > { %v3230_v12 = vadd.f32 %v3229_v9, %v3181_v18  ;;  %v3134_v25 = vadd.f32 %v3133_v10, %v5225_v39 }
 0x211   : > { %v3280_v8 = vpop.f32.mrf.mxu0 }
 0x212   : > { %v3279_v20 = vadd.f32 %v3278_v38, %v3230_v12 }
 0x214   : > { %v3306_v52 = vmax.f32 %v3279_v20, 0.0 }
 0x215   : > { %v3182_v3 = vpop.f32.mrf.mxu2 }
 0x216   : > { %3322 = vst [vmem:[%s4879_s10 + $0x40] sm:$0xff] %v3306_v52  ;;  %v3183_v26 = vadd.f32 %v3182_v3, %v3134_v25 }
 0x217   : > { %v3231_v13 = vpop.f32.mrf.mxu3  ;;  %v3136_v0 = vpop.f32.mrf.mxu1 }
 0x218   : > { %v3232_v23 = vadd.f32 %v3231_v13, %v3183_v26  ;;  %v3137_v46 = vadd.f32 %v3136_v0, %v5228_v36 }
 0x219   : > { %v3283_v62 = vpop.f32.mrf.mxu0 }
 0x21a   : > { %v3281_v27 = vadd.f32 %v3280_v8, %v3232_v23 }
 0x21c   : > { %v3307_v29 = vmax.f32 %v3281_v27, 0.0 }
 0x21d   : > { %v3185_v28 = vpop.f32.mrf.mxu2 }
 0x21e   : > { %3323 = vst [vmem:[%s4879_s10 + $0x48] sm:$0xff] %v3307_v29  ;;  %v3186_v43 = vadd.f32 %v3185_v28, %v3137_v46 }
 0x21f   : > { %v3234_v30 = vpop.f32.mrf.mxu3  ;;  %v3138_v31 = vpop.f32.mrf.mxu1 }
 0x220   : > { %v3235_v32 = vadd.f32 %v3234_v30, %v3186_v43  ;;  %v3139_v34 = vadd.f32 %v3138_v31, %v5231_v59 }
 0x221   : > { %v3285_v39 = vpop.f32.mrf.mxu0 }
 0x222   : > { %v3284_v14 = vadd.f32 %v3283_v62, %v3235_v32 }
 0x224   : > { %v3308_v11 = vmax.f32 %v3284_v14, 0.0 }
 0x225   : > { %v3187_v17 = vpop.f32.mrf.mxu2 }
 0x226   : > { %3324 = vst [vmem:[%s4879_s10 + $0x50] sm:$0xff] %v3308_v11  ;;  %v3188_v35 = vadd.f32 %v3187_v17, %v3139_v34 }
 0x227   : > { %v3236_v16 = vpop.f32.mrf.mxu3  ;;  %v3141_v37 = vpop.f32.mrf.mxu1 }
 0x228   : > { %v3237_v41 = vadd.f32 %v3236_v16, %v3188_v35  ;;  %v3142_v42 = vadd.f32 %v3141_v37, %v5234_v55 }
 0x229   : > { %v3288_v57 = vpop.f32.mrf.mxu0 }
 0x22a   : > { %v3286_v36 = vadd.f32 %v3285_v39, %v3237_v41 }
 0x22c   : > { %v3309_v22 = vmax.f32 %v3286_v36, 0.0 }
 0x22d   : > { %v3190_v63 = vpop.f32.mrf.mxu2 }
 0x22e   : > { %3325 = vst [vmem:[%s4879_s10 + $0x58] sm:$0xff] %v3309_v22  ;;  %v3191_v58 = vadd.f32 %v3190_v63, %v3142_v42 }
 0x22f   : > { %v3239_v44 = vpop.f32.mrf.mxu3  ;;  %v3143_v51 = vpop.f32.mrf.mxu1 }
 0x230   : > { %v3240_v59 = vadd.f32 %v3239_v44, %v3191_v58  ;;  %v3144_v56 = vadd.f32 %v3143_v51, %v5237_v48 }
 0x231   : > { %v3290_v19 = vpop.f32.mrf.mxu0 }
 0x232   : > { %v3289_v54 = vadd.f32 %v3288_v57, %v3240_v59 }
 0x234   : > { %v3310_v33 = vmax.f32 %v3289_v54, 0.0 }
 0x235   : > { %v3192_v2 = vpop.f32.mrf.mxu2 }
 0x236   : > { %3326 = vst [vmem:[%s4879_s10 + $0x60] sm:$0xff] %v3310_v33  ;;  %v3193_v7 = vadd.f32 %v3192_v2, %v3144_v56 }
 0x237   : > { %v3241_v47 = vpop.f32.mrf.mxu3  ;;  %v3146_v53 = vpop.f32.mrf.mxu1 }
 0x238   : > { %v3242_v55 = vadd.f32 %v3241_v47, %v3193_v7  ;;  %v3147_v45 = vadd.f32 %v3146_v53, %v5240_v40 }
 0x239   : > { %v3293_v48 = vpop.f32.mrf.mxu0 }
 0x23a   : > { %v3291_v21 = vadd.f32 %v3290_v19, %v3242_v55 }
 0x23c   : > { %v3311_v60 = vmax.f32 %v3291_v21, 0.0 }
 0x23d   : > { %v3195_v24 = vpop.f32.mrf.mxu2 }
 0x23e   : > { %3327 = vst [vmem:[%s4879_s10 + $0x68] sm:$0xff] %v3311_v60  ;;  %v3196_v61 = vadd.f32 %v3195_v24, %v3147_v45 }
 0x23f   : > { %v3244_v1 = vpop.f32.mrf.mxu3  ;;  %v3148_v38 = vpop.f32.mrf.mxu1 }
 0x240   : > { %v3245_v50 = vadd.f32 %v3244_v1, %v3196_v61  ;;  %v3149_v5 = vadd.f32 %v3148_v38, %v5242_v49 }
 0x241   : > { %v3295_v10 = vpop.f32.mrf.mxu0 }
 0x242   : > { %v3294_v4 = vadd.f32 %v3293_v48, %v3245_v50 }
 0x244   : > { %v3312_v15 = vmax.f32 %v3294_v4, 0.0 }
 0x245   : > { %v3197_v40 = vpop.f32.mrf.mxu2 }
 0x246   : > { %3328 = vst [vmem:[%s4879_s10 + $0x70] sm:$0xff] %v3312_v15  ;;  %v3198_v6 = vadd.f32 %v3197_v40, %v3149_v5 }
 0x247   : > { %v3246_v18 = vpop.f32.mrf.mxu3 }
 0x248   : > { %v3247_v9 = vadd.f32 %v3246_v18, %v3198_v6 }
 0x24a   : > { %v3296_v12 = vadd.f32 %v3295_v10, %v3247_v9 }
 0x24c   : > { %v3313_v8 = vmax.f32 %v3296_v12, 0.0 }
 0x24e   : > { %3329 = vst [vmem:[%s4879_s10 + $0x78] sm:$0xff] %v3313_v8 }
 0x24f   : > { %4465 = shalt.err (!%p4462_p8)
}
 0x250   : > { %s4570_s3 = smov 128   ;;  %s4571_s10 = smov 8  }
 0x251   : > { %4265 = dma.vmem_to_hbm [thread:$0]  (%p4662_p6), %s3347_s27, 2048, %s3349_s29, %s3331_s25, %s4570_s3, %s4570_s3, %s4571_s10  }
 0x252 PF: > { %s5375_s7 = sld [smem:[#allocation13_spill]]  ;;  %p4282_p9 = scmp.ge.s32.totalorder %s4564_s22, 2 }
 0x254   : > { %p4276_p12 = pnand %p4282_p9, %p4668_p10 }
 0x256   : > { %p4277_p13 = pneg %p4276_p12 }
 0x258   : > { %s3363_s6 = sand.u32 1, %s5375_s7  }
 0x259   : > { %s3364_s18 = scalar_lea.sflag [#allocation6], %s3363_s6 }
 0x25a   : > { %4519 = dma.done.wait (%p4277_p13), %s3364_s18, 2048  }
 0x25b   : > { %4521 = vsyncadd (%p4277_p13), %s3364_s18, 4294965248  ;;  %s20_s22 = sadd.s32 1, %s4564_s22   ;;  %s5377_s18 = sld [smem:[#allocation14_spill]] }
 0x25c   : > { %p17_p1 = scmp.ge.s32.totalorder %s20_s22, 6   ;;  %s5378_s20 = sld [smem:[#allocation17_spill]] }
 0x25d   : > { %s5379_s28 = sld [smem:[#allocation18_spill]]  ;;  %s5380_s12 = smov %s4528_s13 }
 0x25e   : > { %s5381_s13 = smov %s4532_s14  ;;  %s5382_s14 = smov %s4713_s1 }
 0x25f   : > { %s5383_s15 = smov %s4540_s16  ;;  %s5384_s16 = smov %s4544_s17 }
 0x260   : > { %s5385_s17 = smov %s4710_s9  ;;  %s5386_s19 = smov %s4560_s21 }
 0x261   :  { %19 = sbr.rel (!%p17_p1) target bundleno = 13 (0xd), region = 95 }
 0x263   : > { %s5387_s21 = smov %s5379_s28 }
 0x266   :  { %3370 = vsyncpa [#allocation5], 1 }
 0x267   :  { %3372 = vsyncpa [#allocation5 + $0x1], 1 }
 0x268   :  { %3373 = vsyncpa [#allocation8], 1 }
 0x269   :  { %3374 = vsyncpa [#allocation6], 1 }
 0x26a   :  { %3376 = vsyncpa [#allocation6 + $0x1], 1 }

</bundles_post_ra>
